<compile_context>
chip_gen: v6e
topology: v6e:2x2x1
jax: 0.10.0
libtpu: 0.0.40
codegen_flags: <defaults>
</compile_context>

<pallas_src>
import jax
import jax.numpy as jnp
from jax.experimental import pallas as pl
from jax.experimental.pallas import tpu as pltpu

LANE = 128  # pad channel / K dims to multiples of this for lane-dense vregs


# ----------------------------- Pallas kernels ------------------------------

def conv_bn_block_kernel(p_ref, w_ref, b_ref, g_ref, be_ref, o_ref):
    """Fused Conv(im2col GEMM) + bias + LeakyReLU(0.2) + BatchNorm (training mode).

    p:  [M, Kp]   bf16 im2col patches (K zero-padded to a multiple of 128)
    w:  [Kp, 128] bf16 weights (Cout zero-padded to 128)
    b/g/be: [1, 128] f32 bias / gamma / beta (zero-padded)
    o:  [M, 128]  f32 (padded channels come out exactly 0)
    """
    acc = jnp.dot(p_ref[...], w_ref[...], preferred_element_type=jnp.float32)
    acc = acc + b_ref[...]
    acc = jnp.where(acc > 0, acc, 0.2 * acc)                  # LeakyReLU(0.2)
    # BatchNorm2d training semantics: batch mean / biased variance over N*OH*OW.
    mean = jnp.mean(acc, axis=0, keepdims=True)
    var = jnp.mean((acc - mean) ** 2, axis=0, keepdims=True)
    inv = jax.lax.rsqrt(var + 1e-5)
    o_ref[...] = (acc - mean) * inv * g_ref[...] + be_ref[...]


def conv_bn_head_kernel(p_ref, w3_ref, b3_ref, g3_ref, be3_ref,
                        w4_ref, b4_ref, o_ref):
    """Block 3 (conv+bias+lrelu+BN) fused with the 4x4 head conv + LeakyReLU.

    p:  [S*N, K3p] bf16, rows ordered (spatial tap s, image n) so the head can
        consume contiguous N-row slices per tap.
    w3: [K3p, 128] bf16;  w4: [S, 128, 128] bf16;  b3/g3/be3/b4: [1, 128] f32.
    o:  [N, 128] f32 (first 10 lanes are the real logits).
    """
    acc = jnp.dot(p_ref[...], w3_ref[...], preferred_element_type=jnp.float32)
    acc = acc + b3_ref[...]
    acc = jnp.where(acc > 0, acc, 0.2 * acc)
    mean = jnp.mean(acc, axis=0, keepdims=True)
    var = jnp.mean((acc - mean) ** 2, axis=0, keepdims=True)
    act3 = (acc - mean) * jax.lax.rsqrt(var + 1e-5) * g3_ref[...] + be3_ref[...]

    # Head: Conv2d(32->10, k=4, s=1) on the 4x4 map == sum over S=16 spatial
    # taps of a [N, C] @ [C, Co] GEMM; rows for tap s are act3[s*N:(s+1)*N].
    s_total = w4_ref.shape[0]
    n = o_ref.shape[0]
    head = jnp.zeros((n, o_ref.shape[1]), jnp.float32) + b4_ref[...]
    for s in range(s_total):                                   # static unroll
        lhs = act3[s * n:(s + 1) * n, :].astype(jnp.bfloat16)
        head = head + jnp.dot(lhs, w4_ref[s],
                              preferred_element_type=jnp.float32)
    o_ref[...] = jnp.where(head > 0, head, 0.2 * head)         # final LeakyReLU


def _vmem():
    return pl.BlockSpec(memory_space=pltpu.MemorySpace.VMEM)


# ----------------------------- wrapper helpers ------------------------------

def _round_up(n, m):
    return ((n + m - 1) // m) * m


def _pad_axis(a, axis, target):
    pad = target - a.shape[axis]
    if pad <= 0:
        return a
    widths = [(0, 0)] * a.ndim
    widths[axis] = (0, pad)
    return jnp.pad(a, widths)


def _im2col(x_nhwc, kh, kw, stride):
    """x: [N,H,W,C] -> patches [N, OH, OW, kh*kw*C]  (K ordered (ki, kj, ci))."""
    N, H, W, C = x_nhwc.shape
    OH = (H - kh) // stride + 1
    OW = (W - kw) // stride + 1
    cols = []
    for i in range(kh):
        for j in range(kw):
            cols.append(x_nhwc[:, i:i + stride * OH:stride,
                               j:j + stride * OW:stride, :])
    p = jnp.stack(cols, axis=3)                 # [N, OH, OW, kh*kw, C]
    return p.reshape(N, OH, OW, kh * kw * C), OH, OW


def _reflect_pad(x_nhwc):
    return jnp.pad(x_nhwc, ((0, 0), (1, 1), (1, 1), (0, 0)), mode="reflect")


def conv_bn_block(x_nhwc, wmat, bias, gamma, beta, *, stride=2):
    """ReflectionPad(1) + Conv(k4) + LeakyReLU + BN as one fused Pallas kernel.

    Returns [N, OH, OW, 128] f32 with channels >= Cout exactly zero.
    """
    xp = _reflect_pad(x_nhwc)
    patches, OH, OW = _im2col(xp, 4, 4, stride)
    N = x_nhwc.shape[0]
    K = patches.shape[-1]
    Kp = _round_up(K, LANE)
    M = N * OH * OW
    p2d = _pad_axis(patches.reshape(M, K), 1, Kp).astype(jnp.bfloat16)
    w_p = _pad_axis(_pad_axis(wmat, 0, Kp), 1, LANE).astype(jnp.bfloat16)

    out = pl.pallas_call(
        conv_bn_block_kernel,
        out_shape=jax.ShapeDtypeStruct((M, LANE), jnp.float32),
        in_specs=[_vmem() for _ in range(5)],
        out_specs=_vmem(),
    )(p2d, w_p,
      _pad_axis(bias.reshape(1, -1), 1, LANE),
      _pad_axis(gamma.reshape(1, -1), 1, LANE),
      _pad_axis(beta.reshape(1, -1), 1, LANE))
    return out.reshape(N, OH, OW, LANE)


def conv_bn_head(x_nhwc, w3mat, b3, g3, be3, w4_taps, b4):
    """Block 3 (pad+conv+lrelu+BN) fused with the 4x4 head conv + LeakyReLU."""
    xp = _reflect_pad(x_nhwc)
    patches, OH, OW = _im2col(xp, 4, 4, 2)      # -> [N, 4, 4, 256]
    N = x_nhwc.shape[0]
    K = patches.shape[-1]
    Kp = _round_up(K, LANE)
    S = OH * OW                                  # 16 spatial taps for the head
    # rows ordered (s, n): contiguous N-row slice per head tap inside the kernel
    p2d = patches.reshape(N, S, K).transpose(1, 0, 2).reshape(S * N, K)
    p2d = _pad_axis(p2d, 1, Kp).astype(jnp.bfloat16)
    w3_p = _pad_axis(_pad_axis(w3mat, 0, Kp), 1, LANE).astype(jnp.bfloat16)
    w4_p = _pad_axis(_pad_axis(w4_taps, 1, LANE), 2, LANE).astype(jnp.bfloat16)

    out = pl.pallas_call(
        conv_bn_head_kernel,
        out_shape=jax.ShapeDtypeStruct((N, LANE), jnp.float32),
        in_specs=[_vmem() for _ in range(7)],
        out_specs=_vmem(),
    )(p2d, w3_p,
      _pad_axis(b3.reshape(1, -1), 1, LANE),
      _pad_axis(g3.reshape(1, -1), 1, LANE),
      _pad_axis(be3.reshape(1, -1), 1, LANE),
      w4_p,
      _pad_axis(b4.reshape(1, -1), 1, LANE))
    return out[:, :10]


# ------------------------------ model --------------------------------------

def init_params(key):
    ks = jax.random.split(key, 8)

    def conv_w(k, kh, kw, cin, cout):
        fan_in = kh * kw * cin
        return (jax.random.normal(k, (kh, kw, cin, cout), jnp.float32)
                / jnp.sqrt(fan_in))

    w1 = conv_w(ks[0], 4, 4, 3, 6)
    w2 = conv_w(ks[2], 4, 4, 6, 16)
    w3 = conv_w(ks[4], 4, 4, 16, 32)
    w4 = conv_w(ks[6], 4, 4, 32, 10)
    return {
        # conv weights stored as im2col matrices [KH*KW*Cin, Cout], K=(ki,kj,ci)
        "w1m": w1.reshape(48, 6),
        "b1": 0.01 * jax.random.normal(ks[1], (6,), jnp.float32),
        "g1": jnp.ones((6,), jnp.float32), "be1": jnp.zeros((6,), jnp.float32),
        "w2m": w2.reshape(96, 16),
        "b2": 0.01 * jax.random.normal(ks[3], (16,), jnp.float32),
        "g2": jnp.ones((16,), jnp.float32), "be2": jnp.zeros((16,), jnp.float32),
        "w3m": w3.reshape(256, 32),
        "b3": 0.01 * jax.random.normal(ks[5], (32,), jnp.float32),
        "g3": jnp.ones((32,), jnp.float32), "be3": jnp.zeros((32,), jnp.float32),
        # head weight per spatial tap s = i*4+j: [16, Cin=32, Cout=10]
        "w4t": w4.reshape(16, 32, 10),
        "b4": 0.01 * jax.random.normal(ks[7], (10,), jnp.float32),
    }


@jax.jit
def forward(params, x_nchw):
    # x_nchw: [N, 3, 32, 32] (NCHW, as PyTorch); 32x32 required by the final 4x4 conv
    x = jnp.transpose(x_nchw, (0, 2, 3, 1)).astype(jnp.float32)       # -> NHWC

    a1 = conv_bn_block(x, params["w1m"], params["b1"],
                       params["g1"], params["be1"], stride=2)[..., :6]
    a2 = conv_bn_block(a1, params["w2m"], params["b2"],
                       params["g2"], params["be2"], stride=2)[..., :16]
    out = conv_bn_head(a2, params["w3m"], params["b3"],
                       params["g3"], params["be3"],
                       params["w4t"], params["b4"])
    return out                                                        # [N, 10]


# ------------------------- pure-JAX reference -------------------------------

@jax.jit
def forward_reference(params, x_nchw):
    x = jnp.transpose(x_nchw, (0, 2, 3, 1)).astype(jnp.float32)

    def block(xin, wmat, bias, gamma, beta, cout):
        xp = _reflect_pad(xin)
        patches, OH, OW = _im2col(xp, 4, 4, 2)
        N = xin.shape[0]
        p2d = patches.reshape(N * OH * OW, -1).astype(jnp.bfloat16)
        acc = jnp.dot(p2d, wmat.astype(jnp.bfloat16),
                      preferred_element_type=jnp.float32) + bias
        acc = jnp.where(acc > 0, acc, 0.2 * acc)
        mean = jnp.mean(acc, axis=0, keepdims=True)
        var = jnp.mean((acc - mean) ** 2, axis=0, keepdims=True)
        y = (acc - mean) * jax.lax.rsqrt(var + 1e-5) * gamma + beta
        return y.reshape(N, OH, OW, cout)

    a1 = block(x, params["w1m"], params["b1"], params["g1"], params["be1"], 6)
    a2 = block(a1, params["w2m"], params["b2"], params["g2"], params["be2"], 16)
    a3 = block(a2, params["w3m"], params["b3"], params["g3"], params["be3"], 32)
    N = x.shape[0]
    feats = a3.reshape(N, 16 * 32).astype(jnp.bfloat16)
    w4 = params["w4t"].reshape(16 * 32, 10).astype(jnp.bfloat16)
    h = jnp.dot(feats, w4, preferred_element_type=jnp.float32) + params["b4"]
    return jnp.where(h > 0, h, 0.2 * h)


if __name__ == "__main__":
    key = jax.random.PRNGKey(0)
    k_param, k_x = jax.random.split(key)
    params = init_params(k_param)
    x = jax.random.normal(k_x, (2, 3, 32, 32), jnp.float32)

    out = jax.block_until_ready(forward(params, x))
    assert out.shape == (2, 10), out.shape
    assert bool(jnp.isfinite(out).all())

    ref = jax.block_until_ready(forward_reference(params, x))
    err = float(jnp.max(jnp.abs(out - ref)))
    assert err < 5e-2, f"max |pallas - ref| = {err}"
    print("KERNEL_OK")
</pallas_src>

<mosaic_0001>
module attributes {stable_mosaic.version = 11 : i64} {
  func.func @conv_bn_block_kernel(%arg0: memref<512x128xbf16, #tpu.memory_space<vmem>>, %arg1: memref<128x128xbf16, #tpu.memory_space<vmem>>, %arg2: memref<1x128xf32, #tpu.memory_space<vmem>>, %arg3: memref<1x128xf32, #tpu.memory_space<vmem>>, %arg4: memref<1x128xf32, #tpu.memory_space<vmem>>, %arg5: memref<512x128xf32, #tpu.memory_space<vmem>>) attributes {dimension_semantics = [], scalar_prefetch = 0 : i64, scratch_operands = 0 : i64, tpu.core_type = #tpu.core_type<tc>} {
    %c0 = arith.constant 0 : index
    %c0_0 = arith.constant 0 : index
    %0 = vector.load %arg0[%c0, %c0_0] : memref<512x128xbf16, #tpu.memory_space<vmem>>, vector<512x128xbf16>
    %c0_1 = arith.constant 0 : index
    %c0_2 = arith.constant 0 : index
    %1 = vector.load %arg1[%c0_1, %c0_2] : memref<128x128xbf16, #tpu.memory_space<vmem>>, vector<128x128xbf16>
    %cst = arith.constant dense<0.000000e+00> : vector<512x128xf32>
    %2 = tpu.matmul %0, %1, %cst {dimension_numbers = #tpu.dot_dimension_numbers<[1], [0], [0], [1], [0, 0, 1, 1], [], []>} : vector<512x128xbf16>, vector<128x128xbf16>, vector<512x128xf32> -> vector<512x128xf32>
    %c0_3 = arith.constant 0 : index
    %c0_4 = arith.constant 0 : index
    %3 = vector.load %arg2[%c0_3, %c0_4] : memref<1x128xf32, #tpu.memory_space<vmem>>, vector<1x128xf32>
    %4 = vector.broadcast %3 : vector<1x128xf32> to vector<512x128xf32>
    %5 = arith.addf %2, %4 : vector<512x128xf32>
    %cst_5 = arith.constant 0.000000e+00 : f32
    %6 = vector.broadcast %cst_5 : f32 to vector<512x128xf32>
    %7 = arith.cmpf ogt, %5, %6 : vector<512x128xf32>
    %cst_6 = arith.constant 2.000000e-01 : f32
    %8 = vector.broadcast %cst_6 : f32 to vector<512x128xf32>
    %9 = arith.mulf %8, %5 : vector<512x128xf32>
    %10 = arith.select %7, %5, %9 : vector<512x128xi1>, vector<512x128xf32>
    %cst_7 = arith.constant dense<0.000000e+00> : vector<128xf32>
    %11 = vector.multi_reduction <add>, %10, %cst_7 [0] : vector<512x128xf32> to vector<128xf32>
    %12 = vector.shape_cast %11 : vector<128xf32> to vector<1x128xf32>
    %cst_8 = arith.constant 5.120000e+02 : f32
    %13 = vector.broadcast %cst_8 : f32 to vector<1x128xf32>
    %14 = arith.divf %12, %13 : vector<1x128xf32>
    %15 = vector.broadcast %14 : vector<1x128xf32> to vector<512x128xf32>
    %16 = arith.subf %10, %15 : vector<512x128xf32>
    %17 = arith.mulf %16, %16 : vector<512x128xf32>
    %cst_9 = arith.constant dense<0.000000e+00> : vector<128xf32>
    %18 = vector.multi_reduction <add>, %17, %cst_9 [0] : vector<512x128xf32> to vector<128xf32>
    %19 = vector.shape_cast %18 : vector<128xf32> to vector<1x128xf32>
    %cst_10 = arith.constant 5.120000e+02 : f32
    %20 = vector.broadcast %cst_10 : f32 to vector<1x128xf32>
    %21 = arith.divf %19, %20 : vector<1x128xf32>
    %cst_11 = arith.constant 9.99999974E-6 : f32
    %22 = vector.broadcast %cst_11 : f32 to vector<1x128xf32>
    %23 = arith.addf %21, %22 : vector<1x128xf32>
    %24 = math.rsqrt %23 : vector<1x128xf32>
    %25 = vector.broadcast %14 : vector<1x128xf32> to vector<512x128xf32>
    %26 = arith.subf %10, %25 : vector<512x128xf32>
    %27 = vector.broadcast %24 : vector<1x128xf32> to vector<512x128xf32>
    %28 = arith.mulf %26, %27 : vector<512x128xf32>
    %c0_12 = arith.constant 0 : index
    %c0_13 = arith.constant 0 : index
    %29 = vector.load %arg3[%c0_12, %c0_13] : memref<1x128xf32, #tpu.memory_space<vmem>>, vector<1x128xf32>
    %30 = vector.broadcast %29 : vector<1x128xf32> to vector<512x128xf32>
    %31 = arith.mulf %28, %30 : vector<512x128xf32>
    %c0_14 = arith.constant 0 : index
    %c0_15 = arith.constant 0 : index
    %32 = vector.load %arg4[%c0_14, %c0_15] : memref<1x128xf32, #tpu.memory_space<vmem>>, vector<1x128xf32>
    %33 = vector.broadcast %32 : vector<1x128xf32> to vector<512x128xf32>
    %34 = arith.addf %31, %33 : vector<512x128xf32>
    %c0_16 = arith.constant 0 : index
    %c0_17 = arith.constant 0 : index
    %35 = vector.load %arg5[%c0_16, %c0_17] : memref<512x128xf32, #tpu.memory_space<vmem>>, vector<512x128xf32>
    tpu.vector_store %arg5[%c0_16, %c0_17], %34 {strides = array<i32>} : memref<512x128xf32, #tpu.memory_space<vmem>>, vector<512x128xf32>,
    return
  }
}

module attributes {stable_mosaic.version = 11 : i64} {
  func.func @conv_bn_block_kernel(%arg0: memref<128x128xbf16, #tpu.memory_space<vmem>>, %arg1: memref<128x128xbf16, #tpu.memory_space<vmem>>, %arg2: memref<1x128xf32, #tpu.memory_space<vmem>>, %arg3: memref<1x128xf32, #tpu.memory_space<vmem>>, %arg4: memref<1x128xf32, #tpu.memory_space<vmem>>, %arg5: memref<128x128xf32, #tpu.memory_space<vmem>>) attributes {dimension_semantics = [], scalar_prefetch = 0 : i64, scratch_operands = 0 : i64, tpu.core_type = #tpu.core_type<tc>} {
    %c0 = arith.constant 0 : index
    %c0_0 = arith.constant 0 : index
    %0 = vector.load %arg0[%c0, %c0_0] : memref<128x128xbf16, #tpu.memory_space<vmem>>, vector<128x128xbf16>
    %c0_1 = arith.constant 0 : index
    %c0_2 = arith.constant 0 : index
    %1 = vector.load %arg1[%c0_1, %c0_2] : memref<128x128xbf16, #tpu.memory_space<vmem>>, vector<128x128xbf16>
    %cst = arith.constant dense<0.000000e+00> : vector<128x128xf32>
    %2 = tpu.matmul %0, %1, %cst {dimension_numbers = #tpu.dot_dimension_numbers<[1], [0], [0], [1], [0, 0, 1, 1], [], []>} : vector<128x128xbf16>, vector<128x128xbf16>, vector<128x128xf32> -> vector<128x128xf32>
    %c0_3 = arith.constant 0 : index
    %c0_4 = arith.constant 0 : index
    %3 = vector.load %arg2[%c0_3, %c0_4] : memref<1x128xf32, #tpu.memory_space<vmem>>, vector<1x128xf32>
    %4 = vector.broadcast %3 : vector<1x128xf32> to vector<128x128xf32>
    %5 = arith.addf %2, %4 : vector<128x128xf32>
    %cst_5 = arith.constant 0.000000e+00 : f32
    %6 = vector.broadcast %cst_5 : f32 to vector<128x128xf32>
    %7 = arith.cmpf ogt, %5, %6 : vector<128x128xf32>
    %cst_6 = arith.constant 2.000000e-01 : f32
    %8 = vector.broadcast %cst_6 : f32 to vector<128x128xf32>
    %9 = arith.mulf %8, %5 : vector<128x128xf32>
    %10 = arith.select %7, %5, %9 : vector<128x128xi1>, vector<128x128xf32>
    %cst_7 = arith.constant dense<0.000000e+00> : vector<128xf32>
    %11 = vector.multi_reduction <add>, %10, %cst_7 [0] : vector<128x128xf32> to vector<128xf32>
    %12 = vector.shape_cast %11 : vector<128xf32> to vector<1x128xf32>
    %cst_8 = arith.constant 1.280000e+02 : f32
    %13 = vector.broadcast %cst_8 : f32 to vector<1x128xf32>
    %14 = arith.divf %12, %13 : vector<1x128xf32>
    %15 = vector.broadcast %14 : vector<1x128xf32> to vector<128x128xf32>
    %16 = arith.subf %10, %15 : vector<128x128xf32>
    %17 = arith.mulf %16, %16 : vector<128x128xf32>
    %cst_9 = arith.constant dense<0.000000e+00> : vector<128xf32>
    %18 = vector.multi_reduction <add>, %17, %cst_9 [0] : vector<128x128xf32> to vector<128xf32>
    %19 = vector.shape_cast %18 : vector<128xf32> to vector<1x128xf32>
    %cst_10 = arith.constant 1.280000e+02 : f32
    %20 = vector.broadcast %cst_10 : f32 to vector<1x128xf32>
    %21 = arith.divf %19, %20 : vector<1x128xf32>
    %cst_11 = arith.constant 9.99999974E-6 : f32
    %22 = vector.broadcast %cst_11 : f32 to vector<1x128xf32>
    %23 = arith.addf %21, %22 : vector<1x128xf32>
    %24 = math.rsqrt %23 : vector<1x128xf32>
    %25 = vector.broadcast %14 : vector<1x128xf32> to vector<128x128xf32>
    %26 = arith.subf %10, %25 : vector<128x128xf32>
    %27 = vector.broadcast %24 : vector<1x128xf32> to vector<128x128xf32>
    %28 = arith.mulf %26, %27 : vector<128x128xf32>
    %c0_12 = arith.constant 0 : index
    %c0_13 = arith.constant 0 : index
    %29 = vector.load %arg3[%c0_12, %c0_13] : memref<1x128xf32, #tpu.memory_space<vmem>>, vector<1x128xf32>
    %30 = vector.broadcast %29 : vector<1x128xf32> to vector<128x128xf32>
    %31 = arith.mulf %28, %30 : vector<128x128xf32>
    %c0_14 = arith.constant 0 : index
    %c0_15 = arith.constant 0 : index
    %32 = vector.load %arg4[%c0_14, %c0_15] : memref<1x128xf32, #tpu.memory_space<vmem>>, vector<1x128xf32>
    %33 = vector.broadcast %32 : vector<1x128xf32> to vector<128x128xf32>
    %34 = arith.addf %31, %33 : vector<128x128xf32>
    %c0_16 = arith.constant 0 : index
    %c0_17 = arith.constant 0 : index
    %35 = vector.load %arg5[%c0_16, %c0_17] : memref<128x128xf32, #tpu.memory_space<vmem>>, vector<128x128xf32>
    tpu.vector_store %arg5[%c0_16, %c0_17], %34 {strides = array<i32>} : memref<128x128xf32, #tpu.memory_space<vmem>>, vector<128x128xf32>,
    return
  }
}

module attributes {stable_mosaic.version = 11 : i64} {
  func.func @conv_bn_head_kernel(%arg0: memref<32x256xbf16, #tpu.memory_space<vmem>>, %arg1: memref<256x128xbf16, #tpu.memory_space<vmem>>, %arg2: memref<1x128xf32, #tpu.memory_space<vmem>>, %arg3: memref<1x128xf32, #tpu.memory_space<vmem>>, %arg4: memref<1x128xf32, #tpu.memory_space<vmem>>, %arg5: memref<16x128x128xbf16, #tpu.memory_space<vmem>>, %arg6: memref<1x128xf32, #tpu.memory_space<vmem>>, %arg7: memref<2x128xf32, #tpu.memory_space<vmem>>) attributes {dimension_semantics = [], scalar_prefetch = 0 : i64, scratch_operands = 0 : i64, tpu.core_type = #tpu.core_type<tc>} {
    %c0 = arith.constant 0 : index
    %c0_0 = arith.constant 0 : index
    %0 = vector.load %arg0[%c0, %c0_0] : memref<32x256xbf16, #tpu.memory_space<vmem>>, vector<32x256xbf16>
    %c0_1 = arith.constant 0 : index
    %c0_2 = arith.constant 0 : index
    %1 = vector.load %arg1[%c0_1, %c0_2] : memref<256x128xbf16, #tpu.memory_space<vmem>>, vector<256x128xbf16>
    %cst = arith.constant dense<0.000000e+00> : vector<32x128xf32>
    %2 = tpu.matmul %0, %1, %cst {dimension_numbers = #tpu.dot_dimension_numbers<[1], [0], [0], [1], [0, 0, 1, 1], [], []>} : vector<32x256xbf16>, vector<256x128xbf16>, vector<32x128xf32> -> vector<32x128xf32>
    %c0_3 = arith.constant 0 : index
    %c0_4 = arith.constant 0 : index
    %3 = vector.load %arg2[%c0_3, %c0_4] : memref<1x128xf32, #tpu.memory_space<vmem>>, vector<1x128xf32>
    %4 = vector.broadcast %3 : vector<1x128xf32> to vector<32x128xf32>
    %5 = arith.addf %2, %4 : vector<32x128xf32>
    %cst_5 = arith.constant 0.000000e+00 : f32
    %6 = vector.broadcast %cst_5 : f32 to vector<32x128xf32>
    %7 = arith.cmpf ogt, %5, %6 : vector<32x128xf32>
    %cst_6 = arith.constant 2.000000e-01 : f32
    %8 = vector.broadcast %cst_6 : f32 to vector<32x128xf32>
    %9 = arith.mulf %8, %5 : vector<32x128xf32>
    %10 = arith.select %7, %5, %9 : vector<32x128xi1>, vector<32x128xf32>
    %cst_7 = arith.constant dense<0.000000e+00> : vector<128xf32>
    %11 = vector.multi_reduction <add>, %10, %cst_7 [0] : vector<32x128xf32> to vector<128xf32>
    %12 = vector.shape_cast %11 : vector<128xf32> to vector<1x128xf32>
    %cst_8 = arith.constant 3.200000e+01 : f32
    %13 = vector.broadcast %cst_8 : f32 to vector<1x128xf32>
    %14 = arith.divf %12, %13 : vector<1x128xf32>
    %15 = vector.broadcast %14 : vector<1x128xf32> to vector<32x128xf32>
    %16 = arith.subf %10, %15 : vector<32x128xf32>
    %17 = arith.mulf %16, %16 : vector<32x128xf32>
    %cst_9 = arith.constant dense<0.000000e+00> : vector<128xf32>
    %18 = vector.multi_reduction <add>, %17, %cst_9 [0] : vector<32x128xf32> to vector<128xf32>
    %19 = vector.shape_cast %18 : vector<128xf32> to vector<1x128xf32>
    %cst_10 = arith.constant 3.200000e+01 : f32
    %20 = vector.broadcast %cst_10 : f32 to vector<1x128xf32>
    %21 = arith.divf %19, %20 : vector<1x128xf32>
    %22 = vector.broadcast %14 : vector<1x128xf32> to vector<32x128xf32>
    %23 = arith.subf %10, %22 : vector<32x128xf32>
    %cst_11 = arith.constant 9.99999974E-6 : f32
    %24 = vector.broadcast %cst_11 : f32 to vector<1x128xf32>
    %25 = arith.addf %21, %24 : vector<1x128xf32>
    %26 = math.rsqrt %25 : vector<1x128xf32>
    %27 = vector.broadcast %26 : vector<1x128xf32> to vector<32x128xf32>
    %28 = arith.mulf %23, %27 : vector<32x128xf32>
    %c0_12 = arith.constant 0 : index
    %c0_13 = arith.constant 0 : index
    %29 = vector.load %arg3[%c0_12, %c0_13] : memref<1x128xf32, #tpu.memory_space<vmem>>, vector<1x128xf32>
    %30 = vector.broadcast %29 : vector<1x128xf32> to vector<32x128xf32>
    %31 = arith.mulf %28, %30 : vector<32x128xf32>
    %c0_14 = arith.constant 0 : index
    %c0_15 = arith.constant 0 : index
    %32 = vector.load %arg4[%c0_14, %c0_15] : memref<1x128xf32, #tpu.memory_space<vmem>>, vector<1x128xf32>
    %33 = vector.broadcast %32 : vector<1x128xf32> to vector<32x128xf32>
    %34 = arith.addf %31, %33 : vector<32x128xf32>
    %cst_16 = arith.constant 0.000000e+00 : f32
    %35 = vector.broadcast %cst_16 : f32 to vector<2x128xf32>
    %c0_17 = arith.constant 0 : index
    %c0_18 = arith.constant 0 : index
    %36 = vector.load %arg6[%c0_17, %c0_18] : memref<1x128xf32, #tpu.memory_space<vmem>>, vector<1x128xf32>
    %37 = vector.broadcast %36 : vector<1x128xf32> to vector<2x128xf32>
    %38 = arith.addf %35, %37 : vector<2x128xf32>
    %39 = vector.extract_strided_slice %34 {offsets = [0, 0], sizes = [2, 128], strides = [1, 1]} : vector<32x128xf32> to vector<2x128xf32>
    %40 = arith.truncf %39 : vector<2x128xf32> to vector<2x128xbf16>
    %c0_19 = arith.constant 0 : index
    %c0_20 = arith.constant 0 : index
    %c0_21 = arith.constant 0 : index
    %41 = vector.load %arg5[%c0_19, %c0_20, %c0_21] : memref<16x128x128xbf16, #tpu.memory_space<vmem>>, vector<1x128x128xbf16>
    %42 = vector.shape_cast %41 : vector<1x128x128xbf16> to vector<128x128xbf16>
    %cst_22 = arith.constant dense<0.000000e+00> : vector<2x128xf32>
    %43 = tpu.matmul %40, %42, %cst_22 {dimension_numbers = #tpu.dot_dimension_numbers<[1], [0], [0], [1], [0, 0, 1, 1], [], []>} : vector<2x128xbf16>, vector<128x128xbf16>, vector<2x128xf32> -> vector<2x128xf32>
    %44 = arith.addf %38, %43 : vector<2x128xf32>
    %45 = vector.extract_strided_slice %34 {offsets = [2, 0], sizes = [2, 128], strides = [1, 1]} : vector<32x128xf32> to vector<2x128xf32>
    %46 = arith.truncf %45 : vector<2x128xf32> to vector<2x128xbf16>
    %c1 = arith.constant 1 : index
    %c0_23 = arith.constant 0 : index
    %c0_24 = arith.constant 0 : index
    %47 = vector.load %arg5[%c1, %c0_23, %c0_24] : memref<16x128x128xbf16, #tpu.memory_space<vmem>>, vector<1x128x128xbf16>
    %48 = vector.shape_cast %47 : vector<1x128x128xbf16> to vector<128x128xbf16>
    %cst_25 = arith.constant dense<0.000000e+00> : vector<2x128xf32>
    %49 = tpu.matmul %46, %48, %cst_25 {dimension_numbers = #tpu.dot_dimension_numbers<[1], [0], [0], [1], [0, 0, 1, 1], [], []>} : vector<2x128xbf16>, vector<128x128xbf16>, vector<2x128xf32> -> vector<2x128xf32>
    %50 = arith.addf %44, %49 : vector<2x128xf32>
    %51 = vector.extract_strided_slice %34 {offsets = [4, 0], sizes = [2, 128], strides = [1, 1]} : vector<32x128xf32> to vector<2x128xf32>
    %52 = arith.truncf %51 : vector<2x128xf32> to vector<2x128xbf16>
    %c2 = arith.constant 2 : index
    %c0_26 = arith.constant 0 : index
    %c0_27 = arith.constant 0 : index
    %53 = vector.load %arg5[%c2, %c0_26, %c0_27] : memref<16x128x128xbf16, #tpu.memory_space<vmem>>, vector<1x128x128xbf16>
    %54 = vector.shape_cast %53 : vector<1x128x128xbf16> to vector<128x128xbf16>
    %cst_28 = arith.constant dense<0.000000e+00> : vector<2x128xf32>
    %55 = tpu.matmul %52, %54, %cst_28 {dimension_numbers = #tpu.dot_dimension_numbers<[1], [0], [0], [1], [0, 0, 1, 1], [], []>} : vector<2x128xbf16>, vector<128x128xbf16>, vector<2x128xf32> -> vector<2x128xf32>
    %56 = arith.addf %50, %55 : vector<2x128xf32>
    %57 = vector.extract_strided_slice %34 {offsets = [6, 0], sizes = [2, 128], strides = [1, 1]} : vector<32x128xf32> to vector<2x128xf32>
    %58 = arith.truncf %57 : vector<2x128xf32> to vector<2x128xbf16>
    %c3 = arith.constant 3 : index
    %c0_29 = arith.constant 0 : index
    %c0_30 = arith.constant 0 : index
    %59 = vector.load %arg5[%c3, %c0_29, %c0_30] : memref<16x128x128xbf16, #tpu.memory_space<vmem>>, vector<1x128x128xbf16>
    %60 = vector.shape_cast %59 : vector<1x128x128xbf16> to vector<128x128xbf16>
    %cst_31 = arith.constant dense<0.000000e+00> : vector<2x128xf32>
    %61 = tpu.matmul %58, %60, %cst_31 {dimension_numbers = #tpu.dot_dimension_numbers<[1], [0], [0], [1], [0, 0, 1, 1], [], []>} : vector<2x128xbf16>, vector<128x128xbf16>, vector<2x128xf32> -> vector<2x128xf32>
    %62 = arith.addf %56, %61 : vector<2x128xf32>
    %63 = vector.extract_strided_slice %34 {offsets = [8, 0], sizes = [2, 128], strides = [1, 1]} : vector<32x128xf32> to vector<2x128xf32>
    %64 = arith.truncf %63 : vector<2x128xf32> to vector<2x128xbf16>
    %c4 = arith.constant 4 : index
    %c0_32 = arith.constant 0 : index
    %c0_33 = arith.constant 0 : index
    %65 = vector.load %arg5[%c4, %c0_32, %c0_33] : memref<16x128x128xbf16, #tpu.memory_space<vmem>>, vector<1x128x128xbf16>
    %66 = vector.shape_cast %65 : vector<1x128x128xbf16> to vector<128x128xbf16>
    %cst_34 = arith.constant dense<0.000000e+00> : vector<2x128xf32>
    %67 = tpu.matmul %64, %66, %cst_34 {dimension_numbers = #tpu.dot_dimension_numbers<[1], [0], [0], [1], [0, 0, 1, 1], [], []>} : vector<2x128xbf16>, vector<128x128xbf16>, vector<2x128xf32> -> vector<2x128xf32>
    %68 = arith.addf %62, %67 : vector<2x128xf32>
    %69 = vector.extract_strided_slice %34 {offsets = [10, 0], sizes = [2, 128], strides = [1, 1]} : vector<32x128xf32> to vector<2x128xf32>
    %70 = arith.truncf %69 : vector<2x128xf32> to vector<2x128xbf16>
    %c5 = arith.constant 5 : index
    %c0_35 = arith.constant 0 : index
    %c0_36 = arith.constant 0 : index
    %71 = vector.load %arg5[%c5, %c0_35, %c0_36] : memref<16x128x128xbf16, #tpu.memory_space<vmem>>, vector<1x128x128xbf16>
    %72 = vector.shape_cast %71 : vector<1x128x128xbf16> to vector<128x128xbf16>
    %cst_37 = arith.constant dense<0.000000e+00> : vector<2x128xf32>
    %73 = tpu.matmul %70, %72, %cst_37 {dimension_numbers = #tpu.dot_dimension_numbers<[1], [0], [0], [1], [0, 0, 1, 1], [], []>} : vector<2x128xbf16>, vector<128x128xbf16>, vector<2x128xf32> -> vector<2x128xf32>
    %74 = arith.addf %68, %73 : vector<2x128xf32>
    %75 = vector.extract_strided_slice %34 {offsets = [12, 0], sizes = [2, 128], strides = [1, 1]} : vector<32x128xf32> to vector<2x128xf32>
    %76 = arith.truncf %75 : vector<2x128xf32> to vector<2x128xbf16>
    %c6 = arith.constant 6 : index
    %c0_38 = arith.constant 0 : index
    %c0_39 = arith.constant 0 : index
    %77 = vector.load %arg5[%c6, %c0_38, %c0_39] : memref<16x128x128xbf16, #tpu.memory_space<vmem>>, vector<1x128x128xbf16>
    %78 = vector.shape_cast %77 : vector<1x128x128xbf16> to vector<128x128xbf16>
    %cst_40 = arith.constant dense<0.000000e+00> : vector<2x128xf32>
    %79 = tpu.matmul %76, %78, %cst_40 {dimension_numbers = #tpu.dot_dimension_numbers<[1], [0], [0], [1], [0, 0, 1, 1], [], []>} : vector<2x128xbf16>, vector<128x128xbf16>, vector<2x128xf32> -> vector<2x128xf32>
    %80 = arith.addf %74, %79 : vector<2x128xf32>
    %81 = vector.extract_strided_slice %34 {offsets = [14, 0], sizes = [2, 128], strides = [1, 1]} : vector<32x128xf32> to vector<2x128xf32>
    %82 = arith.truncf %81 : vector<2x128xf32> to vector<2x128xbf16>
    %c7 = arith.constant 7 : index
    %c0_41 = arith.constant 0 : index
    %c0_42 = arith.constant 0 : index
    %83 = vector.load %arg5[%c7, %c0_41, %c0_42] : memref<16x128x128xbf16, #tpu.memory_space<vmem>>, vector<1x128x128xbf16>
    %84 = vector.shape_cast %83 : vector<1x128x128xbf16> to vector<128x128xbf16>
    %cst_43 = arith.constant dense<0.000000e+00> : vector<2x128xf32>
    %85 = tpu.matmul %82, %84, %cst_43 {dimension_numbers = #tpu.dot_dimension_numbers<[1], [0], [0], [1], [0, 0, 1, 1], [], []>} : vector<2x128xbf16>, vector<128x128xbf16>, vector<2x128xf32> -> vector<2x128xf32>
    %86 = arith.addf %80, %85 : vector<2x128xf32>
    %87 = vector.extract_strided_slice %34 {offsets = [16, 0], sizes = [2, 128], strides = [1, 1]} : vector<32x128xf32> to vector<2x128xf32>
    %88 = arith.truncf %87 : vector<2x128xf32> to vector<2x128xbf16>
    %c8 = arith.constant 8 : index
    %c0_44 = arith.constant 0 : index
    %c0_45 = arith.constant 0 : index
    %89 = vector.load %arg5[%c8, %c0_44, %c0_45] : memref<16x128x128xbf16, #tpu.memory_space<vmem>>, vector<1x128x128xbf16>
    %90 = vector.shape_cast %89 : vector<1x128x128xbf16> to vector<128x128xbf16>
    %cst_46 = arith.constant dense<0.000000e+00> : vector<2x128xf32>
    %91 = tpu.matmul %88, %90, %cst_46 {dimension_numbers = #tpu.dot_dimension_numbers<[1], [0], [0], [1], [0, 0, 1, 1], [], []>} : vector<2x128xbf16>, vector<128x128xbf16>, vector<2x128xf32> -> vector<2x128xf32>
    %92 = arith.addf %86, %91 : vector<2x128xf32>
    %93 = vector.extract_strided_slice %34 {offsets = [18, 0], sizes = [2, 128], strides = [1, 1]} : vector<32x128xf32> to vector<2x128xf32>
    %94 = arith.truncf %93 : vector<2x128xf32> to vector<2x128xbf16>
    %c9 = arith.constant 9 : index
    %c0_47 = arith.constant 0 : index
    %c0_48 = arith.constant 0 : index
    %95 = vector.load %arg5[%c9, %c0_47, %c0_48] : memref<16x128x128xbf16, #tpu.memory_space<vmem>>, vector<1x128x128xbf16>
    %96 = vector.shape_cast %95 : vector<1x128x128xbf16> to vector<128x128xbf16>
    %cst_49 = arith.constant dense<0.000000e+00> : vector<2x128xf32>
    %97 = tpu.matmul %94, %96, %cst_49 {dimension_numbers = #tpu.dot_dimension_numbers<[1], [0], [0], [1], [0, 0, 1, 1], [], []>} : vector<2x128xbf16>, vector<128x128xbf16>, vector<2x128xf32> -> vector<2x128xf32>
    %98 = arith.addf %92, %97 : vector<2x128xf32>
    %99 = vector.extract_strided_slice %34 {offsets = [20, 0], sizes = [2, 128], strides = [1, 1]} : vector<32x128xf32> to vector<2x128xf32>
    %100 = arith.truncf %99 : vector<2x128xf32> to vector<2x128xbf16>
    %c10 = arith.constant 10 : index
    %c0_50 = arith.constant 0 : index
    %c0_51 = arith.constant 0 : index
    %101 = vector.load %arg5[%c10, %c0_50, %c0_51] : memref<16x128x128xbf16, #tpu.memory_space<vmem>>, vector<1x128x128xbf16>
    %102 = vector.shape_cast %101 : vector<1x128x128xbf16> to vector<128x128xbf16>
    %cst_52 = arith.constant dense<0.000000e+00> : vector<2x128xf32>
    %103 = tpu.matmul %100, %102, %cst_52 {dimension_numbers = #tpu.dot_dimension_numbers<[1], [0], [0], [1], [0, 0, 1, 1], [], []>} : vector<2x128xbf16>, vector<128x128xbf16>, vector<2x128xf32> -> vector<2x128xf32>
    %104 = arith.addf %98, %103 : vector<2x128xf32>
    %105 = vector.extract_strided_slice %34 {offsets = [22, 0], sizes = [2, 128], strides = [1, 1]} : vector<32x128xf32> to vector<2x128xf32>
    %106 = arith.truncf %105 : vector<2x128xf32> to vector<2x128xbf16>
    %c11 = arith.constant 11 : index
    %c0_53 = arith.constant 0 : index
    %c0_54 = arith.constant 0 : index
    %107 = vector.load %arg5[%c11, %c0_53, %c0_54] : memref<16x128x128xbf16, #tpu.memory_space<vmem>>, vector<1x128x128xbf16>
    %108 = vector.shape_cast %107 : vector<1x128x128xbf16> to vector<128x128xbf16>
    %cst_55 = arith.constant dense<0.000000e+00> : vector<2x128xf32>
    %109 = tpu.matmul %106, %108, %cst_55 {dimension_numbers = #tpu.dot_dimension_numbers<[1], [0], [0], [1], [0, 0, 1, 1], [], []>} : vector<2x128xbf16>, vector<128x128xbf16>, vector<2x128xf32> -> vector<2x128xf32>
    %110 = arith.addf %104, %109 : vector<2x128xf32>
    %111 = vector.extract_strided_slice %34 {offsets = [24, 0], sizes = [2, 128], strides = [1, 1]} : vector<32x128xf32> to vector<2x128xf32>
    %112 = arith.truncf %111 : vector<2x128xf32> to vector<2x128xbf16>
    %c12 = arith.constant 12 : index
    %c0_56 = arith.constant 0 : index
    %c0_57 = arith.constant 0 : index
    %113 = vector.load %arg5[%c12, %c0_56, %c0_57] : memref<16x128x128xbf16, #tpu.memory_space<vmem>>, vector<1x128x128xbf16>
    %114 = vector.shape_cast %113 : vector<1x128x128xbf16> to vector<128x128xbf16>
    %cst_58 = arith.constant dense<0.000000e+00> : vector<2x128xf32>
    %115 = tpu.matmul %112, %114, %cst_58 {dimension_numbers = #tpu.dot_dimension_numbers<[1], [0], [0], [1], [0, 0, 1, 1], [], []>} : vector<2x128xbf16>, vector<128x128xbf16>, vector<2x128xf32> -> vector<2x128xf32>
    %116 = arith.addf %110, %115 : vector<2x128xf32>
    %117 = vector.extract_strided_slice %34 {offsets = [26, 0], sizes = [2, 128], strides = [1, 1]} : vector<32x128xf32> to vector<2x128xf32>
    %118 = arith.truncf %117 : vector<2x128xf32> to vector<2x128xbf16>
    %c13 = arith.constant 13 : index
    %c0_59 = arith.constant 0 : index
    %c0_60 = arith.constant 0 : index
    %119 = vector.load %arg5[%c13, %c0_59, %c0_60] : memref<16x128x128xbf16, #tpu.memory_space<vmem>>, vector<1x128x128xbf16>
    %120 = vector.shape_cast %119 : vector<1x128x128xbf16> to vector<128x128xbf16>
    %cst_61 = arith.constant dense<0.000000e+00> : vector<2x128xf32>
    %121 = tpu.matmul %118, %120, %cst_61 {dimension_numbers = #tpu.dot_dimension_numbers<[1], [0], [0], [1], [0, 0, 1, 1], [], []>} : vector<2x128xbf16>, vector<128x128xbf16>, vector<2x128xf32> -> vector<2x128xf32>
    %122 = arith.addf %116, %121 : vector<2x128xf32>
    %123 = vector.extract_strided_slice %34 {offsets = [28, 0], sizes = [2, 128], strides = [1, 1]} : vector<32x128xf32> to vector<2x128xf32>
    %124 = arith.truncf %123 : vector<2x128xf32> to vector<2x128xbf16>
    %c14 = arith.constant 14 : index
    %c0_62 = arith.constant 0 : index
    %c0_63 = arith.constant 0 : index
    %125 = vector.load %arg5[%c14, %c0_62, %c0_63] : memref<16x128x128xbf16, #tpu.memory_space<vmem>>, vector<1x128x128xbf16>
    %126 = vector.shape_cast %125 : vector<1x128x128xbf16> to vector<128x128xbf16>
    %cst_64 = arith.constant dense<0.000000e+00> : vector<2x128xf32>
    %127 = tpu.matmul %124, %126, %cst_64 {dimension_numbers = #tpu.dot_dimension_numbers<[1], [0], [0], [1], [0, 0, 1, 1], [], []>} : vector<2x128xbf16>, vector<128x128xbf16>, vector<2x128xf32> -> vector<2x128xf32>
    %128 = arith.addf %122, %127 : vector<2x128xf32>
    %129 = vector.extract_strided_slice %34 {offsets = [30, 0], sizes = [2, 128], strides = [1, 1]} : vector<32x128xf32> to vector<2x128xf32>
    %130 = arith.truncf %129 : vector<2x128xf32> to vector<2x128xbf16>
    %c15 = arith.constant 15 : index
    %c0_65 = arith.constant 0 : index
    %c0_66 = arith.constant 0 : index
    %131 = vector.load %arg5[%c15, %c0_65, %c0_66] : memref<16x128x128xbf16, #tpu.memory_space<vmem>>, vector<1x128x128xbf16>
    %132 = vector.shape_cast %131 : vector<1x128x128xbf16> to vector<128x128xbf16>
    %cst_67 = arith.constant dense<0.000000e+00> : vector<2x128xf32>
    %133 = tpu.matmul %130, %132, %cst_67 {dimension_numbers = #tpu.dot_dimension_numbers<[1], [0], [0], [1], [0, 0, 1, 1], [], []>} : vector<2x128xbf16>, vector<128x128xbf16>, vector<2x128xf32> -> vector<2x128xf32>
    %134 = arith.addf %128, %133 : vector<2x128xf32>
    %cst_68 = arith.constant 0.000000e+00 : f32
    %135 = vector.broadcast %cst_68 : f32 to vector<2x128xf32>
    %136 = arith.cmpf ogt, %134, %135 : vector<2x128xf32>
    %cst_69 = arith.constant 2.000000e-01 : f32
    %137 = vector.broadcast %cst_69 : f32 to vector<2x128xf32>
    %138 = arith.mulf %137, %134 : vector<2x128xf32>
    %139 = arith.select %136, %134, %138 : vector<2x128xi1>, vector<2x128xf32>
    %c0_70 = arith.constant 0 : index
    %c0_71 = arith.constant 0 : index
    %140 = vector.load %arg7[%c0_70, %c0_71] : memref<2x128xf32, #tpu.memory_space<vmem>>, vector<2x128xf32>
    tpu.vector_store %arg7[%c0_70, %c0_71], %139 {strides = array<i32>} : memref<2x128xf32, #tpu.memory_space<vmem>>, vector<2x128xf32>,
    return
  }
}

</mosaic_0001>

<bundles_post_ra>
// kernel: forward.3
= control target key start
LH: loop header
LB: loop body
LE: loop exit
PB: predicated region body
PF: predicated region fallthrough
CT: control target
= control target key end

     0   :  { %s3268_s1 = inlined_call_operand.vmem [shape: bf16[128,128], index: 1, kind: input, shape index: {}]   ;;  %s3269_s0 = inlined_call_operand.vmem [shape: bf16[512,128], index: 0, kind: input, shape index: {}]   ;;  %s3270_s2 = inlined_call_operand.vmem [shape: f32[1,128], index: 2, kind: input, shape index: {}]   ;;  %s3271_s3 = inlined_call_operand.vmem [shape: f32[1,128], index: 3, kind: input, shape index: {}]   ;;  %s3272_s4 = inlined_call_operand.vmem [shape: f32[1,128], index: 4, kind: input, shape index: {}]   ;;  %s3273_s5 = inlined_call_operand.vmem [shape: f32[512,128], index: 5, kind: output, shape index: {}]  }
   0x1   :  { %v1553_v0 = vld [vmem:[%s3268_s1 + $0x38] sm:$0xff]   ;;  %v1554_v1 = vld [vmem:[%s3268_s1 + $0x30] sm:$0xff]   ;;  %v1555_v2 = vld [vmem:[%s3268_s1 + $0x28] sm:$0xff]  }
   0x2   :  { %1457 = vmatprep.subr.bf16.mxu0 %v1553_v0  ;;  %1537 = vmatprep.subr.bf16.mxu1 %v1553_v0  ;;  %v1556_v3 = vld [vmem:[%s3268_s1 + $0x20] sm:$0xff]   ;;  %v1557_v5 = vld [vmem:[%s3268_s1 + $0x18] sm:$0xff]   ;;  %v1558_v6 = vld [vmem:[%s3268_s1 + $0x10] sm:$0xff]  }
   0x3   :  { %1458 = vmatpush3.bf16.msra.mxu0 %v1553_v0  ;;  %1545 = vmatpush3.bf16.msra.mxu1 %v1553_v0  ;;  %v1561_v4 = vld [vmem:[%s3269_s0] sm:$0xff]   ;;  %v1559_v7 = vld [vmem:[%s3268_s1 + $0x8] sm:$0xff]   ;;  %v1563_v11 = vld [vmem:[%s3269_s0 + $0x10] sm:$0xff]  }
   0x4   :  { %1459 = vmatprep.subr.bf16.mxu0 %v1554_v1  ;;  %1538 = vmatprep.subr.bf16.mxu1 %v1554_v1  ;;  %v1576_v8 = vld [vmem:[%s3269_s0 + $0x80] sm:$0xff]   ;;  %v1562_v10 = vld [vmem:[%s3269_s0 + $0x8] sm:$0xff]   ;;  %v1579_v13 = vld [vmem:[%s3269_s0 + $0x90] sm:$0xff]  }
   0x5   :  { %1473 = vmatprep.mubr.bf16.mxu0 %v1561_v4  ;;  %v1560_v9 = vld [vmem:[%s3268_s1] sm:$0xff]   ;;  %1505 = vmatprep.mubr.bf16.mxu1 %v1576_v8  ;;  %v1578_v12 = vld [vmem:[%s3269_s0 + $0x88] sm:$0xff]   ;;  %v1564_v14 = vld [vmem:[%s3269_s0 + $0x18] sm:$0xff]  }
   0x6   :  { %v1565_v15 = vld [vmem:[%s3269_s0 + $0x20] sm:$0xff]   ;;  %v1580_v16 = vld [vmem:[%s3269_s0 + $0x98] sm:$0xff]   ;;  %v1566_v18 = vld [vmem:[%s3269_s0 + $0x28] sm:$0xff]  }
   0x7   :  { %1460 = vmatpush3.bf16.msra.mxu0 %v1554_v1  ;;  %1546 = vmatpush3.bf16.msra.mxu1 %v1554_v1  ;;  %v1581_v17 = vld [vmem:[%s3269_s0 + $0xa0] sm:$0xff]   ;;  %v1582_v19 = vld [vmem:[%s3269_s0 + $0xa8] sm:$0xff]   ;;  %v1567_v20 = vld [vmem:[%s3269_s0 + $0x30] sm:$0xff]  }
   0x8   :  { %1461 = vmatprep.subr.bf16.mxu0 %v1555_v2  ;;  %1539 = vmatprep.subr.bf16.mxu1 %v1555_v2  ;;  %v1583_v21 = vld [vmem:[%s3269_s0 + $0xb0] sm:$0xff]   ;;  %v1568_v22 = vld [vmem:[%s3269_s0 + $0x38] sm:$0xff]   ;;  %v1569_v24 = vld [vmem:[%s3269_s0 + $0x40] sm:$0xff]  }
   0x9   :  { %v1584_v23 = vld [vmem:[%s3269_s0 + $0xb8] sm:$0xff]   ;;  %v1585_v25 = vld [vmem:[%s3269_s0 + $0xc0] sm:$0xff]   ;;  %v1570_v26 = vld [vmem:[%s3269_s0 + $0x48] sm:$0xff]  }
   0xa   :  { %v1586_v27 = vld [vmem:[%s3269_s0 + $0xc8] sm:$0xff]   ;;  %v1571_v28 = vld [vmem:[%s3269_s0 + $0x50] sm:$0xff]   ;;  %v1572_v30 = vld [vmem:[%s3269_s0 + $0x58] sm:$0xff]  }
   0xb   :  { %1462 = vmatpush3.bf16.msra.mxu0 %v1555_v2  ;;  %1547 = vmatpush3.bf16.msra.mxu1 %v1555_v2  ;;  %v1587_v29 = vld [vmem:[%s3269_s0 + $0xd0] sm:$0xff]   ;;  %v1588_v31 = vld [vmem:[%s3269_s0 + $0xd8] sm:$0xff]   ;;  %v1573_v32 = vld [vmem:[%s3269_s0 + $0x60] sm:$0xff]  }
   0xc   :  { %1463 = vmatprep.subr.bf16.mxu0 %v1556_v3  ;;  %1540 = vmatprep.subr.bf16.mxu1 %v1556_v3  ;;  %v1589_v33 = vld [vmem:[%s3269_s0 + $0xe0] sm:$0xff]   ;;  %v1574_v34 = vld [vmem:[%s3269_s0 + $0x68] sm:$0xff]   ;;  %v1575_v36 = vld [vmem:[%s3269_s0 + $0x70] sm:$0xff]  }
   0xd   :  { %v1590_v35 = vld [vmem:[%s3269_s0 + $0xe8] sm:$0xff]   ;;  %v1591_v37 = vld [vmem:[%s3269_s0 + $0xf0] sm:$0xff]   ;;  %v1577_v38 = vld [vmem:[%s3269_s0 + $0x78] sm:$0xff]  }
   0xe   :  { %v1592_v39 = vld [vmem:[%s3269_s0 + $0xf8] sm:$0xff]   ;;  %v1750_v42 = vld [vmem:[%s3270_s2] ss:$0 sm:$0xff] }
   0xf   :  { %1464 = vmatpush3.bf16.msra.mxu0 %v1556_v3  ;;  %1548 = vmatpush3.bf16.msra.mxu1 %v1556_v3 }
  0x10   :  { %1465 = vmatprep.subr.bf16.mxu0 %v1557_v5  ;;  %1541 = vmatprep.subr.bf16.mxu1 %v1557_v5 }
  0x13   :  { %1466 = vmatpush3.bf16.msra.mxu0 %v1557_v5  ;;  %1549 = vmatpush3.bf16.msra.mxu1 %v1557_v5 }
  0x14   :  { %1467 = vmatprep.subr.bf16.mxu0 %v1558_v6  ;;  %1542 = vmatprep.subr.bf16.mxu1 %v1558_v6 }
  0x17   :  { %1468 = vmatpush3.bf16.msra.mxu0 %v1558_v6  ;;  %1550 = vmatpush3.bf16.msra.mxu1 %v1558_v6 }
  0x18   :  { %1469 = vmatprep.subr.bf16.mxu0 %v1559_v7  ;;  %1543 = vmatprep.subr.bf16.mxu1 %v1559_v7 }
  0x1b   :  { %1470 = vmatpush3.bf16.msra.mxu0 %v1559_v7  ;;  %1551 = vmatpush3.bf16.msra.mxu1 %v1559_v7 }
  0x1c   :  { %1471 = vmatprep.subr.bf16.mxu0 %v1560_v9  ;;  %1544 = vmatprep.subr.bf16.mxu1 %v1560_v9 }
  0x1f   :  { %1472 = vmatpush3.bf16.msra.mxu0 %v1560_v9  ;;  %1552 = vmatpush3.bf16.msra.mxu1 %v1560_v9 }
  0x22   :  { %1474 = vmatmul.mubr.bf16.vlgmr.msra.gmra.mxu0 %v1562_v10  ;;  %1506 = vmatmul.mubr.bf16.vlgmr.msra.gmra.mxu1 %v1578_v12 }
  0x23   :  { %1477 = vmatprep.mubr.bf16.mxu0 %v1563_v11  ;;  %1509 = vmatprep.mubr.bf16.mxu1 %v1579_v13 }
  0x2a   :  { %1478 = vmatmul.mubr.bf16.gmra.mxu0 %v1564_v14  ;;  %1510 = vmatmul.mubr.bf16.gmra.mxu1 %v1580_v16 }
  0x2b   :  { %1481 = vmatprep.mubr.bf16.mxu0 %v1565_v15  ;;  %1513 = vmatprep.mubr.bf16.mxu1 %v1581_v17 }
  0x32   :  { %1482 = vmatmul.mubr.bf16.gmra.mxu0 %v1566_v18  ;;  %1514 = vmatmul.mubr.bf16.gmra.mxu1 %v1582_v19 }
  0x33   :  { %1485 = vmatprep.mubr.bf16.mxu0 %v1567_v20  ;;  %1517 = vmatprep.mubr.bf16.mxu1 %v1583_v21 }
  0x3a   :  { %1486 = vmatmul.mubr.bf16.gmra.mxu0 %v1568_v22  ;;  %1518 = vmatmul.mubr.bf16.gmra.mxu1 %v1584_v23 }
  0x3b   :  { %1489 = vmatprep.mubr.bf16.mxu0 %v1569_v24  ;;  %1521 = vmatprep.mubr.bf16.mxu1 %v1585_v25 }
  0x42   :  { %1490 = vmatmul.mubr.bf16.gmra.mxu0 %v1570_v26  ;;  %1522 = vmatmul.mubr.bf16.gmra.mxu1 %v1586_v27 }
  0x43   :  { %1493 = vmatprep.mubr.bf16.mxu0 %v1571_v28  ;;  %1525 = vmatprep.mubr.bf16.mxu1 %v1587_v29 }
  0x4a   :  { %1494 = vmatmul.mubr.bf16.gmra.mxu0 %v1572_v30  ;;  %1526 = vmatmul.mubr.bf16.gmra.mxu1 %v1588_v31 }
  0x4b   :  { %1497 = vmatprep.mubr.bf16.mxu0 %v1573_v32  ;;  %1529 = vmatprep.mubr.bf16.mxu1 %v1589_v33 }
  0x52   :  { %1498 = vmatmul.mubr.bf16.gmra.mxu0 %v1574_v34  ;;  %1530 = vmatmul.mubr.bf16.gmra.mxu1 %v1590_v35 }
  0x53   :  { %1501 = vmatprep.mubr.bf16.mxu0 %v1575_v36  ;;  %1533 = vmatprep.mubr.bf16.mxu1 %v1591_v37 }
  0x5a   :  { %1502 = vmatmul.mubr.bf16.gmra.mxu0 %v1577_v38  ;;  %1534 = vmatmul.mubr.bf16.gmra.mxu1 %v1592_v39 }
  0xe2   :  { %v1475_v40 = vpop.f32.mrf.mxu0  ;;  %v1745_v41 = vpop.f32.mrf.mxu1 }
  0xe3   :  { %v391_v48 = vadd.f32 %v1475_v40, %v1750_v42 }
  0xe4   :  { %v382_v43 = vpop.f32.mrf.mxu0  ;;  %v1752_v44 = vpop.f32.mrf.mxu1 }
  0xe5   :  { %v383_v45 = vadd.f32 %v1750_v42, %v382_v43  ;;  %v703_v55 = vmul.f32 0.2, %v391_v48  ;;  %vm639_vm2 = vcmp.gt.f32.partialorder %v391_v48, 0.0 }
  0xe6   :  { %v1476_v46 = vpop.f32.mrf.mxu0  ;;  %v1755_v47 = vpop.f32.mrf.mxu1 }
  0xe7   :  { %v701_v50 = vmul.f32 0.2, %v383_v45  ;;  %v394_v51 = vadd.f32 %v1476_v46, %v1750_v42  ;;  %vm637_vm0 = vcmp.gt.f32.partialorder %v383_v45, 0.0  ;;  %v1771_v1 = vsel %vm639_vm2, %v391_v48, %v703_v55 }
  0xe8   :  { %v385_v49 = vpop.f32.mrf.mxu0  ;;  %v1760_v54 = vpop.f32.mrf.mxu1 }
  0xe9   :  { %v386_v52 = vadd.f32 %v1750_v42, %v385_v49  ;;  %v1762_v58 = vsel %vm637_vm0, %v383_v45, %v701_v50  ;;  %v704_v59 = vmul.f32 0.2, %v394_v51  ;;  %vm640_vm3 = vcmp.gt.f32.partialorder %v394_v51, 0.0 }
  0xea   :  { %v1479_v53 = vpop.f32.mrf.mxu0  ;;  %v1769_v0 = vpop.f32.mrf.mxu1 }
  0xeb   :  { %vm638_vm1 = vcmp.gt.f32.partialorder %v386_v52, 0.0  ;;  %v702_v56 = vmul.f32 0.2, %v386_v52  ;;  %v407_v2 = vadd.f32 %v1479_v53, %v1750_v42  ;;  %v1775_v6 = vsel %vm640_vm3, %v394_v51, %v704_v59 }
  0xec   :  { %v398_v57 = vpop.f32.mrf.mxu0  ;;  %v1780_v11 = vpop.f32.mrf.mxu1 }
  0xed   :  { %v1764_v60 = vsel %vm638_vm1, %v386_v52, %v702_v56  ;;  %v399_v61 = vadd.f32 %v1750_v42, %v398_v57  ;;  %v707_v12 = vmul.f32 0.2, %v407_v2  ;;  %vm643_vm6 = vcmp.gt.f32.partialorder %v407_v2, 0.0 }
  0xee   :  { %v829_v62 = vadd.f32 %v1764_v60, %v1762_v58  ;;  %v1480_v63 = vpop.f32.mrf.mxu0  ;;  %v1789_v22 = vpop.f32.mrf.mxu1 }
  0xef   :  { %v705_v3 = vmul.f32 0.2, %v399_v61  ;;  %vm641_vm4 = vcmp.gt.f32.partialorder %v399_v61, 0.0  ;;  %v410_v7 = vadd.f32 %v1480_v63, %v1750_v42  ;;  %v1791_v23 = vsel %vm643_vm6, %v407_v2, %v707_v12 }
  0xf0   :  { %v830_v4 = vadd.f32 %v829_v62, %v1771_v1  ;;  %v401_v5 = vpop.f32.mrf.mxu0  ;;  %v1800_v33 = vpop.f32.mrf.mxu1 }
  0xf1   :  { %v402_v8 = vadd.f32 %v1750_v42, %v401_v5  ;;  %v1782_v13 = vsel %vm641_vm4, %v399_v61, %v705_v3  ;;  %v708_v17 = vmul.f32 0.2, %v410_v7  ;;  %vm644_vm7 = vcmp.gt.f32.partialorder %v410_v7, 0.0 }
  0xf2   :  { %v831_v9 = vadd.f32 %v830_v4, %v1775_v6  ;;  %v1483_v10 = vpop.f32.mrf.mxu0  ;;  %v1809_v48 = vpop.f32.mrf.mxu1 }
  0xf3   :  { %vm642_vm5 = vcmp.gt.f32.partialorder %v402_v8, 0.0  ;;  %v706_v14 = vmul.f32 0.2, %v402_v8  ;;  %v423_v24 = vadd.f32 %v1483_v10, %v1750_v42  ;;  %v1795_v28 = vsel %vm644_vm7, %v410_v7, %v708_v17 }
  0xf4   :  { %v832_v15 = vadd.f32 %v831_v9, %v1782_v13  ;;  %v414_v16 = vpop.f32.mrf.mxu0  ;;  %v1820_v62 = vpop.f32.mrf.mxu1 }
  0xf5   :  { %v1785_v18 = vsel %vm642_vm5, %v402_v8, %v706_v14  ;;  %v415_v19 = vadd.f32 %v1750_v42, %v414_v16  ;;  %v711_v34 = vmul.f32 0.2, %v423_v24  ;;  %vm647_vm10 = vcmp.gt.f32.partialorder %v423_v24, 0.0 }
  0xf6   :  { %v833_v20 = vadd.f32 %v832_v15, %v1785_v18  ;;  %v1484_v21 = vpop.f32.mrf.mxu0  ;;  %v1829_v14 = vpop.f32.mrf.mxu1 }
  0xf7   :  { %v709_v25 = vmul.f32 0.2, %v415_v19  ;;  %vm645_vm8 = vcmp.gt.f32.partialorder %v415_v19, 0.0  ;;  %v426_v29 = vadd.f32 %v1484_v21, %v1750_v42  ;;  %v1811_v49 = vsel %vm647_vm10, %v423_v24, %v711_v34 }
  0xf8   :  { %v834_v26 = vadd.f32 %v833_v20, %v1791_v23  ;;  %v417_v27 = vpop.f32.mrf.mxu0 }
  0xf9   :  { %v418_v30 = vadd.f32 %v1750_v42, %v417_v27  ;;  %v1802_v35 = vsel %vm645_vm8, %v415_v19, %v709_v25  ;;  %v712_v39 = vmul.f32 0.2, %v426_v29  ;;  %vm648_vm11 = vcmp.gt.f32.partialorder %v426_v29, 0.0 }
  0xfa   :  { %v835_v31 = vadd.f32 %v834_v26, %v1795_v28  ;;  %v1487_v32 = vpop.f32.mrf.mxu0 }
  0xfb   :  { %vm646_vm9 = vcmp.gt.f32.partialorder %v418_v30, 0.0  ;;  %v710_v36 = vmul.f32 0.2, %v418_v30  ;;  %v439_v50 = vadd.f32 %v1487_v32, %v1750_v42  ;;  %v1815_v55 = vsel %vm648_vm11, %v426_v29, %v712_v39  ;;  %v1840_v29 = vpop.f32.mrf.mxu1 }
  0xfc   :  { %v836_v37 = vadd.f32 %v835_v31, %v1802_v35  ;;  %v430_v38 = vpop.f32.mrf.mxu0 }
  0xfd   :  { %v1805_v40 = vsel %vm646_vm9, %v418_v30, %v710_v36  ;;  %v431_v43 = vadd.f32 %v1750_v42, %v430_v38  ;;  %v715_v63 = vmul.f32 0.2, %v439_v50  ;;  %vm651_vm14 = vcmp.gt.f32.partialorder %v439_v50, 0.0 }
  0xfe   :  { %v837_v45 = vadd.f32 %v836_v37, %v1805_v40  ;;  %v1488_v46 = vpop.f32.mrf.mxu0 }
  0xff   :  { %v713_v51 = vmul.f32 0.2, %v431_v43  ;;  %vm649_vm12 = vcmp.gt.f32.partialorder %v431_v43, 0.0  ;;  %v442_v56 = vadd.f32 %v1488_v46, %v1750_v42  ;;  %v1831_v15 = vsel %vm651_vm14, %v439_v50, %v715_v63  ;;  %v1849_v46 = vpop.f32.mrf.mxu1 }
 0x100   :  { %v838_v52 = vadd.f32 %v837_v45, %v1811_v49  ;;  %v433_v53 = vpop.f32.mrf.mxu0 }
 0x101   :  { %v434_v57 = vadd.f32 %v1750_v42, %v433_v53  ;;  %v1822_v2 = vsel %vm649_vm12, %v431_v43, %v713_v51  ;;  %v716_v7 = vmul.f32 0.2, %v442_v56  ;;  %vm652_vm15 = vcmp.gt.f32.partialorder %v442_v56, 0.0 }
 0x102   :  { %v839_v59 = vadd.f32 %v838_v52, %v1815_v55  ;;  %v1491_v61 = vpop.f32.mrf.mxu0 }
 0x103   :  { %vm650_vm13 = vcmp.gt.f32.partialorder %v434_v57, 0.0  ;;  %v714_v3 = vmul.f32 0.2, %v434_v57  ;;  %v455_v16 = vadd.f32 %v1491_v61, %v1750_v42  ;;  %v1835_v21 = vsel %vm652_vm15, %v442_v56, %v716_v7 }
 0x104   :  { %v840_v4 = vadd.f32 %v839_v59, %v1822_v2  ;;  %v446_v5 = vpop.f32.mrf.mxu0 }
 0x105   :  { %v1825_v8 = vsel %vm650_vm13, %v434_v57, %v714_v3  ;;  %v447_v9 = vadd.f32 %v1750_v42, %v446_v5  ;;  %v719_v30 = vmul.f32 0.2, %v455_v16  ;;  %vm655_vm2 = vcmp.gt.f32.partialorder %v455_v16, 0.0 }
 0x106   :  { %v841_v10 = vadd.f32 %v840_v4, %v1825_v8  ;;  %v1492_v12 = vpop.f32.mrf.mxu0  ;;  %v1860_v4 = vpop.f32.mrf.mxu1 }
 0x107   :  { %v717_v17 = vmul.f32 0.2, %v447_v9  ;;  %vm653_vm0 = vcmp.gt.f32.partialorder %v447_v9, 0.0  ;;  %v458_v24 = vadd.f32 %v1492_v12, %v1750_v42  ;;  %v1851_v50 = vsel %vm655_vm2, %v455_v16, %v719_v30 }
 0x108   :  { %v842_v19 = vadd.f32 %v841_v10, %v1831_v15  ;;  %v449_v20 = vpop.f32.mrf.mxu0 }
 0x109   :  { %v450_v25 = vadd.f32 %v1750_v42, %v449_v20  ;;  %v1842_v31 = vsel %vm653_vm0, %v447_v9, %v717_v17  ;;  %v720_v37 = vmul.f32 0.2, %v458_v24  ;;  %vm656_vm3 = vcmp.gt.f32.partialorder %v458_v24, 0.0 }
 0x10a   :  { %v843_v26 = vadd.f32 %v842_v19, %v1835_v21  ;;  %v1495_v27 = vpop.f32.mrf.mxu0 }
 0x10b   :  { %vm654_vm1 = vcmp.gt.f32.partialorder %v450_v25, 0.0  ;;  %v718_v32 = vmul.f32 0.2, %v450_v25  ;;  %v471_v51 = vadd.f32 %v1495_v27, %v1750_v42  ;;  %v1855_v57 = vsel %vm656_vm3, %v458_v24, %v720_v37 }
 0x10c   :  { %v844_v34 = vadd.f32 %v843_v26, %v1842_v31  ;;  %v462_v36 = vpop.f32.mrf.mxu0 }
 0x10d   :  { %v1845_v38 = vsel %vm654_vm1, %v450_v25, %v718_v32  ;;  %v463_v39 = vadd.f32 %v1750_v42, %v462_v36  ;;  %v723_v5 = vmul.f32 0.2, %v471_v51  ;;  %vm659_vm6 = vcmp.gt.f32.partialorder %v471_v51, 0.0  ;;  %v1869_v25 = vpop.f32.mrf.mxu1 }
 0x10e   :  { %v845_v43 = vadd.f32 %v844_v34, %v1845_v38  ;;  %v1496_v45 = vpop.f32.mrf.mxu0 }
 0x10f   :  { %v721_v52 = vmul.f32 0.2, %v463_v39  ;;  %vm657_vm4 = vcmp.gt.f32.partialorder %v463_v39, 0.0  ;;  %v474_v59 = vadd.f32 %v1496_v45, %v1750_v42  ;;  %v1871_v26 = vsel %vm659_vm6, %v471_v51, %v723_v5 }
 0x110   :  { %v846_v53 = vadd.f32 %v845_v43, %v1851_v50  ;;  %v465_v56 = vpop.f32.mrf.mxu0 }
 0x111   :  { %v466_v61 = vadd.f32 %v1750_v42, %v465_v56  ;;  %v1862_v7 = vsel %vm657_vm4, %v463_v39, %v721_v52  ;;  %v724_v16 = vmul.f32 0.2, %v474_v59  ;;  %vm660_vm7 = vcmp.gt.f32.partialorder %v474_v59, 0.0  ;;  %v1880_v52 = vpop.f32.mrf.mxu1 }
 0x112   :  { %v847_v63 = vadd.f32 %v846_v53, %v1855_v57  ;;  %v1499_v3 = vpop.f32.mrf.mxu0 }
 0x113   :  { %vm658_vm5 = vcmp.gt.f32.partialorder %v466_v61, 0.0  ;;  %v722_v9 = vmul.f32 0.2, %v466_v61  ;;  %v487_v27 = vadd.f32 %v1499_v3, %v1750_v42  ;;  %v1875_v36 = vsel %vm660_vm7, %v474_v59, %v724_v16 }
 0x114   :  { %v848_v10 = vadd.f32 %v847_v63, %v1862_v7  ;;  %v478_v12 = vpop.f32.mrf.mxu0 }
 0x115   :  { %v1865_v17 = vsel %vm658_vm5, %v466_v61, %v722_v9  ;;  %v479_v19 = vadd.f32 %v1750_v42, %v478_v12  ;;  %v727_v51 = vmul.f32 0.2, %v487_v27  ;;  %vm663_vm10 = vcmp.gt.f32.partialorder %v487_v27, 0.0  ;;  %v1889_v12 = vpop.f32.mrf.mxu1 }
 0x116   :  { %v849_v20 = vadd.f32 %v848_v10, %v1865_v17  ;;  %v1500_v24 = vpop.f32.mrf.mxu0 }
 0x117   :  { %v725_v30 = vmul.f32 0.2, %v479_v19  ;;  %vm661_vm8 = vcmp.gt.f32.partialorder %v479_v19, 0.0  ;;  %v490_v37 = vadd.f32 %v1500_v24, %v1750_v42  ;;  %v1891_v16 = vsel %vm663_vm10, %v487_v27, %v727_v51  ;;  %v1902_v27 = vpop.f32.mrf.mxu1 }
 0x118   :  { %v850_v32 = vadd.f32 %v849_v20, %v1871_v26  ;;  %v481_v34 = vpop.f32.mrf.mxu0  ;;  %3313 = vst [vmem:[#allocation3_spill] sm:$0xff] %v1891_v16 }
 0x119   :  { %v482_v39 = vadd.f32 %v1750_v42, %v481_v34  ;;  %v1882_v53 = vsel %vm661_vm8, %v479_v19, %v725_v30  ;;  %v728_v59 = vmul.f32 0.2, %v490_v37  ;;  %vm664_vm11 = vcmp.gt.f32.partialorder %v490_v37, 0.0 }
 0x11a   :  { %v851_v43 = vadd.f32 %v850_v32, %v1875_v36  ;;  %v1503_v45 = vpop.f32.mrf.mxu0 }
 0x11b   :  { %vm662_vm9 = vcmp.gt.f32.partialorder %v482_v39, 0.0  ;;  %v726_v56 = vmul.f32 0.2, %v482_v39  ;;  %v503_v19 = vadd.f32 %v1503_v45, %v1750_v42  ;;  %v1895_v32 = vsel %vm664_vm11, %v490_v37, %v728_v59 }
 0x11c   :  { %v852_v61 = vadd.f32 %v851_v43, %v1882_v53  ;;  %v494_v63 = vpop.f32.mrf.mxu0  ;;  %3314 = vst [vmem:[#allocation4_spill] sm:$0xff] %v1895_v32 }
 0x11d   :  { %v1885_v3 = vsel %vm662_vm9, %v482_v39, %v726_v56  ;;  %v495_v5 = vadd.f32 %v1750_v42, %v494_v63  ;;  %v511_v56 = vadd.f32 %v1750_v42, %v1752_v44  ;;  %v731_v51 = vmul.f32 0.2, %v503_v19  ;;  %v1912_v44 = vpop.f32.mrf.mxu1 }
 0x11e   :  { %3312 = vst [vmem:[#allocation2_spill] sm:$0xff] %v1885_v3  ;;  %v853_v9 = vadd.f32 %v852_v61, %v1885_v3  ;;  %v1504_v10 = vpop.f32.mrf.mxu0  ;;  %vm667_vm14 = vcmp.gt.f32.partialorder %v503_v19, 0.0 }
 0x11f   :  { %v729_v20 = vmul.f32 0.2, %v495_v5  ;;  %vm665_vm12 = vcmp.gt.f32.partialorder %v495_v5, 0.0  ;;  %v506_v34 = vadd.f32 %v1504_v10, %v1750_v42  ;;  %vm669_vm0 = vcmp.gt.f32.partialorder %v511_v56, 0.0 }
 0x120   :  { %v854_v24 = vadd.f32 %v853_v9, %v1891_v16  ;;  %v497_v30 = vpop.f32.mrf.mxu0  ;;  %v514_v9 = vadd.f32 %v1750_v42, %v1760_v54 }
 0x121   :  { %v498_v39 = vadd.f32 %v1750_v42, %v497_v30  ;;  %v1904_v45 = vsel %vm665_vm12, %v495_v5, %v729_v20  ;;  %v732_v63 = vmul.f32 0.2, %v506_v34  ;;  %vm668_vm15 = vcmp.gt.f32.partialorder %v506_v34, 0.0 }
 0x122   :  { %v855_v43 = vadd.f32 %v854_v24, %v1895_v32  ;;  %3315 = vst [vmem:[#allocation5_spill] sm:$0xff] %v1904_v45  ;;  %v1914_v24 = vsel %vm667_vm14, %v503_v19, %v731_v51  ;;  %v519_v5 = vadd.f32 %v1745_v41, %v1750_v42  ;;  %v733_v20 = vmul.f32 0.2, %v511_v56 }
 0x123   :  { %vm666_vm13 = vcmp.gt.f32.partialorder %v498_v39, 0.0  ;;  %v730_v61 = vmul.f32 0.2, %v498_v39  ;;  %3317 = vst [vmem:[#allocation7_spill] sm:$0xff] %v1914_v24  ;;  %v734_v54 = vmul.f32 0.2, %v514_v9  ;;  %v527_v41 = vadd.f32 %v1750_v42, %v1780_v11 }
 0x124   :  { %v856_v37 = vadd.f32 %v855_v43, %v1904_v45  ;;  %v1919_v43 = vsel %vm668_vm15, %v506_v34, %v732_v63  ;;  %vm670_vm1 = vcmp.gt.f32.partialorder %v514_v9, 0.0  ;;  %v735_v19 = vmul.f32 0.2, %v519_v5 }
 0x125   :  { %v1907_v59 = vsel %vm666_vm13, %v498_v39, %v730_v61  ;;  %3318 = vst [vmem:[#allocation8_spill] sm:$0xff] %v1919_v43  ;;  %v522_v39 = vadd.f32 %v1755_v47, %v1750_v42  ;;  %v1926_v51 = vsel %vm669_vm0, %v511_v56, %v733_v20  ;;  %vm671_vm2 = vcmp.gt.f32.partialorder %v519_v5, 0.0 }
 0x126   :  { %3316 = vst [vmem:[#allocation6_spill] sm:$0xff] %v1907_v59  ;;  %v857_v10 = vadd.f32 %v856_v37, %v1907_v59  ;;  %v1924_v37 = vpop.f32.mrf.mxu1  ;;  %3319 = vst [vmem:[#allocation9_spill] sm:$0xff] %v1926_v51  ;;  %v1931_v63 = vsel %vm670_vm1, %v514_v9, %v734_v54  ;;  %v530_v47 = vadd.f32 %v1750_v42, %v1800_v33  ;;  %v737_v11 = vmul.f32 0.2, %v527_v41 }
 0x127   :  { %v736_v34 = vmul.f32 0.2, %v522_v39  ;;  %3320 = vst [vmem:[#allocation10_spill] sm:$0xff] %v1931_v63  ;;  %vm672_vm3 = vcmp.gt.f32.partialorder %v522_v39, 0.0  ;;  %v535_v56 = vadd.f32 %v1769_v0, %v1750_v42  ;;  %vm673_vm4 = vcmp.gt.f32.partialorder %v527_v41, 0.0 }
 0x128   :  { %v858_v30 = vadd.f32 %v857_v10, %v1914_v24  ;;  %v1938_v24 = vsel %vm671_vm2, %v519_v5, %v735_v19  ;;  %v538_v9 = vadd.f32 %v1789_v22, %v1750_v42  ;;  %v738_v33 = vmul.f32 0.2, %v530_v47 }
 0x129   :  { %3321 = vst [vmem:[#allocation11_spill] sm:$0xff] %v1938_v24  ;;  %vm674_vm5 = vcmp.gt.f32.partialorder %v530_v47, 0.0  ;;  %v739_v5 = vmul.f32 0.2, %v535_v56  ;;  %v1950_v19 = vsel %vm673_vm4, %v527_v41, %v737_v11  ;;  %v543_v0 = vadd.f32 %v1750_v42, %v1820_v62 }
 0x12a   :  { %v859_v61 = vadd.f32 %v858_v30, %v1919_v43  ;;  %v1936_v43 = vpop.f32.mrf.mxu1  ;;  %3323 = vst [vmem:[#allocation13_spill] sm:$0xff] %v1950_v19  ;;  %vm675_vm6 = vcmp.gt.f32.partialorder %v535_v56, 0.0  ;;  %v546_v22 = vadd.f32 %v1750_v42, %v1840_v29  ;;  %vm676_vm7 = vcmp.gt.f32.partialorder %v538_v9, 0.0 }
 0x12b   :  { %v551_v41 = vadd.f32 %v1809_v48, %v1750_v42  ;;  %v741_v62 = vmul.f32 0.2, %v543_v0  ;;  %vm677_vm8 = vcmp.gt.f32.partialorder %v543_v0, 0.0  ;;  %v559_v48 = vadd.f32 %v1750_v42, %v1860_v4 }
 0x12c   :  { %v860_v10 = vadd.f32 %v859_v61, %v1926_v51  ;;  %v1943_v61 = vsel %vm672_vm3, %v522_v39, %v736_v34  ;;  %v740_v39 = vmul.f32 0.2, %v538_v9  ;;  %v1955_v34 = vsel %vm674_vm5, %v530_v47, %v738_v33 }
 0x12d   :  { %3322 = vst [vmem:[#allocation12_spill] sm:$0xff] %v1943_v61  ;;  %3324 = vst [vmem:[#allocation14_spill] sm:$0xff] %v1955_v34  ;;  %v554_v47 = vadd.f32 %v1829_v14, %v1750_v42  ;;  %v742_v29 = vmul.f32 0.2, %v546_v22  ;;  %vm678_vm9 = vcmp.gt.f32.partialorder %v546_v22, 0.0  ;;  %vm679_vm10 = vcmp.gt.f32.partialorder %v551_v41, 0.0 }
 0x12e   :  { %v861_v30 = vadd.f32 %v860_v10, %v1931_v63  ;;  %v1948_v10 = vpop.f32.mrf.mxu1  ;;  %v562_v14 = vadd.f32 %v1750_v42, %v1880_v52  ;;  %v745_v4 = vmul.f32 0.2, %v559_v48  ;;  %vm681_vm12 = vcmp.gt.f32.partialorder %v559_v48, 0.0 }
 0x12f   :  { %vm680_vm11 = vcmp.gt.f32.partialorder %v554_v47, 0.0 }
 0x130   :  { %v862_v20 = vadd.f32 %v861_v30, %v1938_v24  ;;  %v1962_v24 = vsel %vm675_vm6, %v535_v56, %v739_v5  ;;  %v1972_v56 = vsel %vm677_vm8, %v543_v0, %v741_v62  ;;  %v567_v0 = vadd.f32 %v1849_v46, %v1750_v42 }
 0x131   :  { %3325 = vst [vmem:[#allocation15_spill] sm:$0xff] %v1962_v24  ;;  %3327 = vst [vmem:[#allocation17_spill] sm:$0xff] %v1972_v56  ;;  %v746_v52 = vmul.f32 0.2, %v562_v14  ;;  %vm682_vm13 = vcmp.gt.f32.partialorder %v562_v14, 0.0  ;;  %v575_v46 = vadd.f32 %v1750_v42, %v1902_v27 }
 0x132   :  { %v863_v54 = vadd.f32 %v862_v20, %v1943_v61  ;;  %v1960_v61 = vpop.f32.mrf.mxu1  ;;  %vm683_vm14 = vcmp.gt.f32.partialorder %v567_v0, 0.0 }
 0x133   :  { %vm685_vm0 = vcmp.gt.f32.partialorder %v575_v46, 0.0 }
 0x134   :  { %v864_v30 = vadd.f32 %v863_v54, %v1950_v19  ;;  %v1967_v54 = vsel %vm676_vm7, %v538_v9, %v740_v39  ;;  %v1977_v9 = vsel %vm678_vm9, %v546_v22, %v742_v29  ;;  %v570_v22 = vadd.f32 %v1869_v25, %v1750_v42 }
 0x135   :  { %3326 = vst [vmem:[#allocation16_spill] sm:$0xff] %v1967_v54  ;;  %3328 = vst [vmem:[#allocation18_spill] sm:$0xff] %v1977_v9  ;;  %v578_v25 = vadd.f32 %v1750_v42, %v1924_v37 }
 0x136   :  { %v865_v20 = vadd.f32 %v864_v30, %v1955_v34  ;;  %v593_v30 = vpop.f32.mrf.mxu1  ;;  %v743_v34 = vmul.f32 0.2, %v551_v41  ;;  %vm684_vm15 = vcmp.gt.f32.partialorder %v570_v22, 0.0 }
 0x137   :  { %vm686_vm1 = vcmp.gt.f32.partialorder %v578_v25, 0.0 }
 0x138   :  { %v866_v11 = vadd.f32 %v865_v20, %v1962_v24  ;;  %v744_v20 = vmul.f32 0.2, %v554_v47 }
 0x13a   :  { %v867_v33 = vadd.f32 %v866_v11, %v1967_v54  ;;  %v1982_v11 = vpop.f32.mrf.mxu1  ;;  %v1984_v54 = vsel %vm679_vm10, %v551_v41, %v743_v34  ;;  %v1994_v34 = vsel %vm681_vm12, %v559_v48, %v745_v4  ;;  %v583_v48 = vadd.f32 %v1889_v12, %v1750_v42 }
 0x13b   :  { %3329 = vst [vmem:[#allocation19_spill] sm:$0xff] %v1984_v54  ;;  %3331 = vst [vmem:[#allocation21_spill] sm:$0xff] %v1994_v34  ;;  %v749_v4 = vmul.f32 0.2, %v575_v46  ;;  %v591_v12 = vadd.f32 %v1750_v42, %v1948_v10  ;;  %v615_v19 = vadd.f32 %v1982_v11, %v1750_v42 }
 0x13c   :  { %v868_v5 = vadd.f32 %v867_v33, %v1972_v56  ;;  %v1989_v33 = vsel %vm680_vm11, %v554_v47, %v744_v20  ;;  %v1999_v47 = vsel %vm682_vm13, %v562_v14, %v746_v52  ;;  %v586_v14 = vadd.f32 %v1912_v44, %v1750_v42 }
 0x13d   :  { %3330 = vst [vmem:[#allocation20_spill] sm:$0xff] %v1989_v33  ;;  %v750_v52 = vmul.f32 0.2, %v578_v25  ;;  %vm687_vm2 = vcmp.gt.f32.partialorder %v583_v48, 0.0  ;;  %vm689_vm4 = vcmp.gt.f32.partialorder %v591_v12, 0.0  ;;  %vm695_vm10 = vcmp.gt.f32.partialorder %v615_v19, 0.0 }
 0x13e   :  { %v869_v39 = vadd.f32 %v868_v5, %v1977_v9  ;;  %v606_v5 = vpop.f32.mrf.mxu1  ;;  %v747_v9 = vmul.f32 0.2, %v567_v0  ;;  %vm688_vm3 = vcmp.gt.f32.partialorder %v586_v14, 0.0 }
 0x140   :  { %v870_v62 = vadd.f32 %v869_v39, %v1984_v54  ;;  %v748_v39 = vmul.f32 0.2, %v570_v22 }
 0x142   :  { %v871_v29 = vadd.f32 %v870_v62, %v1989_v33  ;;  %v1532_v62 = vpop.f32.mrf.mxu1  ;;  %v2004_v33 = vsel %vm683_vm14, %v567_v0, %v747_v9  ;;  %v2014_v9 = vsel %vm685_vm0, %v575_v46, %v749_v4  ;;  %v599_v46 = vadd.f32 %v1936_v43, %v1750_v42 }
 0x143   :  { %v753_v4 = vmul.f32 0.2, %v591_v12  ;;  %v618_v63 = vadd.f32 %v1532_v62, %v1750_v42 }
 0x144   :  { %v872_v41 = vadd.f32 %v871_v29, %v1994_v34  ;;  %v2009_v29 = vsel %vm684_vm15, %v570_v22, %v748_v39  ;;  %v751_v34 = vmul.f32 0.2, %v583_v48  ;;  %v2019_v22 = vsel %vm686_vm1, %v578_v25, %v750_v52 }
 0x145   :  { %v594_v39 = vadd.f32 %v1750_v42, %v593_v30  ;;  %v602_v25 = vadd.f32 %v1960_v61, %v1750_v42  ;;  %vm691_vm6 = vcmp.gt.f32.partialorder %v599_v46, 0.0  ;;  %vm696_vm11 = vcmp.gt.f32.partialorder %v618_v63, 0.0 }
 0x146   :  { %v873_v20 = vadd.f32 %v872_v41, %v1999_v47  ;;  %v609_v41 = vpop.f32.mrf.mxu1  ;;  %v2023_v54 = vsel %vm687_vm2, %v583_v48, %v751_v34  ;;  %v2033_v34 = vsel %vm689_vm4, %v591_v12, %v753_v4  ;;  %v607_v48 = vadd.f32 %v1750_v42, %v606_v5 }
 0x147   :  { %v754_v52 = vmul.f32 0.2, %v594_v39  ;;  %vm690_vm5 = vcmp.gt.f32.partialorder %v594_v39, 0.0  ;;  %vm692_vm7 = vcmp.gt.f32.partialorder %v602_v25, 0.0 }
 0x148   :  { %v874_v27 = vadd.f32 %v873_v20, %v2004_v33  ;;  %v752_v20 = vmul.f32 0.2, %v586_v14  ;;  %v757_v12 = vmul.f32 0.2, %v607_v48  ;;  %vm693_vm8 = vcmp.gt.f32.partialorder %v607_v48, 0.0 }
 0x149   :  { %v2037_v24 = vsel %vm690_vm5, %v594_v39, %v754_v52  ;;  %v759_v52 = vmul.f32 0.2, %v615_v19 }
 0x14a   :  { %v875_v37 = vadd.f32 %v874_v27, %v2009_v29  ;;  %v1535_v27 = vpop.f32.mrf.mxu1  ;;  %v2028_v56 = vsel %vm688_vm3, %v586_v14, %v752_v20  ;;  %v610_v14 = vadd.f32 %v1750_v42, %v609_v41  ;;  %v821_v41 = vsel %vm693_vm8, %v607_v48, %v757_v12 }
 0x14b   :  { %v823_v45 = vsel %vm695_vm10, %v615_v19, %v759_v52 }
 0x14c   :  { %v876_v0 = vadd.f32 %v875_v37, %v2014_v9  ;;  %v622_v37 = vpop.f32.mrf.mxu1  ;;  %vm694_vm9 = vcmp.gt.f32.partialorder %v610_v14, 0.0 }
 0x14d   :  { %v623_v59 = vadd.f32 %v1750_v42, %v622_v37 }
 0x14e   :  { %v877_v44 = vadd.f32 %v876_v0, %v2019_v22  ;;  %v755_v0 = vmul.f32 0.2, %v599_v46  ;;  %v1536_v20 = vpop.f32.mrf.mxu1 }
 0x14f   :  { %v761_v62 = vmul.f32 0.2, %v623_v59  ;;  %vm697_vm12 = vcmp.gt.f32.partialorder %v623_v59, 0.0  ;;  %v634_v32 = vadd.f32 %v1536_v20, %v1750_v42 }
 0x150   :  { %v878_v10 = vadd.f32 %v877_v44, %v2023_v54  ;;  %v756_v44 = vmul.f32 0.2, %v602_v25  ;;  %v625_v39 = vpop.f32.mrf.mxu1 }
 0x151   :  { %v626_v11 = vadd.f32 %v1750_v42, %v625_v39  ;;  %vm700_vm15 = vcmp.gt.f32.partialorder %v634_v32, 0.0 }
 0x152   :  { %v879_v30 = vadd.f32 %v878_v10, %v2028_v56  ;;  %v819_v10 = vsel %vm691_vm6, %v599_v46, %v755_v0  ;;  %v820_v5 = vsel %vm692_vm7, %v602_v25, %v756_v44  ;;  %v760_v46 = vmul.f32 0.2, %v618_v63 }
 0x153   :  { %v631_v25 = vadd.f32 %v1535_v27, %v1750_v42  ;;  %v762_v48 = vmul.f32 0.2, %v626_v11  ;;  %vm698_vm13 = vcmp.gt.f32.partialorder %v626_v11, 0.0 }
 0x154   :  { %v880_v43 = vadd.f32 %v879_v30, %v2033_v34  ;;  %v758_v30 = vmul.f32 0.2, %v610_v14 }
 0x155   :  { %v763_v37 = vmul.f32 0.2, %v631_v25  ;;  %vm699_vm14 = vcmp.gt.f32.partialorder %v631_v25, 0.0  ;;  %v826_v39 = vsel %vm698_vm13, %v626_v11, %v762_v48 }
 0x156   :  { %v881_v61 = vadd.f32 %v880_v43, %v2037_v24  ;;  %v822_v0 = vsel %vm694_vm9, %v610_v14, %v758_v30  ;;  %v764_v30 = vmul.f32 0.2, %v634_v32 }
 0x157   :  { %v827_v19 = vsel %vm699_vm14, %v631_v25, %v763_v37 }
 0x158   :  { %v882_v4 = vadd.f32 %v881_v61, %v819_v10  ;;  %v828_v27 = vsel %vm700_vm15, %v634_v32, %v764_v30 }
 0x15a   :  { %v883_v51 = vadd.f32 %v882_v4, %v820_v5  ;;  %v824_v4 = vsel %vm696_vm11, %v618_v63, %v760_v46 }
 0x15c   :  { %v884_v43 = vadd.f32 %v883_v51, %v821_v41  ;;  %v825_v51 = vsel %vm697_vm12, %v623_v59, %v761_v62 }
 0x15e   :  { %v885_v61 = vadd.f32 %v884_v43, %v822_v0 }
 0x160   :  { %v886_v44 = vadd.f32 %v885_v61, %v823_v45 }
 0x162   :  { %v887_v12 = vadd.f32 %v886_v44, %v824_v4 }
 0x164   :  { %v888_v14 = vadd.f32 %v887_v12, %v825_v51 }
 0x166   :  { %v889_v43 = vadd.f32 %v888_v14, %v826_v39 }
 0x168   :  { %v890_v52 = vadd.f32 %v889_v43, %v827_v19 }
 0x16a   :  { %v891_v16 = vadd.f32 %v890_v52, %v828_v27 }
 0x16c   :  { %v892_v61 = vrot.slane %v891_v16, 4 }
 0x16e   :  { %v893_v3 = vadd.f32 %v892_v61, %v891_v16 }
 0x170   :  { %v894_v63 = vrot.slane %v893_v3, 2 }
 0x172   :  { %v895_v46 = vadd.f32 %v894_v63, %v893_v3 }
 0x174   :  { %v896_v42 = vrot.slane %v895_v46, 1 }
 0x176   :  { %v897_v20 = vadd.f32 %v896_v42, %v895_v46 }
 0x178   :  { %v2048_v44 = vmul.f32 0.001953125, %v897_v20 }
 0x17a   :  { %v2052_v59 = vsub.f32 %v1999_v47, %v2048_v44  ;;  %v2056_v11 = vsub.f32 %v2004_v33, %v2048_v44  ;;  %v2060_v32 = vsub.f32 %v2009_v29, %v2048_v44  ;;  %v2064_v16 = vsub.f32 %v2014_v9, %v2048_v44 }
 0x17b   :  { %v2068_v3 = vsub.f32 %v2019_v22, %v2048_v44  ;;  %v2072_v47 = vsub.f32 %v2023_v54, %v2048_v44  ;;  %v2076_v33 = vsub.f32 %v2028_v56, %v2048_v44  ;;  %v2080_v29 = vsub.f32 %v2033_v34, %v2048_v44 }
 0x17c   :  { %v2084_v9 = vsub.f32 %v2037_v24, %v2048_v44  ;;  %v2087_v25 = vsub.f32 %v819_v10, %v2048_v44  ;;  %v2090_v22 = vsub.f32 %v820_v5, %v2048_v44  ;;  %v2093_v54 = vsub.f32 %v821_v41, %v2048_v44 }
 0x17d   :  { %v2096_v56 = vsub.f32 %v822_v0, %v2048_v44  ;;  %v2099_v62 = vsub.f32 %v823_v45, %v2048_v44  ;;  %v2102_v34 = vsub.f32 %v824_v4, %v2048_v44  ;;  %v2105_v24 = vsub.f32 %v825_v51, %v2048_v44 }
 0x17e   :  { %v2108_v10 = vsub.f32 %v826_v39, %v2048_v44  ;;  %v2111_v5 = vsub.f32 %v827_v19, %v2048_v44  ;;  %v2114_v41 = vsub.f32 %v828_v27, %v2048_v44  ;;  %v2118_v0 = vsub.f32 %v1762_v58, %v2048_v44 }
 0x17f   :  { %3332 = vst [vmem:[#allocation22_spill] sm:$0xff] %v2096_v56  ;;  %3333 = vst [vmem:[#allocation23_spill] sm:$0xff] %v2099_v62  ;;  %v2122_v45 = vsub.f32 %v1764_v60, %v2048_v44  ;;  %v2126_v4 = vsub.f32 %v1771_v1, %v2048_v44  ;;  %v2134_v37 = vsub.f32 %v1775_v6, %v2048_v44 }
 0x180   :  { %3334 = vst [vmem:[#allocation24_spill] sm:$0xff] %v2102_v34  ;;  %3335 = vst [vmem:[#allocation25_spill] sm:$0xff] %v2105_v24  ;;  %v964_v48 = vmul.f32 %v2118_v0, %v2118_v0  ;;  %v2138_v58 = vsub.f32 %v1782_v13, %v2048_v44  ;;  %v2144_v1 = vsub.f32 %v1785_v18, %v2048_v44 }
 0x181   :  { %3336 = vst [vmem:[#allocation26_spill] sm:$0xff] %v2108_v10  ;;  %v965_v12 = vmul.f32 %v2122_v45, %v2122_v45  ;;  %v966_v60 = vmul.f32 %v2126_v4, %v2126_v4  ;;  %v967_v14 = vmul.f32 %v2134_v37, %v2134_v37  ;;  %v2150_v6 = vsub.f32 %v1791_v23, %v2048_v44 }
 0x182   :  { %v968_v13 = vmul.f32 %v2138_v58, %v2138_v58  ;;  %v2156_v43 = vsub.f32 %v1795_v28, %v2048_v44  ;;  %v969_v18 = vmul.f32 %v2144_v1, %v2144_v1  ;;  %v2162_v52 = vsub.f32 %v1802_v35, %v2048_v44 }
 0x183   :  { %v1028_v51 = vadd.f32 %v965_v12, %v964_v48  ;;  %v970_v23 = vmul.f32 %v2150_v6, %v2150_v6  ;;  %v2168_v61 = vsub.f32 %v1805_v40, %v2048_v44  ;;  %v2174_v46 = vsub.f32 %v1811_v49, %v2048_v44 }
 0x184   :  { %v971_v28 = vmul.f32 %v2156_v43, %v2156_v43  ;;  %v972_v35 = vmul.f32 %v2162_v52, %v2162_v52  ;;  %v2180_v20 = vsub.f32 %v1815_v55, %v2048_v44  ;;  %v2186_v12 = vsub.f32 %v1822_v2, %v2048_v44 }
 0x185   :  { %v1029_v30 = vadd.f32 %v1028_v51, %v966_v60  ;;  %v973_v40 = vmul.f32 %v2168_v61, %v2168_v61  ;;  %v974_v49 = vmul.f32 %v2174_v46, %v2174_v46  ;;  %v2192_v51 = vsub.f32 %v1825_v8, %v2048_v44 }
 0x186   :  { %v975_v55 = vmul.f32 %v2180_v20, %v2180_v20  ;;  %v976_v2 = vmul.f32 %v2186_v12, %v2186_v12 }
 0x187   :  { %v1030_v39 = vadd.f32 %v1029_v30, %v967_v14  ;;  %v2198_v30 = vsub.f32 %v1831_v15, %v2048_v44  ;;  %v977_v8 = vmul.f32 %v2192_v51, %v2192_v51 }
 0x189   :  { %v1031_v19 = vadd.f32 %v1030_v39, %v968_v13  ;;  %v2204_v39 = vsub.f32 %v1835_v21, %v2048_v44  ;;  %v978_v15 = vmul.f32 %v2198_v30, %v2198_v30 }
 0x18b   :  { %v1032_v27 = vadd.f32 %v1031_v19, %v969_v18  ;;  %v2210_v19 = vsub.f32 %v1842_v31, %v2048_v44  ;;  %v979_v21 = vmul.f32 %v2204_v39, %v2204_v39 }
 0x18d   :  { %v1033_v63 = vadd.f32 %v1032_v27, %v970_v23  ;;  %v2216_v27 = vsub.f32 %v1845_v38, %v2048_v44  ;;  %v980_v31 = vmul.f32 %v2210_v19, %v2210_v19 }
 0x18f   :  { %v1034_v42 = vadd.f32 %v1033_v63, %v971_v28  ;;  %v2222_v63 = vsub.f32 %v1851_v50, %v2048_v44  ;;  %v981_v38 = vmul.f32 %v2216_v27, %v2216_v27 }
 0x191   :  { %v1035_v48 = vadd.f32 %v1034_v42, %v972_v35  ;;  %v2228_v42 = vsub.f32 %v1855_v57, %v2048_v44  ;;  %v982_v50 = vmul.f32 %v2222_v63, %v2222_v63 }
 0x193   :  { %v1036_v60 = vadd.f32 %v1035_v48, %v973_v40  ;;  %v2234_v48 = vsub.f32 %v1862_v7, %v2048_v44  ;;  %v983_v57 = vmul.f32 %v2228_v42, %v2228_v42 }
 0x195   :  { %v1037_v14 = vadd.f32 %v1036_v60, %v974_v49  ;;  %v2240_v60 = vsub.f32 %v1865_v17, %v2048_v44  ;;  %v984_v7 = vmul.f32 %v2234_v48, %v2234_v48 }
 0x197   :  { %v1038_v13 = vadd.f32 %v1037_v14, %v975_v55  ;;  %v2246_v14 = vsub.f32 %v1871_v26, %v2048_v44  ;;  %v985_v17 = vmul.f32 %v2240_v60, %v2240_v60 }
 0x199   :  { %v1039_v18 = vadd.f32 %v1038_v13, %v976_v2  ;;  %v2252_v13 = vsub.f32 %v1875_v36, %v2048_v44  ;;  %v986_v26 = vmul.f32 %v2246_v14, %v2246_v14 }
 0x19b   :  { %v1040_v23 = vadd.f32 %v1039_v18, %v977_v8  ;;  %v2258_v18 = vsub.f32 %v1882_v53, %v2048_v44  ;;  %v987_v36 = vmul.f32 %v2252_v13, %v2252_v13 }
 0x19d   :  { %v1041_v28 = vadd.f32 %v1040_v23, %v978_v15  ;;  %v3337_v23 = vld [vmem:[#allocation2_spill] sm:$0xff]  ;;  %v988_v53 = vmul.f32 %v2258_v18, %v2258_v18 }
 0x19f   :  { %v1042_v35 = vadd.f32 %v1041_v28, %v979_v21  ;;  %v2264_v21 = vsub.f32 %v3337_v23, %v2048_v44 }
 0x1a1   :  { %v1043_v40 = vadd.f32 %v1042_v35, %v980_v31  ;;  %v3338_v31 = vld [vmem:[#allocation3_spill] sm:$0xff] }
 0x1a2   :  { %v2270_v35 = vsub.f32 %v3338_v31, %v2048_v44 }
 0x1a3   :  { %v1044_v49 = vadd.f32 %v1043_v40, %v981_v38  ;;  %v3339_v40 = vld [vmem:[#allocation4_spill] sm:$0xff] }
 0x1a5   :  { %v1045_v55 = vadd.f32 %v1044_v49, %v982_v50  ;;  %v2276_v50 = vsub.f32 %v3339_v40, %v2048_v44  ;;  %v989_v49 = vmul.f32 %v2264_v21, %v2264_v21 }
 0x1a7   :  { %v1046_v2 = vadd.f32 %v1045_v55, %v983_v57  ;;  %v3340_v55 = vld [vmem:[#allocation5_spill] sm:$0xff] }
 0x1a9   :  { %v1047_v8 = vadd.f32 %v1046_v2, %v984_v7  ;;  %v2282_v7 = vsub.f32 %v3340_v55, %v2048_v44  ;;  %v990_v2 = vmul.f32 %v2270_v35, %v2270_v35  ;;  %v3348_v55 = vld [vmem:[#allocation9_spill] sm:$0xff] }
 0x1ab   :  { %v1048_v15 = vadd.f32 %v1047_v8, %v985_v17  ;;  %3341 = vst [vmem:[#allocation2_spill] sm:$0xff] %v2282_v7  ;;  %v3342_v8 = vld [vmem:[#allocation6_spill] sm:$0xff]  ;;  %v992_v31 = vmul.f32 %v2282_v7, %v2282_v7 }
 0x1ad   :  { %v1049_v28 = vadd.f32 %v1048_v15, %v986_v26  ;;  %v2288_v26 = vsub.f32 %v3342_v8, %v2048_v44  ;;  %v991_v15 = vmul.f32 %v2276_v50, %v2276_v50  ;;  %v2306_v8 = vsub.f32 %v3348_v55, %v2048_v44  ;;  %v3354_v55 = vld [vmem:[#allocation12_spill] sm:$0xff] }
 0x1af   :  { %v1050_v38 = vadd.f32 %v1049_v28, %v987_v36  ;;  %3343 = vst [vmem:[#allocation3_spill] sm:$0xff] %v2288_v26  ;;  %v3344_v36 = vld [vmem:[#allocation7_spill] sm:$0xff]  ;;  %3349 = vst [vmem:[#allocation6_spill] sm:$0xff] %v2306_v8 }
 0x1b0   :  { %v2294_v28 = vsub.f32 %v3344_v36, %v2048_v44  ;;  %v3350_v36 = vld [vmem:[#allocation10_spill] sm:$0xff] }
 0x1b1   :  { %v1051_v57 = vadd.f32 %v1050_v38, %v988_v53  ;;  %v3346_v38 = vld [vmem:[#allocation8_spill] sm:$0xff]  ;;  %v2312_v7 = vsub.f32 %v3350_v36, %v2048_v44  ;;  %v3356_v36 = vld [vmem:[#allocation13_spill] sm:$0xff] }
 0x1b2   :  { %3345 = vst [vmem:[#allocation4_spill] sm:$0xff] %v2294_v28  ;;  %v2300_v40 = vsub.f32 %v3346_v38, %v2048_v44  ;;  %v3352_v38 = vld [vmem:[#allocation11_spill] sm:$0xff] }
 0x1b3   :  { %v1052_v17 = vadd.f32 %v1051_v57, %v989_v49  ;;  %v993_v49 = vmul.f32 %v2288_v26, %v2288_v26  ;;  %3351 = vst [vmem:[#allocation7_spill] sm:$0xff] %v2312_v7  ;;  %v2318_v26 = vsub.f32 %v3352_v38, %v2048_v44  ;;  %v3358_v38 = vld [vmem:[#allocation14_spill] sm:$0xff] }
 0x1b4   :  { %3347 = vst [vmem:[#allocation5_spill] sm:$0xff] %v2300_v40 }
 0x1b5   :  { %v1053_v23 = vadd.f32 %v1052_v17, %v990_v2  ;;  %v994_v2 = vmul.f32 %v2294_v28, %v2294_v28  ;;  %3353 = vst [vmem:[#allocation8_spill] sm:$0xff] %v2318_v26  ;;  %v2324_v28 = vsub.f32 %v3354_v55, %v2048_v44  ;;  %v3360_v55 = vld [vmem:[#allocation15_spill] sm:$0xff] }
 0x1b7   :  { %v1054_v53 = vadd.f32 %v1053_v23, %v991_v15  ;;  %v995_v15 = vmul.f32 %v2300_v40, %v2300_v40  ;;  %3355 = vst [vmem:[#allocation9_spill] sm:$0xff] %v2324_v28  ;;  %v2330_v40 = vsub.f32 %v3356_v36, %v2048_v44  ;;  %v3362_v36 = vld [vmem:[#allocation16_spill] sm:$0xff] }
 0x1b9   :  { %v1055_v57 = vadd.f32 %v1054_v53, %v992_v31  ;;  %v996_v31 = vmul.f32 %v2306_v8, %v2306_v8  ;;  %3357 = vst [vmem:[#allocation10_spill] sm:$0xff] %v2330_v40  ;;  %v2336_v8 = vsub.f32 %v3358_v38, %v2048_v44  ;;  %v3364_v38 = vld [vmem:[#allocation17_spill] sm:$0xff] }
 0x1bb   :  { %v1056_v17 = vadd.f32 %v1055_v57, %v993_v49  ;;  %v997_v49 = vmul.f32 %v2312_v7, %v2312_v7  ;;  %3359 = vst [vmem:[#allocation11_spill] sm:$0xff] %v2336_v8  ;;  %v2342_v7 = vsub.f32 %v3360_v55, %v2048_v44  ;;  %v3365_v55 = vld [vmem:[#allocation18_spill] sm:$0xff] }
 0x1bd   :  { %v1057_v23 = vadd.f32 %v1056_v17, %v994_v2  ;;  %v998_v2 = vmul.f32 %v2318_v26, %v2318_v26  ;;  %3361 = vst [vmem:[#allocation12_spill] sm:$0xff] %v2342_v7  ;;  %v2348_v26 = vsub.f32 %v3362_v36, %v2048_v44  ;;  %v3367_v36 = vld [vmem:[#allocation19_spill] sm:$0xff] }
 0x1bf   :  { %v1058_v53 = vadd.f32 %v1057_v23, %v995_v15  ;;  %v999_v15 = vmul.f32 %v2324_v28, %v2324_v28  ;;  %3363 = vst [vmem:[#allocation13_spill] sm:$0xff] %v2348_v26  ;;  %v2354_v28 = vsub.f32 %v3364_v38, %v2048_v44  ;;  %v3368_v38 = vld [vmem:[#allocation20_spill] sm:$0xff] }
 0x1c1   :  { %v1059_v57 = vadd.f32 %v1058_v53, %v996_v31  ;;  %v1000_v31 = vmul.f32 %v2330_v40, %v2330_v40  ;;  %v2360_v40 = vsub.f32 %v3365_v55, %v2048_v44  ;;  %v3369_v55 = vld [vmem:[#allocation21_spill] sm:$0xff] }
 0x1c3   :  { %v1060_v17 = vadd.f32 %v1059_v57, %v997_v49  ;;  %v1001_v49 = vmul.f32 %v2336_v8, %v2336_v8  ;;  %3366 = vst [vmem:[#allocation14_spill] sm:$0xff] %v2360_v40  ;;  %v2366_v8 = vsub.f32 %v3367_v36, %v2048_v44 }
 0x1c5   :  { %v1061_v23 = vadd.f32 %v1060_v17, %v998_v2  ;;  %v1002_v2 = vmul.f32 %v2342_v7, %v2342_v7  ;;  %v2372_v7 = vsub.f32 %v3368_v38, %v2048_v44 }
 0x1c7   :  { %v1062_v53 = vadd.f32 %v1061_v23, %v999_v15  ;;  %v1003_v15 = vmul.f32 %v2348_v26, %v2348_v26  ;;  %v2378_v26 = vsub.f32 %v3369_v55, %v2048_v44  ;;  %v1007_v36 = vmul.f32 %v2372_v7, %v2372_v7 }
 0x1c8   :  { %v1010_v44 = vmul.f32 %v2056_v11, %v2056_v11  ;;  %v1011_v55 = vmul.f32 %v2060_v32, %v2060_v32 }
 0x1c9   :  { %v1063_v57 = vadd.f32 %v1062_v53, %v1000_v31  ;;  %v1004_v31 = vmul.f32 %v2354_v28, %v2354_v28 }
 0x1cb   :  { %v1064_v17 = vadd.f32 %v1063_v57, %v1001_v49  ;;  %v1005_v49 = vmul.f32 %v2360_v40, %v2360_v40  ;;  %v1009_v40 = vmul.f32 %v2052_v59, %v2052_v59 }
 0x1cd   :  { %v1065_v23 = vadd.f32 %v1064_v17, %v1002_v2  ;;  %v1006_v2 = vmul.f32 %v2366_v8, %v2366_v8 }
 0x1cf   :  { %v1066_v53 = vadd.f32 %v1065_v23, %v1003_v15  ;;  %v1008_v23 = vmul.f32 %v2378_v26, %v2378_v26 }
 0x1d1   :  { %v1067_v57 = vadd.f32 %v1066_v53, %v1004_v31 }
 0x1d3   :  { %v1068_v17 = vadd.f32 %v1067_v57, %v1005_v49  ;;  %v1012_v57 = vmul.f32 %v2064_v16, %v2064_v16 }
 0x1d5   :  { %v1069_v15 = vadd.f32 %v1068_v17, %v1006_v2  ;;  %v1013_v17 = vmul.f32 %v2068_v3, %v2068_v3 }
 0x1d7   :  { %v1070_v38 = vadd.f32 %v1069_v15, %v1007_v36  ;;  %v1014_v15 = vmul.f32 %v2072_v47, %v2072_v47 }
 0x1d9   :  { %v1071_v31 = vadd.f32 %v1070_v38, %v1008_v23  ;;  %v1015_v38 = vmul.f32 %v2076_v33, %v2076_v33 }
 0x1db   :  { %v1072_v53 = vadd.f32 %v1071_v31, %v1009_v40  ;;  %v1016_v31 = vmul.f32 %v2080_v29, %v2080_v29 }
 0x1dd   :  { %v1073_v49 = vadd.f32 %v1072_v53, %v1010_v44  ;;  %v1017_v53 = vmul.f32 %v2084_v9, %v2084_v9 }
 0x1df   :  { %v1074_v2 = vadd.f32 %v1073_v49, %v1011_v55  ;;  %v1018_v49 = vmul.f32 %v2087_v25, %v2087_v25 }
 0x1e1   :  { %v1075_v36 = vadd.f32 %v1074_v2, %v1012_v57  ;;  %v1019_v2 = vmul.f32 %v2090_v22, %v2090_v22 }
 0x1e3   :  { %v1076_v23 = vadd.f32 %v1075_v36, %v1013_v17  ;;  %v1020_v36 = vmul.f32 %v2093_v54, %v2093_v54 }
 0x1e5   :  { %v1077_v40 = vadd.f32 %v1076_v23, %v1014_v15  ;;  %v1021_v23 = vmul.f32 %v2096_v56, %v2096_v56 }
 0x1e7   :  { %v1078_v44 = vadd.f32 %v1077_v40, %v1015_v38  ;;  %v1022_v40 = vmul.f32 %v2099_v62, %v2099_v62 }
 0x1e9   :  { %v1079_v55 = vadd.f32 %v1078_v44, %v1016_v31  ;;  %v1023_v44 = vmul.f32 %v2102_v34, %v2102_v34 }
 0x1eb   :  { %v1080_v57 = vadd.f32 %v1079_v55, %v1017_v53  ;;  %v1024_v55 = vmul.f32 %v2105_v24, %v2105_v24 }
 0x1ed   :  { %v1081_v17 = vadd.f32 %v1080_v57, %v1018_v49  ;;  %v1025_v57 = vmul.f32 %v2108_v10, %v2108_v10 }
 0x1ef   :  { %v1082_v15 = vadd.f32 %v1081_v17, %v1019_v2  ;;  %v1026_v17 = vmul.f32 %v2111_v5, %v2111_v5 }
 0x1f1   :  { %v1083_v38 = vadd.f32 %v1082_v15, %v1020_v36  ;;  %v1027_v15 = vmul.f32 %v2114_v41, %v2114_v41 }
 0x1f3   :  { %v1084_v31 = vadd.f32 %v1083_v38, %v1021_v23 }
 0x1f5   :  { %v1085_v53 = vadd.f32 %v1084_v31, %v1022_v40 }
 0x1f7   :  { %v1086_v49 = vadd.f32 %v1085_v53, %v1023_v44 }
 0x1f9   :  { %v1087_v2 = vadd.f32 %v1086_v49, %v1024_v55 }
 0x1fb   :  { %v1088_v36 = vadd.f32 %v1087_v2, %v1025_v57  ;;  %v3371_v57 = vld [vmem:[#allocation3_spill] sm:$0xff]  ;;  %v3372_v2 = vld [vmem:[#allocation4_spill] sm:$0xff] }
 0x1fd   :  { %v1089_v23 = vadd.f32 %v1088_v36, %v1026_v17  ;;  %v3373_v17 = vld [vmem:[#allocation5_spill] sm:$0xff]  ;;  %v3374_v36 = vld [vmem:[#allocation6_spill] sm:$0xff] }
 0x1ff   :  { %v1090_v38 = vadd.f32 %v1089_v23, %v1027_v15  ;;  %v3375_v15 = vld [vmem:[#allocation7_spill] sm:$0xff] }
 0x201   :  { %v1091_v62 = vrot.slane %v1090_v38, 4 }
 0x203   :  { %v1092_v34 = vadd.f32 %v1091_v62, %v1090_v38  ;;  %v3376_v38 = vld [vmem:[#allocation8_spill] sm:$0xff] }
 0x205   :  { %v1093_v40 = vrot.slane %v1092_v34, 2 }
 0x207   :  { %v1094_v31 = vadd.f32 %v1093_v40, %v1092_v34 }
 0x209   :  { %v1095_v56 = vrot.slane %v1094_v31, 1 }
 0x20b   :  { %v1096_v24 = vadd.f32 %v1095_v56, %v1094_v31  ;;  %v3377_v31 = vld [vmem:[#allocation9_spill] sm:$0xff] }
 0x20d   :  { %v1097_v44 = vmul.f32 0.001953125, %v1096_v24 }
 0x20f   :  { %v1098_v53 = vadd.f32 1e-05, %v1097_v44 }
 0x211   :  { %1593 = vrsqrt.f32 %v1098_v53  ;;  %v3379_v53 = vld [vmem:[#allocation10_spill] sm:$0xff] }
 0x21e   :  { %v2424_v10 = vpop.eup %1593 }
 0x21f   :  { %v2428_v55 = vmul.f32 %v2424_v10, %v2118_v0  ;;  %v2432_v49 = vmul.f32 %v2424_v10, %v2122_v45  ;;  %v2436_v62 = vmul.f32 %v2424_v10, %v2126_v4  ;;  %v2440_v56 = vmul.f32 %v2424_v10, %v2134_v37 }
 0x220   :  { %v2444_v34 = vmul.f32 %v2424_v10, %v2138_v58  ;;  %v2448_v24 = vmul.f32 %v2424_v10, %v2144_v1  ;;  %v2452_v0 = vmul.f32 %v2424_v10, %v2150_v6  ;;  %v2456_v45 = vmul.f32 %v2424_v10, %v2156_v43 }
 0x221   :  { %v2460_v4 = vmul.f32 %v2424_v10, %v2162_v52  ;;  %v2464_v37 = vmul.f32 %v2424_v10, %v2168_v61  ;;  %v2468_v58 = vmul.f32 %v2424_v10, %v2174_v46  ;;  %v2472_v1 = vmul.f32 %v2424_v10, %v2180_v20 }
 0x222   :  { %v2476_v6 = vmul.f32 %v2424_v10, %v2186_v12  ;;  %v2480_v43 = vmul.f32 %v2424_v10, %v2192_v51  ;;  %v2484_v52 = vmul.f32 %v2424_v10, %v2198_v30  ;;  %v2488_v61 = vmul.f32 %v2424_v10, %v2204_v39 }
 0x223   :  { %v2492_v46 = vmul.f32 %v2424_v10, %v2210_v19  ;;  %v2496_v20 = vmul.f32 %v2424_v10, %v2216_v27  ;;  %v2500_v12 = vmul.f32 %v2424_v10, %v2222_v63  ;;  %v2504_v51 = vmul.f32 %v2424_v10, %v2228_v42 }
 0x224   :  { %v2508_v30 = vmul.f32 %v2424_v10, %v2234_v48  ;;  %v2512_v39 = vmul.f32 %v2424_v10, %v2240_v60  ;;  %v2516_v19 = vmul.f32 %v2424_v10, %v2246_v14  ;;  %v2520_v27 = vmul.f32 %v2424_v10, %v2252_v13  ;;  %v3370_v14 = vld [vmem:[#allocation2_spill] sm:$0xff] }
 0x225   :  { %v2524_v63 = vmul.f32 %v2424_v10, %v2258_v18  ;;  %v2528_v42 = vmul.f32 %v2424_v10, %v2264_v21  ;;  %v2532_v48 = vmul.f32 %v2424_v10, %v2270_v35  ;;  %v2536_v60 = vmul.f32 %v2424_v10, %v2276_v50 }
 0x226   :  { %v2540_v13 = vmul.f32 %v2424_v10, %v3370_v14  ;;  %v2544_v18 = vmul.f32 %v2424_v10, %v3371_v57  ;;  %v2548_v21 = vmul.f32 %v2424_v10, %v3372_v2  ;;  %v2552_v35 = vmul.f32 %v2424_v10, %v3373_v17  ;;  %v3380_v57 = vld [vmem:[#allocation11_spill] sm:$0xff]  ;;  %v3381_v17 = vld [vmem:[#allocation12_spill] sm:$0xff] }
 0x227   :  { %v2556_v50 = vmul.f32 %v2424_v10, %v3374_v36  ;;  %v2560_v23 = vmul.f32 %v2424_v10, %v3375_v15  ;;  %v2564_v40 = vmul.f32 %v2424_v10, %v3376_v38  ;;  %v2568_v44 = vmul.f32 %v2424_v10, %v3377_v31  ;;  %v3382_v15 = vld [vmem:[#allocation13_spill] sm:$0xff] }
 0x228   :  { %v2572_v14 = vmul.f32 %v2424_v10, %v3379_v53  ;;  %v2576_v2 = vmul.f32 %v2424_v10, %v3380_v57  ;;  %v2580_v36 = vmul.f32 %v2424_v10, %v3381_v17  ;;  %v2584_v38 = vmul.f32 %v2424_v10, %v3382_v15 }
 0x229   :  { %3378 = vst [vmem:[#allocation15_spill] sm:$0xff] %v2568_v44  ;;  %v2588_v31 = vmul.f32 %v2424_v10, %v2354_v28  ;;  %v3383_v44 = vld [vmem:[#allocation14_spill] sm:$0xff]  ;;  %v2596_v57 = vmul.f32 %v2424_v10, %v2366_v8  ;;  %v2600_v17 = vmul.f32 %v2424_v10, %v2372_v7  ;;  %v2604_v15 = vmul.f32 %v2424_v10, %v2378_v26 }
 0x22a   :  { %v2592_v53 = vmul.f32 %v2424_v10, %v3383_v44  ;;  %v2608_v28 = vmul.f32 %v2424_v10, %v2052_v59  ;;  %v2612_v44 = vmul.f32 %v2424_v10, %v2056_v11  ;;  %v2616_v8 = vmul.f32 %v2424_v10, %v2060_v32 }
 0x22b   :  { %v2620_v7 = vmul.f32 %v2424_v10, %v2064_v16  ;;  %v2624_v26 = vmul.f32 %v2424_v10, %v2068_v3  ;;  %v2628_v59 = vmul.f32 %v2424_v10, %v2072_v47  ;;  %v2632_v11 = vmul.f32 %v2424_v10, %v2076_v33  ;;  %v2653_v33 = vld [vmem:[%s3271_s3] ss:$0 sm:$0xff] }
 0x22c   :  { %v2636_v32 = vmul.f32 %v2424_v10, %v2080_v29  ;;  %v2640_v16 = vmul.f32 %v2424_v10, %v2084_v9  ;;  %v2644_v3 = vmul.f32 %v2424_v10, %v2087_v25  ;;  %v2648_v47 = vmul.f32 %v2424_v10, %v2090_v22 }
 0x22d   :  { %3384 = vst [vmem:[#allocation16_spill] sm:$0xff] %v2628_v59  ;;  %3385 = vst [vmem:[#allocation17_spill] sm:$0xff] %v2632_v11  ;;  %v2657_v29 = vmul.f32 %v2424_v10, %v2093_v54  ;;  %v3394_v59 = vld [vmem:[#allocation26_spill] sm:$0xff] }
 0x22e   :  { %3386 = vst [vmem:[#allocation18_spill] sm:$0xff] %v2636_v32  ;;  %3387 = vst [vmem:[#allocation19_spill] sm:$0xff] %v2640_v16  ;;  %v3390_v32 = vld [vmem:[#allocation22_spill] sm:$0xff]  ;;  %v3391_v16 = vld [vmem:[#allocation23_spill] sm:$0xff]  ;;  %v2677_v54 = vmul.f32 %v2424_v10, %v3394_v59  ;;  %v2697_v59 = vmul.f32 %v2653_v33, %v2436_v62  ;;  %v2721_v62 = vmul.f32 %v2653_v33, %v2460_v4 }
 0x22f   :  { %3388 = vst [vmem:[#allocation20_spill] sm:$0xff] %v2644_v3  ;;  %3389 = vst [vmem:[#allocation21_spill] sm:$0xff] %v2648_v47  ;;  %v2661_v9 = vmul.f32 %v2424_v10, %v3390_v32  ;;  %v2665_v25 = vmul.f32 %v2424_v10, %v3391_v16  ;;  %v3392_v3 = vld [vmem:[#allocation24_spill] sm:$0xff]  ;;  %v3393_v47 = vld [vmem:[#allocation25_spill] sm:$0xff]  ;;  %v2681_v32 = vmul.f32 %v2424_v10, %v2111_v5 }
 0x230   :  { %v2669_v22 = vmul.f32 %v2424_v10, %v3392_v3  ;;  %v2673_v11 = vmul.f32 %v2424_v10, %v3393_v47  ;;  %v2685_v16 = vmul.f32 %v2424_v10, %v2114_v41  ;;  %v2689_v3 = vmul.f32 %v2653_v33, %v2428_v55 }
 0x231   :  { %v2693_v47 = vmul.f32 %v2653_v33, %v2432_v49  ;;  %v2701_v5 = vmul.f32 %v2653_v33, %v2440_v56  ;;  %v2705_v10 = vmul.f32 %v2653_v33, %v2444_v34  ;;  %v2709_v41 = vmul.f32 %v2653_v33, %v2448_v24 }
 0x232   :  { %v2713_v55 = vmul.f32 %v2653_v33, %v2452_v0  ;;  %v2717_v49 = vmul.f32 %v2653_v33, %v2456_v45  ;;  %v2725_v56 = vmul.f32 %v2653_v33, %v2464_v37  ;;  %v2729_v34 = vmul.f32 %v2653_v33, %v2468_v58 }
 0x233   :  { %v2733_v24 = vmul.f32 %v2653_v33, %v2472_v1  ;;  %v2737_v0 = vmul.f32 %v2653_v33, %v2476_v6  ;;  %v2741_v45 = vmul.f32 %v2653_v33, %v2480_v43  ;;  %v2745_v4 = vmul.f32 %v2653_v33, %v2484_v52 }
 0x234   :  { %v2749_v37 = vmul.f32 %v2653_v33, %v2488_v61  ;;  %v2753_v58 = vmul.f32 %v2653_v33, %v2492_v46  ;;  %v2757_v1 = vmul.f32 %v2653_v33, %v2496_v20  ;;  %v2761_v6 = vmul.f32 %v2653_v33, %v2500_v12 }
 0x235   :  { %v2765_v43 = vmul.f32 %v2653_v33, %v2504_v51  ;;  %v2769_v52 = vmul.f32 %v2653_v33, %v2508_v30  ;;  %v2773_v61 = vmul.f32 %v2653_v33, %v2512_v39  ;;  %v2777_v46 = vmul.f32 %v2653_v33, %v2516_v19 }
 0x236   :  { %v2781_v20 = vmul.f32 %v2653_v33, %v2520_v27  ;;  %v2785_v12 = vmul.f32 %v2653_v33, %v2524_v63  ;;  %v2789_v51 = vmul.f32 %v2653_v33, %v2528_v42  ;;  %v2793_v30 = vmul.f32 %v2653_v33, %v2532_v48 }
 0x237   :  { %v2797_v39 = vmul.f32 %v2653_v33, %v2536_v60  ;;  %v2801_v19 = vmul.f32 %v2653_v33, %v2540_v13  ;;  %v2805_v27 = vmul.f32 %v2653_v33, %v2544_v18  ;;  %v2809_v63 = vmul.f32 %v2653_v33, %v2548_v21  ;;  %v3395_v18 = vld [vmem:[#allocation15_spill] sm:$0xff] }
 0x238   :  { %v2813_v42 = vmul.f32 %v2653_v33, %v2552_v35  ;;  %v2817_v48 = vmul.f32 %v2653_v33, %v2556_v50  ;;  %v2821_v60 = vmul.f32 %v2653_v33, %v2560_v23  ;;  %v2825_v13 = vmul.f32 %v2653_v33, %v2564_v40 }
 0x239   :  { %v2829_v21 = vmul.f32 %v2653_v33, %v3395_v18  ;;  %v2833_v35 = vmul.f32 %v2653_v33, %v2572_v14  ;;  %v2837_v50 = vmul.f32 %v2653_v33, %v2576_v2  ;;  %v2841_v23 = vmul.f32 %v2653_v33, %v2580_v36 }
 0x23a   :  { %v2845_v40 = vmul.f32 %v2653_v33, %v2584_v38  ;;  %v2849_v18 = vmul.f32 %v2653_v33, %v2588_v31  ;;  %v2853_v14 = vmul.f32 %v2653_v33, %v2592_v53  ;;  %v2857_v2 = vmul.f32 %v2653_v33, %v2596_v57 }
 0x23b   :  { %v2861_v36 = vmul.f32 %v2653_v33, %v2600_v17  ;;  %v2865_v38 = vmul.f32 %v2653_v33, %v2604_v15  ;;  %v2869_v31 = vmul.f32 %v2653_v33, %v2608_v28  ;;  %v2873_v53 = vmul.f32 %v2653_v33, %v2612_v44 }
 0x23c   :  { %v2877_v57 = vmul.f32 %v2653_v33, %v2616_v8  ;;  %v2881_v17 = vmul.f32 %v2653_v33, %v2620_v7  ;;  %v2885_v15 = vmul.f32 %v2653_v33, %v2624_v26 }
 0x23d   :  { %3396 = vst [vmem:[#allocation2_spill] sm:$0xff] %v2865_v38  ;;  %3397 = vst [vmem:[#allocation3_spill] sm:$0xff] %v2869_v31  ;;  %v3402_v38 = vld [vmem:[#allocation16_spill] sm:$0xff]  ;;  %v3403_v31 = vld [vmem:[#allocation17_spill] sm:$0xff] }
 0x23e   :  { %3398 = vst [vmem:[#allocation4_spill] sm:$0xff] %v2873_v53  ;;  %3399 = vst [vmem:[#allocation5_spill] sm:$0xff] %v2877_v57  ;;  %v2889_v28 = vmul.f32 %v2653_v33, %v3402_v38  ;;  %v2893_v44 = vmul.f32 %v2653_v33, %v3403_v31  ;;  %v3404_v53 = vld [vmem:[#allocation18_spill] sm:$0xff]  ;;  %v3405_v57 = vld [vmem:[#allocation19_spill] sm:$0xff] }
 0x23f   :  { %3400 = vst [vmem:[#allocation6_spill] sm:$0xff] %v2881_v17  ;;  %3401 = vst [vmem:[#allocation7_spill] sm:$0xff] %v2885_v15  ;;  %v2897_v8 = vmul.f32 %v2653_v33, %v3404_v53  ;;  %v2901_v7 = vmul.f32 %v2653_v33, %v3405_v57  ;;  %v3406_v17 = vld [vmem:[#allocation20_spill] sm:$0xff]  ;;  %v3407_v15 = vld [vmem:[#allocation21_spill] sm:$0xff]  ;;  %v2918_v53 = vmul.f32 %v2653_v33, %v2657_v29 }
 0x240   :  { %v2905_v26 = vmul.f32 %v2653_v33, %v3406_v17  ;;  %v2909_v38 = vmul.f32 %v2653_v33, %v3407_v15  ;;  %v2914_v31 = vld [vmem:[%s3272_s4] ss:$0 sm:$0xff]  ;;  %v2922_v57 = vmul.f32 %v2653_v33, %v2661_v9  ;;  %v2926_v17 = vmul.f32 %v2653_v33, %v2665_v25 }
 0x241   :  { %v2930_v15 = vmul.f32 %v2653_v33, %v2669_v22  ;;  %v2938_v29 = vmul.f32 %v2653_v33, %v2677_v54  ;;  %v2942_v9 = vmul.f32 %v2653_v33, %v2681_v32  ;;  %v2946_v25 = vmul.f32 %v2653_v33, %v2685_v16 }
 0x242   :  { %3408 = vst [vmem:[#allocation8_spill] sm:$0xff] %v2909_v38  ;;  %v2934_v38 = vmul.f32 %v2653_v33, %v2673_v11  ;;  %v1242_v22 = vadd.f32 %v2914_v31, %v2689_v3  ;;  %v1244_v11 = vadd.f32 %v2914_v31, %v2697_v59  ;;  %v1245_v54 = vadd.f32 %v2914_v31, %v2701_v5 }
 0x243   :  { %3409 = vst [vmem:[#allocation9_spill] sm:$0xff] %v2930_v15  ;;  %3410 = vst [vmem:[#allocation10_spill] sm:$0xff] %v2942_v9  ;;  %v1243_v15 = vadd.f32 %v2914_v31, %v2693_v47  ;;  %v1246_v32 = vadd.f32 %v2914_v31, %v2705_v10  ;;  %v1247_v9 = vadd.f32 %v2914_v31, %v2709_v41 }
 0x244   :  { %v1248_v33 = vadd.f32 %v2914_v31, %v2713_v55  ;;  %v1249_v16 = vadd.f32 %v2914_v31, %v2717_v49  ;;  %v1250_v3 = vadd.f32 %v2914_v31, %v2721_v62  ;;  %v1251_v47 = vadd.f32 %v2914_v31, %v2725_v56  ;;  %1306 = vst [vmem:[%s3273_s5] sm:$0xff] %v1242_v22 }
 0x245   :  { %v1252_v59 = vadd.f32 %v2914_v31, %v2729_v34  ;;  %v1253_v5 = vadd.f32 %v2914_v31, %v2733_v24  ;;  %1307 = vst [vmem:[%s3273_s5 + $0x8] sm:$0xff] %v1243_v15  ;;  %1308 = vst [vmem:[%s3273_s5 + $0x10] sm:$0xff] %v1244_v11  ;;  %v1254_v10 = vadd.f32 %v2914_v31, %v2737_v0 }
 0x246   :  { %1309 = vst [vmem:[%s3273_s5 + $0x18] sm:$0xff] %v1245_v54  ;;  %v1255_v41 = vadd.f32 %v2914_v31, %v2741_v45  ;;  %v1256_v55 = vadd.f32 %v2914_v31, %v2745_v4  ;;  %v1257_v49 = vadd.f32 %v2914_v31, %v2749_v37  ;;  %1310 = vst [vmem:[%s3273_s5 + $0x20] sm:$0xff] %v1246_v32  ;;  %v3415_v15 = vld [vmem:[#allocation6_spill] sm:$0xff]  ;;  %v3416_v22 = vld [vmem:[#allocation7_spill] sm:$0xff] }
 0x247   :  { %1311 = vst [vmem:[%s3273_s5 + $0x28] sm:$0xff] %v1247_v9  ;;  %1312 = vst [vmem:[%s3273_s5 + $0x30] sm:$0xff] %v1248_v33  ;;  %v1258_v62 = vadd.f32 %v2914_v31, %v2753_v58  ;;  %v1259_v56 = vadd.f32 %v2914_v31, %v2757_v1  ;;  %v1260_v34 = vadd.f32 %v2914_v31, %v2761_v6 }
 0x248   :  { %1313 = vst [vmem:[%s3273_s5 + $0x38] sm:$0xff] %v1249_v16  ;;  %v1261_v24 = vadd.f32 %v2914_v31, %v2765_v43  ;;  %1314 = vst [vmem:[%s3273_s5 + $0x40] sm:$0xff] %v1250_v3  ;;  %v1262_v0 = vadd.f32 %v2914_v31, %v2769_v52  ;;  %v1263_v45 = vadd.f32 %v2914_v31, %v2773_v61 }
 0x249   :  { %1315 = vst [vmem:[%s3273_s5 + $0x48] sm:$0xff] %v1251_v47  ;;  %1316 = vst [vmem:[%s3273_s5 + $0x50] sm:$0xff] %v1252_v59  ;;  %v1264_v4 = vadd.f32 %v2914_v31, %v2777_v46  ;;  %v1265_v37 = vadd.f32 %v2914_v31, %v2781_v20  ;;  %v1266_v58 = vadd.f32 %v2914_v31, %v2785_v12  ;;  %v3417_v16 = vld [vmem:[#allocation8_spill] sm:$0xff] }
 0x24a   :  { %1317 = vst [vmem:[%s3273_s5 + $0x58] sm:$0xff] %v1253_v5  ;;  %1318 = vst [vmem:[%s3273_s5 + $0x60] sm:$0xff] %v1254_v10  ;;  %v1267_v1 = vadd.f32 %v2914_v31, %v2789_v51  ;;  %v1268_v6 = vadd.f32 %v2914_v31, %v2793_v30  ;;  %v1269_v43 = vadd.f32 %v2914_v31, %v2797_v39  ;;  %v3418_v47 = vld [vmem:[#allocation9_spill] sm:$0xff] }
 0x24b   :  { %1319 = vst [vmem:[%s3273_s5 + $0x68] sm:$0xff] %v1255_v41  ;;  %1320 = vst [vmem:[%s3273_s5 + $0x70] sm:$0xff] %v1256_v55  ;;  %v1270_v52 = vadd.f32 %v2914_v31, %v2801_v19  ;;  %v1271_v61 = vadd.f32 %v2914_v31, %v2805_v27  ;;  %v1272_v46 = vadd.f32 %v2914_v31, %v2809_v63 }
 0x24c   :  { %1321 = vst [vmem:[%s3273_s5 + $0x78] sm:$0xff] %v1257_v49  ;;  %1322 = vst [vmem:[%s3273_s5 + $0x80] sm:$0xff] %v1258_v62  ;;  %v1273_v20 = vadd.f32 %v2914_v31, %v2813_v42  ;;  %v1274_v12 = vadd.f32 %v2914_v31, %v2817_v48  ;;  %v1275_v51 = vadd.f32 %v2914_v31, %v2821_v60 }
 0x24d   :  { %1323 = vst [vmem:[%s3273_s5 + $0x88] sm:$0xff] %v1259_v56  ;;  %1324 = vst [vmem:[%s3273_s5 + $0x90] sm:$0xff] %v1260_v34  ;;  %v1276_v30 = vadd.f32 %v2914_v31, %v2825_v13  ;;  %v1277_v39 = vadd.f32 %v2914_v31, %v2829_v21  ;;  %v1278_v19 = vadd.f32 %v2914_v31, %v2833_v35  ;;  %v3411_v35 = vld [vmem:[#allocation2_spill] sm:$0xff] }
 0x24e   :  { %1325 = vst [vmem:[%s3273_s5 + $0x98] sm:$0xff] %v1261_v24  ;;  %1326 = vst [vmem:[%s3273_s5 + $0xa0] sm:$0xff] %v1262_v0  ;;  %v1279_v27 = vadd.f32 %v2914_v31, %v2837_v50  ;;  %v1280_v63 = vadd.f32 %v2914_v31, %v2841_v23  ;;  %v1281_v42 = vadd.f32 %v2914_v31, %v2845_v40  ;;  %v3412_v23 = vld [vmem:[#allocation3_spill] sm:$0xff] }
 0x24f   :  { %1327 = vst [vmem:[%s3273_s5 + $0xa8] sm:$0xff] %v1263_v45  ;;  %1328 = vst [vmem:[%s3273_s5 + $0xb0] sm:$0xff] %v1264_v4  ;;  %v1282_v48 = vadd.f32 %v2914_v31, %v2849_v18  ;;  %v1283_v60 = vadd.f32 %v2914_v31, %v2853_v14  ;;  %v1284_v13 = vadd.f32 %v2914_v31, %v2857_v2  ;;  %v3413_v18 = vld [vmem:[#allocation4_spill] sm:$0xff]  ;;  %v3414_v2 = vld [vmem:[#allocation5_spill] sm:$0xff] }
 0x250   :  { %1329 = vst [vmem:[%s3273_s5 + $0xb8] sm:$0xff] %v1265_v37  ;;  %1330 = vst [vmem:[%s3273_s5 + $0xc0] sm:$0xff] %v1266_v58  ;;  %v1285_v21 = vadd.f32 %v2914_v31, %v2861_v36  ;;  %v1286_v50 = vadd.f32 %v2914_v31, %v3411_v35  ;;  %v1287_v40 = vadd.f32 %v2914_v31, %v3412_v23 }
 0x251   :  { %1331 = vst [vmem:[%s3273_s5 + $0xc8] sm:$0xff] %v1267_v1  ;;  %1332 = vst [vmem:[%s3273_s5 + $0xd0] sm:$0xff] %v1268_v6  ;;  %v1288_v14 = vadd.f32 %v2914_v31, %v3413_v18  ;;  %v1289_v36 = vadd.f32 %v2914_v31, %v3414_v2  ;;  %v1290_v9 = vadd.f32 %v2914_v31, %v3415_v15 }
 0x252   :  { %1333 = vst [vmem:[%s3273_s5 + $0xd8] sm:$0xff] %v1269_v43  ;;  %1334 = vst [vmem:[%s3273_s5 + $0xe0] sm:$0xff] %v1270_v52  ;;  %v1291_v11 = vadd.f32 %v2914_v31, %v3416_v22  ;;  %v1292_v54 = vadd.f32 %v2914_v31, %v2889_v28  ;;  %v1293_v32 = vadd.f32 %v2914_v31, %v2893_v44 }
 0x253   :  { %1335 = vst [vmem:[%s3273_s5 + $0xe8] sm:$0xff] %v1271_v61  ;;  %1336 = vst [vmem:[%s3273_s5 + $0xf0] sm:$0xff] %v1272_v46  ;;  %v1294_v28 = vadd.f32 %v2914_v31, %v2897_v8  ;;  %v1295_v44 = vadd.f32 %v2914_v31, %v2901_v7  ;;  %v1296_v33 = vadd.f32 %v2914_v31, %v2905_v26 }
 0x254   :  { %1337 = vst [vmem:[%s3273_s5 + $0xf8] sm:$0xff] %v1273_v20  ;;  %1338 = vst [vmem:[%s3273_s5 + $0x100] sm:$0xff] %v1274_v12  ;;  %v1297_v3 = vadd.f32 %v2914_v31, %v3417_v16  ;;  %v1298_v8 = vadd.f32 %v2914_v31, %v2918_v53  ;;  %v1299_v7 = vadd.f32 %v2914_v31, %v2922_v57 }
 0x255   :  { %1339 = vst [vmem:[%s3273_s5 + $0x108] sm:$0xff] %v1275_v51  ;;  %1340 = vst [vmem:[%s3273_s5 + $0x110] sm:$0xff] %v1276_v30  ;;  %v1300_v26 = vadd.f32 %v2914_v31, %v2926_v17  ;;  %v1301_v59 = vadd.f32 %v2914_v31, %v3418_v47  ;;  %v1302_v53 = vadd.f32 %v2914_v31, %v2934_v38  ;;  %v3419_v17 = vld [vmem:[#allocation10_spill] sm:$0xff] }
 0x256   :  { %1341 = vst [vmem:[%s3273_s5 + $0x118] sm:$0xff] %v1277_v39  ;;  %1342 = vst [vmem:[%s3273_s5 + $0x120] sm:$0xff] %v1278_v19  ;;  %v1303_v57 = vadd.f32 %v2914_v31, %v2938_v29  ;;  %v1304_v5 = vadd.f32 %v2914_v31, %v3419_v17  ;;  %v1305_v10 = vadd.f32 %v2914_v31, %v2946_v25 }
 0x257   :  { %1343 = vst [vmem:[%s3273_s5 + $0x128] sm:$0xff] %v1279_v27  ;;  %1344 = vst [vmem:[%s3273_s5 + $0x130] sm:$0xff] %v1280_v63 }
 0x258   :  { %1345 = vst [vmem:[%s3273_s5 + $0x138] sm:$0xff] %v1281_v42  ;;  %1346 = vst [vmem:[%s3273_s5 + $0x140] sm:$0xff] %v1282_v48 }
 0x259   :  { %1347 = vst [vmem:[%s3273_s5 + $0x148] sm:$0xff] %v1283_v60  ;;  %1348 = vst [vmem:[%s3273_s5 + $0x150] sm:$0xff] %v1284_v13 }
 0x25a   :  { %1349 = vst [vmem:[%s3273_s5 + $0x158] sm:$0xff] %v1285_v21  ;;  %1350 = vst [vmem:[%s3273_s5 + $0x160] sm:$0xff] %v1286_v50 }
 0x25b   :  { %1351 = vst [vmem:[%s3273_s5 + $0x168] sm:$0xff] %v1287_v40  ;;  %1352 = vst [vmem:[%s3273_s5 + $0x170] sm:$0xff] %v1288_v14 }
 0x25c   :  { %1353 = vst [vmem:[%s3273_s5 + $0x178] sm:$0xff] %v1289_v36  ;;  %1354 = vst [vmem:[%s3273_s5 + $0x180] sm:$0xff] %v1290_v9 }
 0x25d   :  { %1355 = vst [vmem:[%s3273_s5 + $0x188] sm:$0xff] %v1291_v11  ;;  %1356 = vst [vmem:[%s3273_s5 + $0x190] sm:$0xff] %v1292_v54 }
 0x25e   :  { %1357 = vst [vmem:[%s3273_s5 + $0x198] sm:$0xff] %v1293_v32  ;;  %1358 = vst [vmem:[%s3273_s5 + $0x1a0] sm:$0xff] %v1294_v28 }
 0x25f   :  { %1359 = vst [vmem:[%s3273_s5 + $0x1a8] sm:$0xff] %v1295_v44  ;;  %1360 = vst [vmem:[%s3273_s5 + $0x1b0] sm:$0xff] %v1296_v33 }
 0x260   :  { %1361 = vst [vmem:[%s3273_s5 + $0x1b8] sm:$0xff] %v1297_v3  ;;  %1362 = vst [vmem:[%s3273_s5 + $0x1c0] sm:$0xff] %v1298_v8 }
 0x261   :  { %1363 = vst [vmem:[%s3273_s5 + $0x1c8] sm:$0xff] %v1299_v7  ;;  %1364 = vst [vmem:[%s3273_s5 + $0x1d0] sm:$0xff] %v1300_v26 }
 0x262   :  { %1365 = vst [vmem:[%s3273_s5 + $0x1d8] sm:$0xff] %v1301_v59  ;;  %1366 = vst [vmem:[%s3273_s5 + $0x1e0] sm:$0xff] %v1302_v53 }
 0x263   :  { %1367 = vst [vmem:[%s3273_s5 + $0x1e8] sm:$0xff] %v1303_v57  ;;  %1368 = vst [vmem:[%s3273_s5 + $0x1f0] sm:$0xff] %v1304_v5 }
 0x264   :  { %1369 = vst [vmem:[%s3273_s5 + $0x1f8] sm:$0xff] %v1305_v10 }

// kernel: forward.4
= control target key start
LH: loop header
LB: loop body
LE: loop exit
PB: predicated region body
PF: predicated region fallthrough
CT: control target
= control target key end

     0   :  { %s740_s1 = inlined_call_operand.vmem [shape: bf16[128,128], index: 1, kind: input, shape index: {}]   ;;  %s741_s0 = inlined_call_operand.vmem [shape: bf16[128,128], index: 0, kind: input, shape index: {}]   ;;  %s742_s2 = inlined_call_operand.vmem [shape: f32[1,128], index: 2, kind: input, shape index: {}]   ;;  %s743_s3 = inlined_call_operand.vmem [shape: f32[1,128], index: 3, kind: input, shape index: {}]   ;;  %s744_s4 = inlined_call_operand.vmem [shape: f32[1,128], index: 4, kind: input, shape index: {}]   ;;  %s745_s5 = inlined_call_operand.vmem [shape: f32[128,128], index: 5, kind: output, shape index: {}]  }
   0x1   :  { %v545_v0 = vld [vmem:[%s740_s1 + $0x38] sm:$0xff]   ;;  %v546_v1 = vld [vmem:[%s740_s1 + $0x30] sm:$0xff]   ;;  %v547_v2 = vld [vmem:[%s740_s1 + $0x28] sm:$0xff]  }
   0x2   :  { %497 = vmatprep.subr.bf16.mxu0 %v545_v0  ;;  %529 = vmatprep.subr.bf16.mxu1 %v545_v0  ;;  %v548_v3 = vld [vmem:[%s740_s1 + $0x20] sm:$0xff]   ;;  %v549_v6 = vld [vmem:[%s740_s1 + $0x18] sm:$0xff]   ;;  %v550_v7 = vld [vmem:[%s740_s1 + $0x10] sm:$0xff]  }
   0x3   :  { %498 = vmatpush3.bf16.msra.mxu0 %v545_v0  ;;  %537 = vmatpush3.bf16.msra.mxu1 %v545_v0  ;;  %v553_v4 = vld [vmem:[%s741_s0] sm:$0xff]   ;;  %v551_v8 = vld [vmem:[%s740_s1 + $0x8] sm:$0xff]   ;;  %v555_v12 = vld [vmem:[%s741_s0 + $0x10] sm:$0xff]  }
   0x4   :  { %499 = vmatprep.subr.bf16.mxu0 %v546_v1  ;;  %530 = vmatprep.subr.bf16.mxu1 %v546_v1  ;;  %v556_v5 = vld [vmem:[%s741_s0 + $0x20] sm:$0xff]   ;;  %v554_v10 = vld [vmem:[%s741_s0 + $0x8] sm:$0xff]   ;;  %v559_v13 = vld [vmem:[%s741_s0 + $0x30] sm:$0xff]  }
   0x5   :  { %513 = vmatprep.mubr.bf16.mxu0 %v553_v4  ;;  %521 = vmatprep.mubr.bf16.mxu1 %v556_v5  ;;  %v552_v9 = vld [vmem:[%s740_s1] sm:$0xff]   ;;  %v558_v11 = vld [vmem:[%s741_s0 + $0x28] sm:$0xff]   ;;  %v557_v14 = vld [vmem:[%s741_s0 + $0x18] sm:$0xff]  }
   0x6   :  { %v560_v15 = vld [vmem:[%s741_s0 + $0x38] sm:$0xff]   ;;  %v644_v18 = vld [vmem:[%s742_s2] ss:$0 sm:$0xff] }
   0x7   :  { %500 = vmatpush3.bf16.msra.mxu0 %v546_v1  ;;  %538 = vmatpush3.bf16.msra.mxu1 %v546_v1 }
   0x8   :  { %501 = vmatprep.subr.bf16.mxu0 %v547_v2  ;;  %531 = vmatprep.subr.bf16.mxu1 %v547_v2 }
   0xb   :  { %502 = vmatpush3.bf16.msra.mxu0 %v547_v2  ;;  %539 = vmatpush3.bf16.msra.mxu1 %v547_v2 }
   0xc   :  { %503 = vmatprep.subr.bf16.mxu0 %v548_v3  ;;  %532 = vmatprep.subr.bf16.mxu1 %v548_v3 }
   0xf   :  { %504 = vmatpush3.bf16.msra.mxu0 %v548_v3  ;;  %540 = vmatpush3.bf16.msra.mxu1 %v548_v3 }
  0x10   :  { %505 = vmatprep.subr.bf16.mxu0 %v549_v6  ;;  %533 = vmatprep.subr.bf16.mxu1 %v549_v6 }
  0x13   :  { %506 = vmatpush3.bf16.msra.mxu0 %v549_v6  ;;  %541 = vmatpush3.bf16.msra.mxu1 %v549_v6 }
  0x14   :  { %507 = vmatprep.subr.bf16.mxu0 %v550_v7  ;;  %534 = vmatprep.subr.bf16.mxu1 %v550_v7 }
  0x17   :  { %508 = vmatpush3.bf16.msra.mxu0 %v550_v7  ;;  %542 = vmatpush3.bf16.msra.mxu1 %v550_v7 }
  0x18   :  { %509 = vmatprep.subr.bf16.mxu0 %v551_v8  ;;  %535 = vmatprep.subr.bf16.mxu1 %v551_v8 }
  0x1b   :  { %510 = vmatpush3.bf16.msra.mxu0 %v551_v8  ;;  %543 = vmatpush3.bf16.msra.mxu1 %v551_v8 }
  0x1c   :  { %511 = vmatprep.subr.bf16.mxu0 %v552_v9  ;;  %536 = vmatprep.subr.bf16.mxu1 %v552_v9 }
  0x1f   :  { %512 = vmatpush3.bf16.msra.mxu0 %v552_v9  ;;  %544 = vmatpush3.bf16.msra.mxu1 %v552_v9 }
  0x22   :  { %514 = vmatmul.mubr.bf16.vlgmr.msra.gmra.mxu0 %v554_v10  ;;  %522 = vmatmul.mubr.bf16.vlgmr.msra.gmra.mxu1 %v558_v11 }
  0x23   :  { %517 = vmatprep.mubr.bf16.mxu0 %v555_v12  ;;  %525 = vmatprep.mubr.bf16.mxu1 %v559_v13 }
  0x2a   :  { %518 = vmatmul.mubr.bf16.gmra.mxu0 %v557_v14  ;;  %526 = vmatmul.mubr.bf16.gmra.mxu1 %v560_v15 }
  0xe2   :  { %v515_v16 = vpop.f32.mrf.mxu0  ;;  %v523_v17 = vpop.f32.mrf.mxu1 }
  0xe3   :  { %v199_v24 = vadd.f32 %v515_v16, %v644_v18  ;;  %v231_v62 = vadd.f32 %v523_v17, %v644_v18 }
  0xe4   :  { %v190_v19 = vpop.f32.mrf.mxu0  ;;  %v222_v20 = vpop.f32.mrf.mxu1 }
  0xe5   :  { %v191_v21 = vadd.f32 %v644_v18, %v190_v19  ;;  %v271_v31 = vmul.f32 0.2, %v199_v24  ;;  %vm255_vm2 = vcmp.gt.f32.partialorder %v199_v24, 0.0  ;;  %v223_v50 = vadd.f32 %v644_v18, %v222_v20 }
  0xe6   :  { %v516_v22 = vpop.f32.mrf.mxu0  ;;  %v524_v23 = vpop.f32.mrf.mxu1  ;;  %v279_v6 = vmul.f32 0.2, %v231_v62  ;;  %vm263_vm10 = vcmp.gt.f32.partialorder %v231_v62, 0.0 }
  0xe7   :  { %v269_v26 = vmul.f32 0.2, %v191_v21  ;;  %v202_v27 = vadd.f32 %v516_v22, %v644_v18  ;;  %vm253_vm0 = vcmp.gt.f32.partialorder %v191_v21, 0.0  ;;  %v657_v41 = vsel %vm255_vm2, %v199_v24, %v271_v31 }
  0xe8   :  { %v193_v25 = vpop.f32.mrf.mxu0  ;;  %v225_v30 = vpop.f32.mrf.mxu1  ;;  %v277_v63 = vmul.f32 0.2, %v223_v50  ;;  %vm261_vm8 = vcmp.gt.f32.partialorder %v223_v50, 0.0  ;;  %v234_v2 = vadd.f32 %v524_v23, %v644_v18  ;;  %v295_v14 = vsel %vm263_vm10, %v231_v62, %v279_v6 }
  0xe9   :  { %v194_v28 = vadd.f32 %v644_v18, %v193_v25  ;;  %v650_v34 = vsel %vm253_vm0, %v191_v21, %v269_v26  ;;  %v272_v35 = vmul.f32 0.2, %v202_v27  ;;  %vm256_vm3 = vcmp.gt.f32.partialorder %v202_v27, 0.0 }
  0xea   :  { %v519_v29 = vpop.f32.mrf.mxu0  ;;  %v527_v40 = vpop.f32.mrf.mxu1  ;;  %v226_v58 = vadd.f32 %v644_v18, %v225_v30  ;;  %v293_v7 = vsel %vm261_vm8, %v223_v50, %v277_v63  ;;  %v280_v10 = vmul.f32 0.2, %v234_v2  ;;  %vm264_vm11 = vcmp.gt.f32.partialorder %v234_v2, 0.0 }
  0xeb   :  { %vm254_vm1 = vcmp.gt.f32.partialorder %v194_v28, 0.0  ;;  %v270_v32 = vmul.f32 0.2, %v194_v28  ;;  %v215_v42 = vadd.f32 %v519_v29, %v644_v18  ;;  %v661_v46 = vsel %vm256_vm3, %v202_v27, %v272_v35 }
  0xec   :  { %v206_v33 = vpop.f32.mrf.mxu0  ;;  %v238_v51 = vpop.f32.mrf.mxu1  ;;  %v278_v3 = vmul.f32 0.2, %v226_v58  ;;  %vm262_vm9 = vcmp.gt.f32.partialorder %v226_v58, 0.0  ;;  %v247_v15 = vadd.f32 %v527_v40, %v644_v18  ;;  %v296_v19 = vsel %vm264_vm11, %v234_v2, %v280_v10 }
  0xed   :  { %v652_v36 = vsel %vm254_vm1, %v194_v28, %v270_v32  ;;  %v207_v37 = vadd.f32 %v644_v18, %v206_v33  ;;  %v275_v52 = vmul.f32 0.2, %v215_v42  ;;  %vm259_vm6 = vcmp.gt.f32.partialorder %v215_v42, 0.0 }
  0xee   :  { %v301_v38 = vadd.f32 %v652_v36, %v650_v34  ;;  %v520_v39 = vpop.f32.mrf.mxu0  ;;  %v528_v60 = vpop.f32.mrf.mxu1  ;;  %v239_v8 = vadd.f32 %v644_v18, %v238_v51  ;;  %v294_v11 = vsel %vm262_vm9, %v226_v58, %v278_v3  ;;  %v283_v23 = vmul.f32 0.2, %v247_v15 }
  0xef   :  { %v273_v43 = vmul.f32 0.2, %v207_v37  ;;  %vm257_vm4 = vcmp.gt.f32.partialorder %v207_v37, 0.0  ;;  %v218_v47 = vadd.f32 %v520_v39, %v644_v18  ;;  %v291_v61 = vsel %vm259_vm6, %v215_v42, %v275_v52 }
  0xf0   :  { %v302_v44 = vadd.f32 %v301_v38, %v657_v41  ;;  %v209_v45 = vpop.f32.mrf.mxu0  ;;  %v241_v5 = vpop.f32.mrf.mxu1  ;;  %v281_v16 = vmul.f32 0.2, %v239_v8  ;;  %vm265_vm12 = vcmp.gt.f32.partialorder %v239_v8, 0.0  ;;  %v250_v20 = vadd.f32 %v528_v60, %v644_v18 }
  0xf1   :  { %v210_v48 = vadd.f32 %v644_v18, %v209_v45  ;;  %v667_v53 = vsel %vm257_vm4, %v207_v37, %v273_v43  ;;  %v276_v56 = vmul.f32 0.2, %v218_v47  ;;  %vm260_vm7 = vcmp.gt.f32.partialorder %v218_v47, 0.0 }
  0xf2   :  { %v303_v49 = vadd.f32 %v302_v44, %v661_v46  ;;  %v242_v12 = vadd.f32 %v644_v18, %v241_v5  ;;  %v297_v24 = vsel %vm265_vm12, %v239_v8, %v281_v16  ;;  %vm267_vm14 = vcmp.gt.f32.partialorder %v247_v15, 0.0 }
  0xf3   :  { %vm258_vm5 = vcmp.gt.f32.partialorder %v210_v48, 0.0  ;;  %v274_v54 = vmul.f32 0.2, %v210_v48  ;;  %v292_v1 = vsel %vm260_vm7, %v218_v47, %v276_v56  ;;  %v284_v26 = vmul.f32 0.2, %v250_v20 }
  0xf4   :  { %v304_v55 = vadd.f32 %v303_v49, %v667_v53  ;;  %v282_v21 = vmul.f32 0.2, %v242_v12  ;;  %vm266_vm13 = vcmp.gt.f32.partialorder %v242_v12, 0.0  ;;  %vm268_vm15 = vcmp.gt.f32.partialorder %v250_v20, 0.0 }
  0xf5   :  { %v670_v57 = vsel %vm258_vm5, %v210_v48, %v274_v54  ;;  %v299_v29 = vsel %vm267_vm14, %v247_v15, %v283_v23  ;;  %v300_v31 = vsel %vm268_vm15, %v250_v20, %v284_v26 }
  0xf6   :  { %v305_v59 = vadd.f32 %v304_v55, %v670_v57  ;;  %v298_v27 = vsel %vm266_vm13, %v242_v12, %v282_v21 }
  0xf8   :  { %v306_v0 = vadd.f32 %v305_v59, %v291_v61 }
  0xfa   :  { %v307_v4 = vadd.f32 %v306_v0, %v292_v1 }
  0xfc   :  { %v308_v9 = vadd.f32 %v307_v4, %v293_v7 }
  0xfe   :  { %v309_v13 = vadd.f32 %v308_v9, %v294_v11 }
 0x100   :  { %v310_v17 = vadd.f32 %v309_v13, %v295_v14 }
 0x102   :  { %v311_v22 = vadd.f32 %v310_v17, %v296_v19 }
 0x104   :  { %v312_v25 = vadd.f32 %v311_v22, %v297_v24 }
 0x106   :  { %v313_v28 = vadd.f32 %v312_v25, %v298_v27 }
 0x108   :  { %v314_v30 = vadd.f32 %v313_v28, %v299_v29 }
 0x10a   :  { %v315_v32 = vadd.f32 %v314_v30, %v300_v31 }
 0x10c   :  { %v316_v33 = vrot.slane %v315_v32, 4 }
 0x10e   :  { %v317_v35 = vadd.f32 %v316_v33, %v315_v32 }
 0x110   :  { %v318_v37 = vrot.slane %v317_v35, 2 }
 0x112   :  { %v319_v38 = vadd.f32 %v318_v37, %v317_v35 }
 0x114   :  { %v320_v18 = vrot.slane %v319_v38, 1 }
 0x116   :  { %v321_v39 = vadd.f32 %v320_v18, %v319_v38 }
 0x118   :  { %v323_v40 = vmul.f32 0.0078125, %v321_v39 }
 0x11a   :  { %v324_v42 = vsub.f32 %v650_v34, %v323_v40  ;;  %v325_v43 = vsub.f32 %v652_v36, %v323_v40  ;;  %v326_v44 = vsub.f32 %v657_v41, %v323_v40  ;;  %v327_v48 = vsub.f32 %v661_v46, %v323_v40 }
 0x11b   :  { %v328_v49 = vsub.f32 %v667_v53, %v323_v40  ;;  %v329_v52 = vsub.f32 %v670_v57, %v323_v40  ;;  %v330_v56 = vsub.f32 %v291_v61, %v323_v40  ;;  %v331_v34 = vsub.f32 %v292_v1, %v323_v40 }
 0x11c   :  { %v340_v45 = vmul.f32 %v324_v42, %v324_v42  ;;  %v341_v47 = vmul.f32 %v325_v43, %v325_v43  ;;  %v342_v50 = vmul.f32 %v326_v44, %v326_v44  ;;  %v343_v54 = vmul.f32 %v327_v48, %v327_v48 }
 0x11d   :  { %v344_v58 = vmul.f32 %v328_v49, %v328_v49  ;;  %v345_v60 = vmul.f32 %v329_v52, %v329_v52  ;;  %v332_v62 = vsub.f32 %v293_v7, %v323_v40  ;;  %v346_v41 = vmul.f32 %v330_v56, %v330_v56 }
 0x11e   :  { %v356_v51 = vadd.f32 %v341_v47, %v340_v45  ;;  %v333_v0 = vsub.f32 %v294_v11, %v323_v40  ;;  %v347_v2 = vmul.f32 %v331_v34, %v331_v34  ;;  %v334_v3 = vsub.f32 %v295_v14, %v323_v40  ;;  %v479_v45 = vld [vmem:[%s743_s3] ss:$0 sm:$0xff] }
 0x11f   :  { %v348_v53 = vmul.f32 %v332_v62, %v332_v62  ;;  %v335_v5 = vsub.f32 %v296_v19, %v323_v40  ;;  %v336_v8 = vsub.f32 %v297_v24, %v323_v40  ;;  %v337_v10 = vsub.f32 %v298_v27, %v323_v40 }
 0x120   :  { %v357_v55 = vadd.f32 %v356_v51, %v342_v50  ;;  %v349_v6 = vmul.f32 %v333_v0, %v333_v0  ;;  %v350_v9 = vmul.f32 %v334_v3, %v334_v3  ;;  %v338_v13 = vsub.f32 %v299_v29, %v323_v40 }
 0x121   :  { %v351_v12 = vmul.f32 %v335_v5, %v335_v5  ;;  %v352_v15 = vmul.f32 %v336_v8, %v336_v8  ;;  %v339_v16 = vsub.f32 %v300_v31, %v323_v40  ;;  %v353_v17 = vmul.f32 %v337_v10, %v337_v10 }
 0x122   :  { %v358_v59 = vadd.f32 %v357_v55, %v343_v54  ;;  %v354_v20 = vmul.f32 %v338_v13, %v338_v13 }
 0x123   :  { %v355_v14 = vmul.f32 %v339_v16, %v339_v16 }
 0x124   :  { %v359_v36 = vadd.f32 %v358_v59, %v344_v58 }
 0x126   :  { %v360_v63 = vadd.f32 %v359_v36, %v345_v60  ;;  %v480_v36 = vld [vmem:[%s744_s4] ss:$0 sm:$0xff] }
 0x128   :  { %v361_v46 = vadd.f32 %v360_v63, %v346_v41 }
 0x12a   :  { %v362_v4 = vadd.f32 %v361_v46, %v347_v2 }
 0x12c   :  { %v363_v57 = vadd.f32 %v362_v4, %v348_v53 }
 0x12e   :  { %v364_v61 = vadd.f32 %v363_v57, %v349_v6 }
 0x130   :  { %v365_v1 = vadd.f32 %v364_v61, %v350_v9 }
 0x132   :  { %v366_v7 = vadd.f32 %v365_v1, %v351_v12 }
 0x134   :  { %v367_v11 = vadd.f32 %v366_v7, %v352_v15 }
 0x136   :  { %v368_v21 = vadd.f32 %v367_v11, %v353_v17 }
 0x138   :  { %v369_v22 = vadd.f32 %v368_v21, %v354_v20 }
 0x13a   :  { %v370_v23 = vadd.f32 %v369_v22, %v355_v14 }
 0x13c   :  { %v371_v19 = vrot.slane %v370_v23, 4 }
 0x13e   :  { %v372_v25 = vadd.f32 %v371_v19, %v370_v23 }
 0x140   :  { %v373_v26 = vrot.slane %v372_v25, 2 }
 0x142   :  { %v374_v24 = vadd.f32 %v373_v26, %v372_v25 }
 0x144   :  { %v375_v28 = vrot.slane %v374_v24, 1 }
 0x146   :  { %v376_v30 = vadd.f32 %v375_v28, %v374_v24 }
 0x148   :  { %v377_v27 = vmul.f32 0.0078125, %v376_v30 }
 0x14a   :  { %v378_v32 = vadd.f32 1e-05, %v377_v27 }
 0x14c   :  { %561 = vrsqrt.f32 %v378_v32 }
 0x159   :  { %v562_v29 = vpop.eup %561 }
 0x15a   :  { %v380_v33 = vmul.f32 %v562_v29, %v324_v42  ;;  %v381_v35 = vmul.f32 %v562_v29, %v325_v43  ;;  %v382_v31 = vmul.f32 %v562_v29, %v326_v44  ;;  %v383_v37 = vmul.f32 %v562_v29, %v327_v48 }
 0x15b   :  { %v384_v38 = vmul.f32 %v562_v29, %v328_v49  ;;  %v385_v18 = vmul.f32 %v562_v29, %v329_v52  ;;  %v386_v39 = vmul.f32 %v562_v29, %v330_v56  ;;  %v387_v40 = vmul.f32 %v562_v29, %v331_v34 }
 0x15c   :  { %v388_v47 = vmul.f32 %v562_v29, %v332_v62  ;;  %v389_v50 = vmul.f32 %v562_v29, %v333_v0  ;;  %v390_v51 = vmul.f32 %v562_v29, %v334_v3  ;;  %v391_v54 = vmul.f32 %v562_v29, %v335_v5 }
 0x15d   :  { %v392_v55 = vmul.f32 %v562_v29, %v336_v8  ;;  %v393_v58 = vmul.f32 %v562_v29, %v337_v10  ;;  %v394_v59 = vmul.f32 %v562_v29, %v338_v13  ;;  %v395_v60 = vmul.f32 %v562_v29, %v339_v16 }
 0x15e   :  { %v403_v42 = vmul.f32 %v479_v45, %v380_v33  ;;  %v404_v43 = vmul.f32 %v479_v45, %v381_v35  ;;  %v405_v44 = vmul.f32 %v479_v45, %v382_v31  ;;  %v406_v48 = vmul.f32 %v479_v45, %v383_v37 }
 0x15f   :  { %v407_v49 = vmul.f32 %v479_v45, %v384_v38  ;;  %v408_v52 = vmul.f32 %v479_v45, %v385_v18  ;;  %v409_v56 = vmul.f32 %v479_v45, %v386_v39  ;;  %v410_v34 = vmul.f32 %v479_v45, %v387_v40 }
 0x160   :  { %v411_v62 = vmul.f32 %v479_v45, %v388_v47  ;;  %v412_v41 = vmul.f32 %v479_v45, %v389_v50  ;;  %v413_v63 = vmul.f32 %v479_v45, %v390_v51  ;;  %v414_v0 = vmul.f32 %v479_v45, %v391_v54 }
 0x161   :  { %v415_v2 = vmul.f32 %v479_v45, %v392_v55  ;;  %v416_v46 = vmul.f32 %v479_v45, %v393_v58  ;;  %v417_v3 = vmul.f32 %v479_v45, %v394_v59  ;;  %v418_v53 = vmul.f32 %v479_v45, %v395_v60 }
 0x162   :  { %v426_v4 = vadd.f32 %v480_v36, %v403_v42  ;;  %v427_v5 = vadd.f32 %v480_v36, %v404_v43  ;;  %v428_v6 = vadd.f32 %v480_v36, %v405_v44  ;;  %v429_v57 = vadd.f32 %v480_v36, %v406_v48 }
 0x163   :  { %v430_v8 = vadd.f32 %v480_v36, %v407_v49  ;;  %v431_v9 = vadd.f32 %v480_v36, %v408_v52  ;;  %v432_v61 = vadd.f32 %v480_v36, %v409_v56  ;;  %v433_v10 = vadd.f32 %v480_v36, %v410_v34 }
 0x164   :  { %v434_v12 = vadd.f32 %v480_v36, %v411_v62  ;;  %v435_v1 = vadd.f32 %v480_v36, %v412_v41  ;;  %v436_v13 = vadd.f32 %v480_v36, %v413_v63  ;;  %v437_v15 = vadd.f32 %v480_v36, %v414_v0  ;;  %442 = vst [vmem:[%s745_s5] sm:$0xff] %v426_v4 }
 0x165   :  { %443 = vst [vmem:[%s745_s5 + $0x8] sm:$0xff] %v427_v5  ;;  %444 = vst [vmem:[%s745_s5 + $0x10] sm:$0xff] %v428_v6  ;;  %v438_v7 = vadd.f32 %v480_v36, %v415_v2  ;;  %v439_v16 = vadd.f32 %v480_v36, %v416_v46  ;;  %v440_v17 = vadd.f32 %v480_v36, %v417_v3 }
 0x166   :  { %445 = vst [vmem:[%s745_s5 + $0x18] sm:$0xff] %v429_v57  ;;  %v441_v11 = vadd.f32 %v480_v36, %v418_v53  ;;  %446 = vst [vmem:[%s745_s5 + $0x20] sm:$0xff] %v430_v8 }
 0x167   :  { %447 = vst [vmem:[%s745_s5 + $0x28] sm:$0xff] %v431_v9  ;;  %448 = vst [vmem:[%s745_s5 + $0x30] sm:$0xff] %v432_v61 }
 0x168   :  { %449 = vst [vmem:[%s745_s5 + $0x38] sm:$0xff] %v433_v10  ;;  %450 = vst [vmem:[%s745_s5 + $0x40] sm:$0xff] %v434_v12 }
 0x169   :  { %451 = vst [vmem:[%s745_s5 + $0x48] sm:$0xff] %v435_v1  ;;  %452 = vst [vmem:[%s745_s5 + $0x50] sm:$0xff] %v436_v13 }
 0x16a   :  { %453 = vst [vmem:[%s745_s5 + $0x58] sm:$0xff] %v437_v15  ;;  %454 = vst [vmem:[%s745_s5 + $0x60] sm:$0xff] %v438_v7 }
 0x16b   :  { %455 = vst [vmem:[%s745_s5 + $0x68] sm:$0xff] %v439_v16  ;;  %456 = vst [vmem:[%s745_s5 + $0x70] sm:$0xff] %v440_v17 }
 0x16c   :  { %457 = vst [vmem:[%s745_s5 + $0x78] sm:$0xff] %v441_v11 }

// kernel: forward.5
= control target key start
LH: loop header
LB: loop body
LE: loop exit
PB: predicated region body
PF: predicated region fallthrough
CT: control target
= control target key end

     0   :  { %s3811_s0 = inlined_call_operand.vmem [shape: bf16[32,256], index: 0, kind: input, shape index: {}]   ;;  %s3812_s1 = inlined_call_operand.vmem [shape: bf16[256,128], index: 1, kind: input, shape index: {}]   ;;  %s3813_s2 = inlined_call_operand.vmem [shape: f32[1,128], index: 2, kind: input, shape index: {}]   ;;  %s3814_s3 = inlined_call_operand.vmem [shape: f32[1,128], index: 3, kind: input, shape index: {}]   ;;  %s3815_s4 = inlined_call_operand.vmem [shape: f32[1,128], index: 4, kind: input, shape index: {}]   ;;  %s3816_s5 = inlined_call_operand.vmem [shape: bf16[16,128,128], index: 5, kind: input, shape index: {}]   ;;  %s3817_s6 = inlined_call_operand.vmem [shape: f32[1,128], index: 6, kind: input, shape index: {}]   ;;  %s3818_s7 = inlined_call_operand.hbm [shape: f32[2,128], index: 7, kind: output, shape index: {}]  }
   0x1   :  { %v2945_v0 = vld [vmem:[%s3812_s1 + $0x78] sm:$0xff]   ;;  %v2947_v2 = vld [vmem:[%s3812_s1 + $0x70] sm:$0xff]   ;;  %v2949_v4 = vld [vmem:[%s3812_s1 + $0x68] sm:$0xff]  }
   0x2   :  { %v2946_v1 = vld [vmem:[%s3812_s1 + $0x38] sm:$0xff]   ;;  %2450 = vmatprep.subr.bf16.mxu0 %v2945_v0  ;;  %v2948_v3 = vld [vmem:[%s3812_s1 + $0x30] sm:$0xff]   ;;  %v2950_v5 = vld [vmem:[%s3812_s1 + $0x28] sm:$0xff]  }
   0x3   :  { %2451 = vmatpush3.bf16.msra.mxu0 %v2946_v1  ;;  %v2951_v6 = vld [vmem:[%s3812_s1 + $0x60] sm:$0xff]   ;;  %v2953_v8 = vld [vmem:[%s3812_s1 + $0x58] sm:$0xff]   ;;  %v2955_v10 = vld [vmem:[%s3812_s1 + $0x50] sm:$0xff]  }
   0x4   :  { %2452 = vmatprep.subr.bf16.mxu0 %v2947_v2  ;;  %v2952_v7 = vld [vmem:[%s3812_s1 + $0x20] sm:$0xff]   ;;  %v2954_v9 = vld [vmem:[%s3812_s1 + $0x18] sm:$0xff]   ;;  %v2956_v12 = vld [vmem:[%s3812_s1 + $0x10] sm:$0xff]  }
   0x5   :  { %v2963_v11 = vld [vmem:[%s3811_s0 + $0x4] ss:$8 sps:$4 sm:$0xff]   ;;  %v2961_v17 = vld [vmem:[%s3811_s0] ss:$8 sps:$4 sm:$0xff]   ;;  %v2964_v18 = vld [vmem:[%s3811_s0 + $0x14] ss:$8 sps:$4 sm:$0xff]  }
   0x6   :  { %v2957_v13 = vld [vmem:[%s3812_s1 + $0x48] sm:$0xff]   ;;  %219 = vmatprep.mubr.bf16.mxu0 %v2963_v11  ;;  %v2959_v15 = vld [vmem:[%s3812_s1 + $0x40] sm:$0xff]   ;;  %v2966_v19 = vld [vmem:[%s3811_s0 + $0x10] ss:$8 sps:$4 sm:$0xff]  }
   0x7   :  { %2453 = vmatpush3.bf16.msra.mxu0 %v2948_v3  ;;  %v2958_v14 = vld [vmem:[%s3812_s1 + $0x8] sm:$0xff]   ;;  %v2960_v16 = vld [vmem:[%s3812_s1] sm:$0xff]  }
   0x8   :  { %2454 = vmatprep.subr.bf16.mxu0 %v2949_v4 }
   0xb   :  { %2455 = vmatpush3.bf16.msra.mxu0 %v2950_v5 }
   0xc   :  { %2456 = vmatprep.subr.bf16.mxu0 %v2951_v6 }
   0xf   :  { %2457 = vmatpush3.bf16.msra.mxu0 %v2952_v7 }
  0x10   :  { %2458 = vmatprep.subr.bf16.mxu0 %v2953_v8 }
  0x13   :  { %2459 = vmatpush3.bf16.msra.mxu0 %v2954_v9 }
  0x14   :  { %2460 = vmatprep.subr.bf16.mxu0 %v2955_v10 }
  0x17   :  { %2461 = vmatpush3.bf16.msra.mxu0 %v2956_v12 }
  0x18   :  { %2462 = vmatprep.subr.bf16.mxu0 %v2957_v13 }
  0x1b   :  { %2463 = vmatpush3.bf16.msra.mxu0 %v2958_v14 }
  0x1c   :  { %2464 = vmatprep.subr.bf16.mxu0 %v2959_v15 }
  0x1f   :  { %2465 = vmatpush3.bf16.msra.mxu0 %v2960_v16 }
  0x22   :  { %220 = vmatmul.mubr.bf16.vlgmr.msra.gmra.mxu0 %v2961_v17 }
  0x23   :  { %227 = vmatprep.mubr.bf16.mxu0 %v2964_v18 }
  0x2a   :  { %228 = vmatmul.mubr.bf16.gmra.mxu0 %v2966_v19 }
  0x2b   :  { %12 = vsyncpa [#allocation3], 0  ;;  %v2967_v20 = vld [vmem:[%s3816_s5 + $0x38] sm:$0xff]   ;;  %v3119_v21 = vmov 0.0   ;;  %v2969_v23 = vld [vmem:[%s3816_s5 + $0x30] sm:$0xff]   ;;  %vm3120_vm0 = vmmov 0  }
  0x2c   :  { %2622 = vmatprep.subr.bf16.mxu1 %v3119_v21  ;;  %2642 = vmatprep.subr.bf16.mxu0 %v3119_v21  ;;  %v2968_v22 = vld [vmem:[%s3816_s5 + $0x78] sm:$0xff]   ;;  %v2970_v24 = vld [vmem:[%s3816_s5 + $0x70] sm:$0xff]   ;;  %v2971_v25 = vld [vmem:[%s3816_s5 + $0x28] sm:$0xff]  }
  0x2d   :  { %2623 = vmatpush3.bf16.msra.mxu1 %v2967_v20  ;;  %2643 = vmatpush3.bf16.msra.mxu0 %v2968_v22  ;;  %v2972_v26 = vld [vmem:[%s3816_s5 + $0x68] sm:$0xff]   ;;  %v2973_v27 = vld [vmem:[%s3816_s5 + $0x20] sm:$0xff]   ;;  %v2975_v29 = vld [vmem:[%s3816_s5 + $0x18] sm:$0xff]  }
  0x2e   :  { %2624 = vmatprep.subr.bf16.mxu1 %v3119_v21  ;;  %2644 = vmatprep.subr.bf16.mxu0 %v3119_v21  ;;  %v2974_v28 = vld [vmem:[%s3816_s5 + $0x60] sm:$0xff]   ;;  %v2976_v30 = vld [vmem:[%s3816_s5 + $0x58] sm:$0xff]   ;;  %v2977_v31 = vld [vmem:[%s3816_s5 + $0x10] sm:$0xff]  }
  0x2f   :  { %v2978_v32 = vld [vmem:[%s3816_s5 + $0x50] sm:$0xff]   ;;  %v2979_v33 = vld [vmem:[%s3816_s5 + $0x8] sm:$0xff]   ;;  %v2981_v35 = vld [vmem:[%s3816_s5] sm:$0xff]   ;;  %2638 = vmatprep.mubr.msk.bf16.mxu1 %vm3120_vm0, %v3119_v21  ;;  %2658 = vmatprep.mubr.msk.bf16.mxu0 %vm3120_vm0, %v3119_v21 }
  0x30   :  { %v2980_v34 = vld [vmem:[%s3816_s5 + $0x48] sm:$0xff]   ;;  %v2982_v36 = vld [vmem:[%s3816_s5 + $0x40] sm:$0xff]  }
  0x31   :  { %2625 = vmatpush3.bf16.msra.mxu1 %v2969_v23  ;;  %2645 = vmatpush3.bf16.msra.mxu0 %v2970_v24  ;;  %v2058_v41 = vld [vmem:[%s3813_s2] ss:$0 sm:$0xff] }
  0x32   :  { %2626 = vmatprep.subr.bf16.mxu1 %v3119_v21  ;;  %2646 = vmatprep.subr.bf16.mxu0 %v3119_v21 }
  0x35   :  { %2627 = vmatpush3.bf16.msra.mxu1 %v2971_v25  ;;  %2647 = vmatpush3.bf16.msra.mxu0 %v2972_v26 }
  0x36   :  { %2628 = vmatprep.subr.bf16.mxu1 %v3119_v21  ;;  %2648 = vmatprep.subr.bf16.mxu0 %v3119_v21 }
  0x39   :  { %2629 = vmatpush3.bf16.msra.mxu1 %v2973_v27  ;;  %2649 = vmatpush3.bf16.msra.mxu0 %v2974_v28 }
  0x3a   :  { %2630 = vmatprep.subr.bf16.mxu1 %v3119_v21  ;;  %2650 = vmatprep.subr.bf16.mxu0 %v3119_v21 }
  0x3d   :  { %2631 = vmatpush3.bf16.msra.mxu1 %v2975_v29  ;;  %2651 = vmatpush3.bf16.msra.mxu0 %v2976_v30  ;;  %v2079_v29 = vld [vmem:[%s3814_s3] ss:$0 sm:$0xff] }
  0x3e   :  { %2632 = vmatprep.subr.bf16.mxu1 %v3119_v21  ;;  %2652 = vmatprep.subr.bf16.mxu0 %v3119_v21 }
  0x41   :  { %2633 = vmatpush3.bf16.msra.mxu1 %v2977_v31  ;;  %2653 = vmatpush3.bf16.msra.mxu0 %v2978_v32 }
  0x42   :  { %2634 = vmatprep.subr.bf16.mxu1 %v3119_v21  ;;  %2654 = vmatprep.subr.bf16.mxu0 %v3119_v21 }
  0x45   :  { %2635 = vmatpush3.bf16.msra.mxu1 %v2979_v33  ;;  %2655 = vmatpush3.bf16.msra.mxu0 %v2980_v34  ;;  %v2080_v34 = vld [vmem:[%s3815_s4] ss:$0 sm:$0xff] }
  0x46   :  { %2636 = vmatprep.subr.bf16.mxu1 %v3119_v21  ;;  %2656 = vmatprep.subr.bf16.mxu0 %v3119_v21 }
  0x49   :  { %2637 = vmatpush3.bf16.msra.mxu1 %v2981_v35  ;;  %2657 = vmatpush3.bf16.msra.mxu0 %v2982_v36 }
  0x4a   :  { %2662 = vmatprep.subr.bf16.mxu1 %v3119_v21  ;;  %2682 = vmatprep.subr.bf16.mxu0 %v3119_v21 }
  0xe2   :  { %v2466_v37 = vpop.f32.mrf.mxu0 }
  0xe4   :  { %v2467_v38 = vpop.f32.mrf.mxu0 }
  0xe5   :  { %v2468_v40 = vadd.f32 %v2467_v38, %v2466_v37 }
  0xe6   :  { %v2469_v39 = vpop.f32.mrf.mxu0 }
  0xe7   :  { %v222_v45 = vadd.f32 %v2468_v40, %v2058_v41 }
  0xe8   :  { %v2470_v42 = vpop.f32.mrf.mxu0 }
  0xe9   :  { %v2471_v43 = vadd.f32 %v2470_v42, %v2469_v39  ;;  %v240_v51 = vmul.f32 0.2, %v222_v45  ;;  %vm236_vm2 = vcmp.gt.f32.partialorder %v222_v45, 0.0 }
  0xea   :  { %v2472_v44 = vpop.f32.mrf.mxu0 }
  0xeb   :  { %v225_v46 = vadd.f32 %v2471_v43, %v2058_v41  ;;  %v244_v57 = vsel %vm236_vm2, %v222_v45, %v240_v51  ;;  %v2983_v43 = vld [vmem:[%s3816_s5 + $0xb8] sm:$0xff]   ;;  %v2989_v51 = vld [vmem:[%s3816_s5 + $0xa0] sm:$0xff]  }
  0xec   :  { %v2473_v47 = vpop.f32.mrf.mxu0  ;;  %v2984_v45 = vld [vmem:[%s3816_s5 + $0xf8] sm:$0xff]  }
  0xed   :  { %v241_v48 = vmul.f32 0.2, %v225_v46  ;;  %v2474_v49 = vadd.f32 %v2473_v47, %v2472_v44  ;;  %vm237_vm1 = vcmp.gt.f32.partialorder %v225_v46, 0.0  ;;  %v2985_v47 = vld [vmem:[%s3816_s5 + $0xb0] sm:$0xff]  }
  0xee   :  { %v2475_v50 = vpop.f32.mrf.mxu0 }
  0xef   :  { %v230_v52 = vadd.f32 %v2474_v49, %v2058_v41  ;;  %v245_v54 = vsel %vm237_vm1, %v225_v46, %v241_v48  ;;  %v2986_v48 = vld [vmem:[%s3816_s5 + $0xf0] sm:$0xff]   ;;  %v2987_v49 = vld [vmem:[%s3816_s5 + $0xa8] sm:$0xff]  }
  0xf0   :  { %v2476_v53 = vpop.f32.mrf.mxu0  ;;  %v248_v60 = vadd.f32 %v245_v54, %v244_v57 }
  0xf1   :  { %vm238_vm3 = vcmp.gt.f32.partialorder %v230_v52, 0.0  ;;  %v242_v55 = vmul.f32 0.2, %v230_v52  ;;  %v2477_v56 = vadd.f32 %v2476_v53, %v2475_v50  ;;  %v2988_v50 = vld [vmem:[%s3816_s5 + $0xe8] sm:$0xff]   ;;  %v2991_v53 = vld [vmem:[%s3816_s5 + $0x98] sm:$0xff]  }
  0xf3   :  { %v246_v58 = vsel %vm238_vm3, %v230_v52, %v242_v55  ;;  %v233_v59 = vadd.f32 %v2477_v56, %v2058_v41  ;;  %v2990_v52 = vld [vmem:[%s3816_s5 + $0xe0] sm:$0xff]   ;;  %v2993_v55 = vld [vmem:[%s3816_s5 + $0x90] sm:$0xff]  }
  0xf4   :  { %v249_v62 = vadd.f32 %v248_v60, %v246_v58  ;;  %v2994_v56 = vld [vmem:[%s3816_s5 + $0xd0] sm:$0xff]   ;;  %v2998_v60 = vld [vmem:[%s3816_s5 + $0xc0] sm:$0xff]  }
  0xf5   :  { %vm239_vm4 = vcmp.gt.f32.partialorder %v233_v59, 0.0  ;;  %v243_v61 = vmul.f32 0.2, %v233_v59 }
  0xf7   :  { %v247_v63 = vsel %vm239_vm4, %v233_v59, %v243_v61  ;;  %v2997_v59 = vld [vmem:[%s3816_s5 + $0x80] sm:$0xff]   ;;  %v2999_v61 = vld [vmem:[%s3816_s5 + $0x138] sm:$0xff]  }
  0xf8   :  { %v250_v0 = vadd.f32 %v249_v62, %v247_v63 }
  0xfa   :  { %v251_v1 = vrot.slane %v250_v0, 4 }
  0xfc   :  { %v252_v2 = vadd.f32 %v251_v1, %v250_v0  ;;  %v3001_v1 = vld [vmem:[%s3816_s5 + $0x130] sm:$0xff]  }
  0xfe   :  { %v253_v3 = vrot.slane %v252_v2, 2 }
 0x100   :  { %v254_v4 = vadd.f32 %v253_v3, %v252_v2  ;;  %v3002_v2 = vld [vmem:[%s3816_s5 + $0x170] sm:$0xff]   ;;  %v3003_v3 = vld [vmem:[%s3816_s5 + $0x128] sm:$0xff]  }
 0x102   :  { %v255_v5 = vrot.slane %v254_v4, 1 }
 0x104   :  { %v256_v6 = vadd.f32 %v255_v5, %v254_v4  ;;  %v3004_v4 = vld [vmem:[%s3816_s5 + $0x168] sm:$0xff]   ;;  %v3005_v5 = vld [vmem:[%s3816_s5 + $0x120] sm:$0xff]  }
 0x106   :  { %v258_v7 = vmul.f32 0.03125, %v256_v6  ;;  %v3006_v6 = vld [vmem:[%s3816_s5 + $0x160] sm:$0xff]  }
 0x108   :  { %v259_v8 = vsub.f32 %v244_v57, %v258_v7  ;;  %v260_v9 = vsub.f32 %v245_v54, %v258_v7  ;;  %v261_v10 = vsub.f32 %v246_v58, %v258_v7  ;;  %v262_v11 = vsub.f32 %v247_v63, %v258_v7  ;;  %v2992_v54 = vld [vmem:[%s3816_s5 + $0xd8] sm:$0xff]   ;;  %v2995_v57 = vld [vmem:[%s3816_s5 + $0x88] sm:$0xff]  }
 0x109   :  { %v2996_v58 = vld [vmem:[%s3816_s5 + $0xc8] sm:$0xff]   ;;  %v3000_v63 = vld [vmem:[%s3816_s5 + $0x178] sm:$0xff]  }
 0x10a   :  { %v263_v12 = vmul.f32 %v259_v8, %v259_v8  ;;  %v264_v13 = vmul.f32 %v260_v9, %v260_v9  ;;  %v265_v14 = vmul.f32 %v261_v10, %v261_v10  ;;  %v266_v16 = vmul.f32 %v262_v11, %v262_v11  ;;  %v3007_v7 = vld [vmem:[%s3816_s5 + $0x118] sm:$0xff]  }
 0x10c   :  { %v267_v15 = vadd.f32 %v264_v13, %v263_v12  ;;  %v3012_v12 = vld [vmem:[%s3816_s5 + $0x148] sm:$0xff]   ;;  %v3013_v13 = vld [vmem:[%s3816_s5 + $0x100] sm:$0xff]  }
 0x10e   :  { %v268_v17 = vadd.f32 %v267_v15, %v265_v14  ;;  %v3014_v14 = vld [vmem:[%s3816_s5 + $0x140] sm:$0xff]  }
 0x110   :  { %v269_v18 = vadd.f32 %v268_v17, %v266_v16  ;;  %v3015_v16 = vld [vmem:[%s3816_s5 + $0x1b8] sm:$0xff]  }
 0x111   :  { %v3016_v17 = vld [vmem:[%s3816_s5 + $0x1f8] sm:$0xff]  }
 0x112   :  { %v270_v19 = vrot.slane %v269_v18, 4 }
 0x114   :  { %v271_v20 = vadd.f32 %v270_v19, %v269_v18  ;;  %v3017_v19 = vld [vmem:[%s3816_s5 + $0x1b0] sm:$0xff]  }
 0x116   :  { %v272_v22 = vrot.slane %v271_v20, 2 }
 0x118   :  { %v273_v23 = vadd.f32 %v272_v22, %v271_v20  ;;  %v3018_v20 = vld [vmem:[%s3816_s5 + $0x1f0] sm:$0xff]   ;;  %v3019_v22 = vld [vmem:[%s3816_s5 + $0x1a8] sm:$0xff]  }
 0x11a   :  { %v274_v24 = vrot.slane %v273_v23, 1 }
 0x11c   :  { %v275_v25 = vadd.f32 %v274_v24, %v273_v23  ;;  %v3020_v23 = vld [vmem:[%s3816_s5 + $0x1e8] sm:$0xff]   ;;  %v3021_v24 = vld [vmem:[%s3816_s5 + $0x1a0] sm:$0xff]  }
 0x11e   :  { %v276_v26 = vmul.f32 0.03125, %v275_v25  ;;  %v3022_v25 = vld [vmem:[%s3816_s5 + $0x1e0] sm:$0xff]  }
 0x120   :  { %v277_v27 = vadd.f32 1e-05, %v276_v26  ;;  %v3023_v26 = vld [vmem:[%s3816_s5 + $0x198] sm:$0xff]  }
 0x122   :  { %3095 = vrsqrt.f32 %v277_v27  ;;  %v3024_v27 = vld [vmem:[%s3816_s5 + $0x1d8] sm:$0xff]  }
 0x12f   :  { %v3096_v28 = vpop.eup %3095 }
 0x130   :  { %v282_v30 = vmul.f32 %v3096_v28, %v262_v11  ;;  %v279_v31 = vmul.f32 %v3096_v28, %v259_v8  ;;  %v280_v32 = vmul.f32 %v3096_v28, %v260_v9  ;;  %v281_v33 = vmul.f32 %v3096_v28, %v261_v10  ;;  %v3008_v8 = vld [vmem:[%s3816_s5 + $0x158] sm:$0xff]   ;;  %v3009_v9 = vld [vmem:[%s3816_s5 + $0x110] sm:$0xff]   ;;  %v3011_v11 = vld [vmem:[%s3816_s5 + $0x108] sm:$0xff]  }
 0x131   :  { %v3010_v10 = vld [vmem:[%s3816_s5 + $0x150] sm:$0xff]  }
 0x132   :  { %v290_v35 = vmul.f32 %v2079_v29, %v279_v31  ;;  %v291_v36 = vmul.f32 %v2079_v29, %v280_v32  ;;  %v292_v37 = vmul.f32 %v2079_v29, %v281_v33  ;;  %v293_v38 = vmul.f32 %v2079_v29, %v282_v30  ;;  %v3025_v28 = vld [vmem:[%s3816_s5 + $0x190] sm:$0xff]   ;;  %v3027_v30 = vld [vmem:[%s3816_s5 + $0x188] sm:$0xff]   ;;  %v3029_v32 = vld [vmem:[%s3816_s5 + $0x180] sm:$0xff]  }
 0x133   :  { %v3026_v29 = vld [vmem:[%s3816_s5 + $0x1d0] sm:$0xff]   ;;  %v3028_v31 = vld [vmem:[%s3816_s5 + $0x1c8] sm:$0xff]   ;;  %v3030_v33 = vld [vmem:[%s3816_s5 + $0x1c0] sm:$0xff]  }
 0x134   :  { %v301_v39 = vadd.f32 %v2080_v34, %v290_v35  ;;  %v3301_v40 = vadd.f32 %v2080_v34, %v291_v36  ;;  %v3303_v41 = vadd.f32 %v2080_v34, %v292_v37  ;;  %v3305_v42 = vadd.f32 %v2080_v34, %v293_v38  ;;  %v3031_v34 = vld [vmem:[%s3816_s5 + $0x238] sm:$0xff]   ;;  %v3033_v38 = vld [vmem:[%s3816_s5 + $0x230] sm:$0xff]  }
 0x135   :  { %v3032_v36 = vld [vmem:[%s3816_s5 + $0x278] sm:$0xff]  }
 0x136   :  { %v313_v44 = vpack.c.bf16 %v301_v39, %v301_v39  ;;  %v3443_v15 = vpack.c.bf16 %v3301_v40, %v3301_v40  ;;  %v3034_v39 = vld [vmem:[%s3816_s5 + $0x270] sm:$0xff]   ;;  %v3035_v40 = vld [vmem:[%s3816_s5 + $0x228] sm:$0xff]  }
 0x138   :  { %2639 = vmatmul.mubr.bf16.vlgmr.msra.gmra.mxu1 %v313_v44  ;;  %v437_v46 = vrot.slane %v313_v44, 1  ;;  %v545_v62 = vrot.slane %v313_v44, 2  ;;  %v653_v0 = vrot.slane %v313_v44, 3  ;;  %v869_v18 = vrot.slane %v3443_v15, 1  ;;  %v3037_v44 = vld [vmem:[%s3816_s5 + $0x220] sm:$0xff]  }
 0x139   :  { %2663 = vmatpush3.bf16.msra.mxu1 %v2983_v43  ;;  %2678 = vmatprep.mubr.msk.bf16.mxu1 %vm3120_vm0, %v3119_v21  ;;  %v977_v35 = vrot.slane %v3443_v15, 2  ;;  %v1085_v37 = vrot.slane %v3443_v15, 3  ;;  %v3036_v43 = vld [vmem:[%s3816_s5 + $0x268] sm:$0xff]  }
 0x13a   :  { %2659 = vmatmul.mubr.bf16.vlgmr.msra.gmra.mxu0 %v437_v46  ;;  %2664 = vmatprep.subr.bf16.mxu1 %v3119_v21  ;;  %v3039_v46 = vld [vmem:[%s3816_s5 + $0x218] sm:$0xff]  }
 0x13b   :  { %2683 = vmatpush3.bf16.msra.mxu0 %v2984_v45  ;;  %2698 = vmatprep.mubr.msk.bf16.mxu0 %vm3120_vm0, %v3119_v21  ;;  %v3038_v45 = vld [vmem:[%s3816_s5 + $0x260] sm:$0xff]  }
 0x13c   :  { %2684 = vmatprep.subr.bf16.mxu0 %v3119_v21 }
 0x13d   :  { %2665 = vmatpush3.bf16.msra.mxu1 %v2985_v47  ;;  %v3040_v47 = vld [vmem:[%s3816_s5 + $0x258] sm:$0xff]  }
 0x13e   :  { %2666 = vmatprep.subr.bf16.mxu1 %v3119_v21 }
 0x13f   :  { %2685 = vmatpush3.bf16.msra.mxu0 %v2986_v48  ;;  %v3041_v48 = vld [vmem:[%s3816_s5 + $0x210] sm:$0xff]  }
 0x140   :  { %2686 = vmatprep.subr.bf16.mxu0 %v3119_v21 }
 0x141   :  { %2667 = vmatpush3.bf16.msra.mxu1 %v2987_v49  ;;  %v3042_v49 = vld [vmem:[%s3816_s5 + $0x250] sm:$0xff]  }
 0x142   :  { %2668 = vmatprep.subr.bf16.mxu1 %v3119_v21 }
 0x143   :  { %2687 = vmatpush3.bf16.msra.mxu0 %v2988_v50  ;;  %v3043_v50 = vld [vmem:[%s3816_s5 + $0x208] sm:$0xff]  }
 0x144   :  { %2688 = vmatprep.subr.bf16.mxu0 %v3119_v21 }
 0x145   :  { %2669 = vmatpush3.bf16.msra.mxu1 %v2989_v51  ;;  %v3044_v51 = vld [vmem:[%s3816_s5 + $0x248] sm:$0xff]  }
 0x146   :  { %2670 = vmatprep.subr.bf16.mxu1 %v3119_v21 }
 0x147   :  { %2689 = vmatpush3.bf16.msra.mxu0 %v2990_v52  ;;  %v3045_v52 = vld [vmem:[%s3816_s5 + $0x200] sm:$0xff]  }
 0x148   :  { %2690 = vmatprep.subr.bf16.mxu0 %v3119_v21 }
 0x149   :  { %2671 = vmatpush3.bf16.msra.mxu1 %v2991_v53  ;;  %v3046_v53 = vld [vmem:[%s3816_s5 + $0x240] sm:$0xff]  }
 0x14a   :  { %2672 = vmatprep.subr.bf16.mxu1 %v3119_v21 }
 0x14b   :  { %2691 = vmatpush3.bf16.msra.mxu0 %v2992_v54  ;;  %v3587_v54 = vpack.c.bf16 %v3303_v41, %v3303_v41  ;;  %v3049_v41 = vld [vmem:[%s3816_s5 + $0x2b0] sm:$0xff]  }
 0x14c   :  { %2692 = vmatprep.subr.bf16.mxu0 %v3119_v21 }
 0x14d   :  { %2673 = vmatpush3.bf16.msra.mxu1 %v2993_v55  ;;  %v3047_v55 = vld [vmem:[%s3816_s5 + $0x2b8] sm:$0xff]  }
 0x14e   :  { %2674 = vmatprep.subr.bf16.mxu1 %v3119_v21 }
 0x14f   :  { %2693 = vmatpush3.bf16.msra.mxu0 %v2994_v56  ;;  %v3048_v56 = vld [vmem:[%s3816_s5 + $0x2f8] sm:$0xff]  }
 0x150   :  { %2694 = vmatprep.subr.bf16.mxu0 %v3119_v21 }
 0x151   :  { %2675 = vmatpush3.bf16.msra.mxu1 %v2995_v57  ;;  %v1301_v57 = vrot.slane %v3587_v54, 1 }
 0x152   :  { %2676 = vmatprep.subr.bf16.mxu1 %v3119_v21 }
 0x153   :  { %2695 = vmatpush3.bf16.msra.mxu0 %v2996_v58  ;;  %v3050_v58 = vld [vmem:[%s3816_s5 + $0x2f0] sm:$0xff]  }
 0x154   :  { %2696 = vmatprep.subr.bf16.mxu0 %v3119_v21 }
 0x155   :  { %2677 = vmatpush3.bf16.msra.mxu1 %v2997_v59  ;;  %v3051_v59 = vld [vmem:[%s3816_s5 + $0x2a8] sm:$0xff]  }
 0x156   :  { %2702 = vmatprep.subr.bf16.mxu1 %v3119_v21 }
 0x157   :  { %2697 = vmatpush3.bf16.msra.mxu0 %v2998_v60  ;;  %v3052_v60 = vld [vmem:[%s3816_s5 + $0x2e8] sm:$0xff]  }
 0x158   :  { %2679 = vmatmul.mubr.bf16.vlgmr.msra.gmra.mxu1 %v545_v62  ;;  %2722 = vmatprep.subr.bf16.mxu0 %v3119_v21  ;;  %v3054_v62 = vld [vmem:[%s3816_s5 + $0x2e0] sm:$0xff]  }
 0x159   :  { %2703 = vmatpush3.bf16.msra.mxu1 %v2999_v61  ;;  %2718 = vmatprep.mubr.msk.bf16.mxu1 %vm3120_vm0, %v3119_v21  ;;  %v3053_v61 = vld [vmem:[%s3816_s5 + $0x2a0] sm:$0xff]  }
 0x15a   :  { %2699 = vmatmul.mubr.bf16.vlgmr.msra.gmra.mxu0 %v653_v0  ;;  %2704 = vmatprep.subr.bf16.mxu1 %v3119_v21  ;;  %v3056_v0 = vld [vmem:[%s3816_s5 + $0x2d8] sm:$0xff]  }
 0x15b   :  { %2723 = vmatpush3.bf16.msra.mxu0 %v3000_v63  ;;  %2738 = vmatprep.mubr.msk.bf16.mxu0 %vm3120_vm0, %v3119_v21  ;;  %v3055_v63 = vld [vmem:[%s3816_s5 + $0x298] sm:$0xff]  }
 0x15c   :  { %2724 = vmatprep.subr.bf16.mxu0 %v3119_v21 }
 0x15d   :  { %2705 = vmatpush3.bf16.msra.mxu1 %v3001_v1  ;;  %v3057_v1 = vld [vmem:[%s3816_s5 + $0x290] sm:$0xff]  }
 0x15e   :  { %2706 = vmatprep.subr.bf16.mxu1 %v3119_v21 }
 0x15f   :  { %2725 = vmatpush3.bf16.msra.mxu0 %v3002_v2  ;;  %v3058_v2 = vld [vmem:[%s3816_s5 + $0x2d0] sm:$0xff]  }
 0x160   :  { %2726 = vmatprep.subr.bf16.mxu0 %v3119_v21 }
 0x161   :  { %2707 = vmatpush3.bf16.msra.mxu1 %v3003_v3  ;;  %v3059_v3 = vld [vmem:[%s3816_s5 + $0x288] sm:$0xff]  }
 0x162   :  { %2708 = vmatprep.subr.bf16.mxu1 %v3119_v21 }
 0x163   :  { %2727 = vmatpush3.bf16.msra.mxu0 %v3004_v4  ;;  %v3060_v4 = vld [vmem:[%s3816_s5 + $0x2c8] sm:$0xff]  }
 0x164   :  { %2728 = vmatprep.subr.bf16.mxu0 %v3119_v21 }
 0x165   :  { %2709 = vmatpush3.bf16.msra.mxu1 %v3005_v5  ;;  %v3061_v5 = vld [vmem:[%s3816_s5 + $0x280] sm:$0xff]  }
 0x166   :  { %2710 = vmatprep.subr.bf16.mxu1 %v3119_v21 }
 0x167   :  { %2729 = vmatpush3.bf16.msra.mxu0 %v3006_v6  ;;  %v3062_v6 = vld [vmem:[%s3816_s5 + $0x2c0] sm:$0xff]  }
 0x168   :  { %2730 = vmatprep.subr.bf16.mxu0 %v3119_v21 }
 0x169   :  { %2711 = vmatpush3.bf16.msra.mxu1 %v3007_v7  ;;  %v3063_v7 = vld [vmem:[%s3816_s5 + $0x338] sm:$0xff]  }
 0x16a   :  { %2712 = vmatprep.subr.bf16.mxu1 %v3119_v21 }
 0x16b   :  { %2731 = vmatpush3.bf16.msra.mxu0 %v3008_v8  ;;  %v1409_v8 = vrot.slane %v3587_v54, 2 }
 0x16c   :  { %2732 = vmatprep.subr.bf16.mxu0 %v3119_v21 }
 0x16d   :  { %2713 = vmatpush3.bf16.msra.mxu1 %v3009_v9  ;;  %v3064_v9 = vld [vmem:[%s3816_s5 + $0x378] sm:$0xff]  }
 0x16e   :  { %2714 = vmatprep.subr.bf16.mxu1 %v3119_v21 }
 0x16f   :  { %2733 = vmatpush3.bf16.msra.mxu0 %v3010_v10  ;;  %v1517_v10 = vrot.slane %v3587_v54, 3 }
 0x170   :  { %2734 = vmatprep.subr.bf16.mxu0 %v3119_v21 }
 0x171   :  { %2715 = vmatpush3.bf16.msra.mxu1 %v3011_v11  ;;  %v3065_v11 = vld [vmem:[%s3816_s5 + $0x330] sm:$0xff]  }
 0x172   :  { %2716 = vmatprep.subr.bf16.mxu1 %v3119_v21 }
 0x173   :  { %2735 = vmatpush3.bf16.msra.mxu0 %v3012_v12  ;;  %v3066_v12 = vld [vmem:[%s3816_s5 + $0x370] sm:$0xff]  }
 0x174   :  { %2736 = vmatprep.subr.bf16.mxu0 %v3119_v21 }
 0x175   :  { %2717 = vmatpush3.bf16.msra.mxu1 %v3013_v13  ;;  %v3067_v13 = vld [vmem:[%s3816_s5 + $0x328] sm:$0xff]  }
 0x176   :  { %2742 = vmatprep.subr.bf16.mxu1 %v3119_v21 }
 0x177   :  { %2737 = vmatpush3.bf16.msra.mxu0 %v3014_v14  ;;  %v3068_v14 = vld [vmem:[%s3816_s5 + $0x368] sm:$0xff]  }
 0x178   :  { %2719 = vmatmul.mubr.bf16.vlgmr.msra.gmra.mxu1 %v3443_v15  ;;  %2762 = vmatprep.subr.bf16.mxu0 %v3119_v21  ;;  %v3069_v15 = vld [vmem:[%s3816_s5 + $0x320] sm:$0xff]  }
 0x179   :  { %2743 = vmatpush3.bf16.msra.mxu1 %v3015_v16  ;;  %2758 = vmatprep.mubr.msk.bf16.mxu1 %vm3120_vm0, %v3119_v21  ;;  %v3070_v16 = vld [vmem:[%s3816_s5 + $0x360] sm:$0xff]  }
 0x17a   :  { %2739 = vmatmul.mubr.bf16.vlgmr.msra.gmra.mxu0 %v869_v18  ;;  %2744 = vmatprep.subr.bf16.mxu1 %v3119_v21  ;;  %v3072_v18 = vld [vmem:[%s3816_s5 + $0x358] sm:$0xff]  }
 0x17b   :  { %2763 = vmatpush3.bf16.msra.mxu0 %v3016_v17  ;;  %2778 = vmatprep.mubr.msk.bf16.mxu0 %vm3120_vm0, %v3119_v21  ;;  %v3071_v17 = vld [vmem:[%s3816_s5 + $0x318] sm:$0xff]  }
 0x17c   :  { %2764 = vmatprep.subr.bf16.mxu0 %v3119_v21 }
 0x17d   :  { %2745 = vmatpush3.bf16.msra.mxu1 %v3017_v19  ;;  %v3073_v19 = vld [vmem:[%s3816_s5 + $0x310] sm:$0xff]  }
 0x17e   :  { %2746 = vmatprep.subr.bf16.mxu1 %v3119_v21 }
 0x17f   :  { %2765 = vmatpush3.bf16.msra.mxu0 %v3018_v20  ;;  %v3074_v20 = vld [vmem:[%s3816_s5 + $0x350] sm:$0xff]  }
 0x180   :  { %2766 = vmatprep.subr.bf16.mxu0 %v3119_v21 }
 0x181   :  { %2747 = vmatpush3.bf16.msra.mxu1 %v3019_v22  ;;  %v3075_v22 = vld [vmem:[%s3816_s5 + $0x308] sm:$0xff]  }
 0x182   :  { %2748 = vmatprep.subr.bf16.mxu1 %v3119_v21 }
 0x183   :  { %2767 = vmatpush3.bf16.msra.mxu0 %v3020_v23  ;;  %v3076_v23 = vld [vmem:[%s3816_s5 + $0x348] sm:$0xff]  }
 0x184   :  { %2768 = vmatprep.subr.bf16.mxu0 %v3119_v21 }
 0x185   :  { %2749 = vmatpush3.bf16.msra.mxu1 %v3021_v24  ;;  %v3077_v24 = vld [vmem:[%s3816_s5 + $0x300] sm:$0xff]  }
 0x186   :  { %2750 = vmatprep.subr.bf16.mxu1 %v3119_v21 }
 0x187   :  { %2769 = vmatpush3.bf16.msra.mxu0 %v3022_v25  ;;  %v3078_v25 = vld [vmem:[%s3816_s5 + $0x340] sm:$0xff]  }
 0x188   :  { %2770 = vmatprep.subr.bf16.mxu0 %v3119_v21 }
 0x189   :  { %2751 = vmatpush3.bf16.msra.mxu1 %v3023_v26  ;;  %v3731_v26 = vpack.c.bf16 %v3305_v42, %v3305_v42 }
 0x18a   :  { %2752 = vmatprep.subr.bf16.mxu1 %v3119_v21 }
 0x18b   :  { %2771 = vmatpush3.bf16.msra.mxu0 %v3024_v27  ;;  %v3079_v27 = vld [vmem:[%s3816_s5 + $0x3b8] sm:$0xff]  }
 0x18c   :  { %2772 = vmatprep.subr.bf16.mxu0 %v3119_v21 }
 0x18d   :  { %2753 = vmatpush3.bf16.msra.mxu1 %v3025_v28  ;;  %v2081_v28 = vld [vmem:[%s3817_s6] ss:$0 sm:$0xff] }
 0x18e   :  { %2754 = vmatprep.subr.bf16.mxu1 %v3119_v21 }
 0x18f   :  { %2773 = vmatpush3.bf16.msra.mxu0 %v3026_v29  ;;  %v3080_v29 = vld [vmem:[%s3816_s5 + $0x3f8] sm:$0xff]  }
 0x190   :  { %2774 = vmatprep.subr.bf16.mxu0 %v3119_v21 }
 0x191   :  { %2755 = vmatpush3.bf16.msra.mxu1 %v3027_v30  ;;  %v1733_v30 = vrot.slane %v3731_v26, 1 }
 0x192   :  { %2756 = vmatprep.subr.bf16.mxu1 %v3119_v21 }
 0x193   :  { %2775 = vmatpush3.bf16.msra.mxu0 %v3028_v31 }
 0x194   :  { %2776 = vmatprep.subr.bf16.mxu0 %v3119_v21 }
 0x195   :  { %2757 = vmatpush3.bf16.msra.mxu1 %v3029_v32  ;;  %v3081_v32 = vld [vmem:[%s3816_s5 + $0x3b0] sm:$0xff]  }
 0x196   :  { %2782 = vmatprep.subr.bf16.mxu1 %v3119_v21 }
 0x197   :  { %2777 = vmatpush3.bf16.msra.mxu0 %v3030_v33 }
 0x198   :  { %2759 = vmatmul.mubr.bf16.vlgmr.msra.gmra.mxu1 %v977_v35  ;;  %2802 = vmatprep.subr.bf16.mxu0 %v3119_v21 }
 0x199   :  { %2783 = vmatpush3.bf16.msra.mxu1 %v3031_v34  ;;  %2798 = vmatprep.mubr.msk.bf16.mxu1 %vm3120_vm0, %v3119_v21 }
 0x19a   :  { %2779 = vmatmul.mubr.bf16.vlgmr.msra.gmra.mxu0 %v1085_v37  ;;  %2784 = vmatprep.subr.bf16.mxu1 %v3119_v21 }
 0x19b   :  { %2803 = vmatpush3.bf16.msra.mxu0 %v3032_v36  ;;  %2818 = vmatprep.mubr.msk.bf16.mxu0 %vm3120_vm0, %v3119_v21  ;;  %v3082_v36 = vld [vmem:[%s3816_s5 + $0x3f0] sm:$0xff]  }
 0x19c   :  { %2804 = vmatprep.subr.bf16.mxu0 %v3119_v21 }
 0x19d   :  { %2785 = vmatpush3.bf16.msra.mxu1 %v3033_v38 }
 0x19e   :  { %2786 = vmatprep.subr.bf16.mxu1 %v3119_v21 }
 0x19f   :  { %2805 = vmatpush3.bf16.msra.mxu0 %v3034_v39  ;;  %v3083_v39 = vld [vmem:[%s3816_s5 + $0x3a8] sm:$0xff]  }
 0x1a0   :  { %2806 = vmatprep.subr.bf16.mxu0 %v3119_v21 }
 0x1a1   :  { %2787 = vmatpush3.bf16.msra.mxu1 %v3035_v40 }
 0x1a2   :  { %2788 = vmatprep.subr.bf16.mxu1 %v3119_v21 }
 0x1a3   :  { %2807 = vmatpush3.bf16.msra.mxu0 %v3036_v43 }
 0x1a4   :  { %2808 = vmatprep.subr.bf16.mxu0 %v3119_v21 }
 0x1a5   :  { %2789 = vmatpush3.bf16.msra.mxu1 %v3037_v44  ;;  %v3084_v44 = vld [vmem:[%s3816_s5 + $0x3e8] sm:$0xff]  }
 0x1a6   :  { %2790 = vmatprep.subr.bf16.mxu1 %v3119_v21 }
 0x1a7   :  { %2809 = vmatpush3.bf16.msra.mxu0 %v3038_v45 }
 0x1a8   :  { %2810 = vmatprep.subr.bf16.mxu0 %v3119_v21 }
 0x1a9   :  { %2791 = vmatpush3.bf16.msra.mxu1 %v3039_v46  ;;  %v3085_v46 = vld [vmem:[%s3816_s5 + $0x3a0] sm:$0xff]  }
 0x1aa   :  { %2792 = vmatprep.subr.bf16.mxu1 %v3119_v21 }
 0x1ab   :  { %2811 = vmatpush3.bf16.msra.mxu0 %v3040_v47  ;;  %v3086_v47 = vld [vmem:[%s3816_s5 + $0x3e0] sm:$0xff]  }
 0x1ac   :  { %2812 = vmatprep.subr.bf16.mxu0 %v3119_v21 }
 0x1ad   :  { %2793 = vmatpush3.bf16.msra.mxu1 %v3041_v48  ;;  %v3087_v48 = vld [vmem:[%s3816_s5 + $0x398] sm:$0xff]  }
 0x1ae   :  { %2794 = vmatprep.subr.bf16.mxu1 %v3119_v21 }
 0x1af   :  { %2813 = vmatpush3.bf16.msra.mxu0 %v3042_v49  ;;  %v3088_v49 = vld [vmem:[%s3816_s5 + $0x3d8] sm:$0xff]  }
 0x1b0   :  { %2814 = vmatprep.subr.bf16.mxu0 %v3119_v21 }
 0x1b1   :  { %2795 = vmatpush3.bf16.msra.mxu1 %v3043_v50  ;;  %v3089_v50 = vld [vmem:[%s3816_s5 + $0x390] sm:$0xff]  }
 0x1b2   :  { %2796 = vmatprep.subr.bf16.mxu1 %v3119_v21 }
 0x1b3   :  { %2815 = vmatpush3.bf16.msra.mxu0 %v3044_v51  ;;  %v3090_v51 = vld [vmem:[%s3816_s5 + $0x3d0] sm:$0xff]  }
 0x1b4   :  { %2816 = vmatprep.subr.bf16.mxu0 %v3119_v21 }
 0x1b5   :  { %2797 = vmatpush3.bf16.msra.mxu1 %v3045_v52  ;;  %v3091_v52 = vld [vmem:[%s3816_s5 + $0x388] sm:$0xff]  }
 0x1b6   :  { %2822 = vmatprep.subr.bf16.mxu1 %v3119_v21 }
 0x1b7   :  { %2817 = vmatpush3.bf16.msra.mxu0 %v3046_v53  ;;  %v3092_v53 = vld [vmem:[%s3816_s5 + $0x3c8] sm:$0xff]  }
 0x1b8   :  { %2799 = vmatmul.mubr.bf16.vlgmr.msra.gmra.mxu1 %v3587_v54  ;;  %2842 = vmatprep.subr.bf16.mxu0 %v3119_v21  ;;  %v3093_v54 = vld [vmem:[%s3816_s5 + $0x380] sm:$0xff]  }
 0x1b9   :  { %2823 = vmatpush3.bf16.msra.mxu1 %v3047_v55  ;;  %2838 = vmatprep.mubr.msk.bf16.mxu1 %vm3120_vm0, %v3119_v21  ;;  %v3094_v55 = vld [vmem:[%s3816_s5 + $0x3c0] sm:$0xff]   ;;  %s3121_s5 = smov [#allocation2]  }
 0x1ba   :  { %2819 = vmatmul.mubr.bf16.vlgmr.msra.gmra.mxu0 %v1301_v57  ;;  %2824 = vmatprep.subr.bf16.mxu1 %v3119_v21  ;;  %s2050_s28 = sshll.u32 %s3121_s5, 4  ;;  %s2051_s28 = int_to_ptr.vmem [resolvable:$true] %s2050_s28 }
 0x1bb   :  { %2843 = vmatpush3.bf16.msra.mxu0 %v3048_v56  ;;  %2858 = vmatprep.mubr.msk.bf16.mxu0 %vm3120_vm0, %v3119_v21  ;;  %v1841_v56 = vrot.slane %v3731_v26, 2  ;;  %s3097_s29 = scalar_lea.vmem %s2051_s28, 32  ;;  %p3102_p1 = scmp.lt.s32.totalorder %s2051_s28, %s2051_s28 }
 0x1bc   :  { %2844 = vmatprep.subr.bf16.mxu0 %v3119_v21  ;;  %p3098_p0 = scmp.ne.s32.totalorder %s2051_s28, %s3097_s29  ;;  %p3103_p2 = scmp.lt.s32.totalorder %s3097_s29, %s3097_s29 }
 0x1bd   :  { %2825 = vmatpush3.bf16.msra.mxu1 %v3049_v41  ;;  %v1949_v41 = vrot.slane %v3731_v26, 3 }
 0x1be   :  { %2826 = vmatprep.subr.bf16.mxu1 %v3119_v21  ;;  %p3104_p3 = por %p3103_p2, %p3102_p1 }
 0x1bf   :  { %2845 = vmatpush3.bf16.msra.mxu0 %v3050_v58 }
 0x1c0   :  { %2846 = vmatprep.subr.bf16.mxu0 %v3119_v21  ;;  %p3105_p4 = pnand %p3104_p3, %p3098_p0 }
 0x1c1   :  { %2827 = vmatpush3.bf16.msra.mxu1 %v3051_v59 }
 0x1c2   :  { %2828 = vmatprep.subr.bf16.mxu1 %v3119_v21 }
 0x1c3   :  { %2847 = vmatpush3.bf16.msra.mxu0 %v3052_v60 }
 0x1c4   :  { %2848 = vmatprep.subr.bf16.mxu0 %v3119_v21 }
 0x1c5   :  { %2829 = vmatpush3.bf16.msra.mxu1 %v3053_v61 }
 0x1c6   :  { %2830 = vmatprep.subr.bf16.mxu1 %v3119_v21 }
 0x1c7   :  { %2849 = vmatpush3.bf16.msra.mxu0 %v3054_v62 }
 0x1c8   :  { %2850 = vmatprep.subr.bf16.mxu0 %v3119_v21 }
 0x1c9   :  { %2831 = vmatpush3.bf16.msra.mxu1 %v3055_v63 }
 0x1ca   :  { %2832 = vmatprep.subr.bf16.mxu1 %v3119_v21 }
 0x1cb   :  { %2851 = vmatpush3.bf16.msra.mxu0 %v3056_v0 }
 0x1cc   :  { %2852 = vmatprep.subr.bf16.mxu0 %v3119_v21 }
 0x1cd   :  { %2833 = vmatpush3.bf16.msra.mxu1 %v3057_v1 }
 0x1ce   :  { %2834 = vmatprep.subr.bf16.mxu1 %v3119_v21 }
 0x1cf   :  { %2853 = vmatpush3.bf16.msra.mxu0 %v3058_v2 }
 0x1d0   :  { %2854 = vmatprep.subr.bf16.mxu0 %v3119_v21 }
 0x1d1   :  { %2835 = vmatpush3.bf16.msra.mxu1 %v3059_v3 }
 0x1d2   :  { %2836 = vmatprep.subr.bf16.mxu1 %v3119_v21 }
 0x1d3   :  { %2855 = vmatpush3.bf16.msra.mxu0 %v3060_v4 }
 0x1d4   :  { %2856 = vmatprep.subr.bf16.mxu0 %v3119_v21 }
 0x1d5   :  { %2837 = vmatpush3.bf16.msra.mxu1 %v3061_v5 }
 0x1d6   :  { %2862 = vmatprep.subr.bf16.mxu1 %v3119_v21 }
 0x1d7   :  { %2857 = vmatpush3.bf16.msra.mxu0 %v3062_v6 }
 0x1d8   :  { %2839 = vmatmul.mubr.bf16.vlgmr.msra.gmra.mxu1 %v1409_v8  ;;  %2882 = vmatprep.subr.bf16.mxu0 %v3119_v21 }
 0x1d9   :  { %2863 = vmatpush3.bf16.msra.mxu1 %v3063_v7  ;;  %2878 = vmatprep.mubr.msk.bf16.mxu1 %vm3120_vm0, %v3119_v21 }
 0x1da   :  { %2859 = vmatmul.mubr.bf16.vlgmr.msra.gmra.mxu0 %v1517_v10  ;;  %2864 = vmatprep.subr.bf16.mxu1 %v3119_v21 }
 0x1db   :  { %2883 = vmatpush3.bf16.msra.mxu0 %v3064_v9  ;;  %2898 = vmatprep.mubr.msk.bf16.mxu0 %vm3120_vm0, %v3119_v21 }
 0x1dc   :  { %2884 = vmatprep.subr.bf16.mxu0 %v3119_v21 }
 0x1dd   :  { %2865 = vmatpush3.bf16.msra.mxu1 %v3065_v11 }
 0x1de   :  { %2866 = vmatprep.subr.bf16.mxu1 %v3119_v21 }
 0x1df   :  { %2885 = vmatpush3.bf16.msra.mxu0 %v3066_v12 }
 0x1e0   :  { %2886 = vmatprep.subr.bf16.mxu0 %v3119_v21 }
 0x1e1   :  { %2867 = vmatpush3.bf16.msra.mxu1 %v3067_v13 }
 0x1e2   :  { %2868 = vmatprep.subr.bf16.mxu1 %v3119_v21 }
 0x1e3   :  { %2887 = vmatpush3.bf16.msra.mxu0 %v3068_v14 }
 0x1e4   :  { %2888 = vmatprep.subr.bf16.mxu0 %v3119_v21 }
 0x1e5   :  { %2869 = vmatpush3.bf16.msra.mxu1 %v3069_v15 }
 0x1e6   :  { %2870 = vmatprep.subr.bf16.mxu1 %v3119_v21 }
 0x1e7   :  { %2889 = vmatpush3.bf16.msra.mxu0 %v3070_v16 }
 0x1e8   :  { %2890 = vmatprep.subr.bf16.mxu0 %v3119_v21 }
 0x1e9   :  { %2871 = vmatpush3.bf16.msra.mxu1 %v3071_v17 }
 0x1ea   :  { %2872 = vmatprep.subr.bf16.mxu1 %v3119_v21 }
 0x1eb   :  { %2891 = vmatpush3.bf16.msra.mxu0 %v3072_v18 }
 0x1ec   :  { %2892 = vmatprep.subr.bf16.mxu0 %v3119_v21 }
 0x1ed   :  { %2873 = vmatpush3.bf16.msra.mxu1 %v3073_v19 }
 0x1ee   :  { %2874 = vmatprep.subr.bf16.mxu1 %v3119_v21 }
 0x1ef   :  { %2893 = vmatpush3.bf16.msra.mxu0 %v3074_v20 }
 0x1f0   :  { %2894 = vmatprep.subr.bf16.mxu0 %v3119_v21 }
 0x1f1   :  { %2875 = vmatpush3.bf16.msra.mxu1 %v3075_v22 }
 0x1f2   :  { %2876 = vmatprep.subr.bf16.mxu1 %v3119_v21 }
 0x1f3   :  { %2895 = vmatpush3.bf16.msra.mxu0 %v3076_v23 }
 0x1f4   :  { %2896 = vmatprep.subr.bf16.mxu0 %v3119_v21 }
 0x1f5   :  { %2877 = vmatpush3.bf16.msra.mxu1 %v3077_v24 }
 0x1f6   :  { %2902 = vmatprep.subr.bf16.mxu1 %v3119_v21 }
 0x1f7   :  { %2897 = vmatpush3.bf16.msra.mxu0 %v3078_v25 }
 0x1f8   :  { %2879 = vmatmul.mubr.bf16.vlgmr.msra.gmra.mxu1 %v3731_v26  ;;  %v412_v42 = vpop.f32.mrf.mxu1  ;;  %2922 = vmatprep.subr.bf16.mxu0 %v3119_v21 }
 0x1f9   :  { %v418_v31 = vadd.f32 %v2081_v28, %v412_v42  ;;  %2903 = vmatpush3.bf16.msra.mxu1 %v3079_v27  ;;  %2918 = vmatprep.mubr.msk.bf16.mxu1 %vm3120_vm0, %v3119_v21 }
 0x1fa   :  { %2899 = vmatmul.mubr.bf16.vlgmr.msra.gmra.mxu0 %v1733_v30  ;;  %v2640_v33 = vpop.f32.mrf.mxu1  ;;  %v521_v34 = vpop.f32.mrf.mxu0  ;;  %2904 = vmatprep.subr.bf16.mxu1 %v3119_v21 }
 0x1fb   :  { %v527_v35 = vadd.f32 %v521_v34, %v418_v31  ;;  %2923 = vmatpush3.bf16.msra.mxu0 %v3080_v29  ;;  %2938 = vmatprep.mubr.msk.bf16.mxu0 %vm3120_vm0, %v3119_v21 }
 0x1fc   :  { %v415_v37 = vpop.f32.mrf.mxu1  ;;  %v2660_v38 = vpop.f32.mrf.mxu0  ;;  %2924 = vmatprep.subr.bf16.mxu0 %v3119_v21 }
 0x1fd   :  { %2905 = vmatpush3.bf16.msra.mxu1 %v3081_v32 }
 0x1fe   :  { %v2641_v40 = vpop.f32.mrf.mxu1  ;;  %v524_v43 = vpop.f32.mrf.mxu0  ;;  %2906 = vmatprep.subr.bf16.mxu1 %v3119_v21 }
 0x1ff   :  { %2925 = vmatpush3.bf16.msra.mxu0 %v3082_v36 }
 0x200   :  { %v2661_v45 = vpop.f32.mrf.mxu0  ;;  %2926 = vmatprep.subr.bf16.mxu0 %v3119_v21 }
 0x201   :  { %2907 = vmatpush3.bf16.msra.mxu1 %v3083_v39 }
 0x202   :  { %2908 = vmatprep.subr.bf16.mxu1 %v3119_v21 }
 0x203   :  { %2927 = vmatpush3.bf16.msra.mxu0 %v3084_v44 }
 0x204   :  { %2928 = vmatprep.subr.bf16.mxu0 %v3119_v21 }
 0x205   :  { %2909 = vmatpush3.bf16.msra.mxu1 %v3085_v46 }
 0x206   :  { %2910 = vmatprep.subr.bf16.mxu1 %v3119_v21 }
 0x207   :  { %2929 = vmatpush3.bf16.msra.mxu0 %v3086_v47 }
 0x208   :  { %2930 = vmatprep.subr.bf16.mxu0 %v3119_v21 }
 0x209   :  { %2911 = vmatpush3.bf16.msra.mxu1 %v3087_v48 }
 0x20a   :  { %2912 = vmatprep.subr.bf16.mxu1 %v3119_v21 }
 0x20b   :  { %2931 = vmatpush3.bf16.msra.mxu0 %v3088_v49 }
 0x20c   :  { %2932 = vmatprep.subr.bf16.mxu0 %v3119_v21 }
 0x20d   :  { %2913 = vmatpush3.bf16.msra.mxu1 %v3089_v50 }
 0x20e   :  { %2914 = vmatprep.subr.bf16.mxu1 %v3119_v21 }
 0x20f   :  { %2933 = vmatpush3.bf16.msra.mxu0 %v3090_v51 }
 0x210   :  { %2934 = vmatprep.subr.bf16.mxu0 %v3119_v21 }
 0x211   :  { %2915 = vmatpush3.bf16.msra.mxu1 %v3091_v52 }
 0x212   :  { %2916 = vmatprep.subr.bf16.mxu1 %v3119_v21 }
 0x213   :  { %2935 = vmatpush3.bf16.msra.mxu0 %v3092_v53 }
 0x214   :  { %2936 = vmatprep.subr.bf16.mxu0 %v3119_v21 }
 0x215   :  { %2917 = vmatpush3.bf16.msra.mxu1 %v3093_v54 }
 0x217   :  { %2937 = vmatpush3.bf16.msra.mxu0 %v3094_v55 }
 0x218   :  { %v629_v57 = vpop.f32.mrf.mxu1  ;;  %2919 = vmatmul.mubr.bf16.vlgmr.msra.gmra.mxu1 %v1841_v56 }
 0x219   :  { %v635_v58 = vadd.f32 %v629_v57, %v527_v35 }
 0x21a   :  { %v2680_v59 = vpop.f32.mrf.mxu1  ;;  %v737_v60 = vpop.f32.mrf.mxu0  ;;  %2939 = vmatmul.mubr.bf16.vlgmr.msra.gmra.mxu0 %v1949_v41 }
 0x21b   :  { %v743_v61 = vadd.f32 %v737_v60, %v635_v58 }
 0x21c   :  { %v632_v62 = vpop.f32.mrf.mxu1  ;;  %v2700_v63 = vpop.f32.mrf.mxu0 }
 0x21e   :  { %v2681_v0 = vpop.f32.mrf.mxu1  ;;  %v740_v1 = vpop.f32.mrf.mxu0 }
 0x220   :  { %v2701_v2 = vpop.f32.mrf.mxu0 }
 0x238   :  { %v844_v3 = vpop.f32.mrf.mxu1 }
 0x239   :  { %v850_v21 = vadd.f32 %v844_v3, %v743_v61 }
 0x23a   :  { %v2720_v4 = vpop.f32.mrf.mxu1  ;;  %v953_v5 = vpop.f32.mrf.mxu0 }
 0x23b   :  { %v959_v6 = vadd.f32 %v953_v5, %v850_v21 }
 0x23c   :  { %v847_v7 = vpop.f32.mrf.mxu1  ;;  %v2740_v8 = vpop.f32.mrf.mxu0 }
 0x23e   :  { %v2721_v9 = vpop.f32.mrf.mxu1  ;;  %v956_v10 = vpop.f32.mrf.mxu0 }
 0x240   :  { %v2741_v11 = vpop.f32.mrf.mxu0 }
 0x258   :  { %v1061_v12 = vpop.f32.mrf.mxu1 }
 0x259   :  { %v1067_v13 = vadd.f32 %v1061_v12, %v959_v6 }
 0x25a   :  { %v2760_v14 = vpop.f32.mrf.mxu1  ;;  %v1169_v15 = vpop.f32.mrf.mxu0 }
 0x25b   :  { %v1175_v16 = vadd.f32 %v1169_v15, %v1067_v13 }
 0x25c   :  { %v1064_v17 = vpop.f32.mrf.mxu1  ;;  %v2780_v18 = vpop.f32.mrf.mxu0 }
 0x25e   :  { %v2761_v19 = vpop.f32.mrf.mxu1  ;;  %v1172_v20 = vpop.f32.mrf.mxu0 }
 0x260   :  { %v2781_v22 = vpop.f32.mrf.mxu0 }
 0x278   :  { %v1276_v23 = vpop.f32.mrf.mxu1 }
 0x279   :  { %v1282_v24 = vadd.f32 %v1276_v23, %v1175_v16 }
 0x27a   :  { %v2800_v25 = vpop.f32.mrf.mxu1  ;;  %v1385_v26 = vpop.f32.mrf.mxu0 }
 0x27b   :  { %v1391_v27 = vadd.f32 %v1385_v26, %v1282_v24 }
 0x27c   :  { %v1279_v28 = vpop.f32.mrf.mxu1  ;;  %v2820_v29 = vpop.f32.mrf.mxu0 }
 0x27e   :  { %v2801_v42 = vpop.f32.mrf.mxu1  ;;  %v1388_v30 = vpop.f32.mrf.mxu0 }
 0x280   :  { %v2821_v31 = vpop.f32.mrf.mxu0 }
 0x298   :  { %v1493_v32 = vpop.f32.mrf.mxu1 }
 0x299   :  { %v1499_v50 = vadd.f32 %v1493_v32, %v1391_v27 }
 0x29a   :  { %v2840_v33 = vpop.f32.mrf.mxu1  ;;  %v1601_v34 = vpop.f32.mrf.mxu0 }
 0x29b   :  { %v1607_v51 = vadd.f32 %v1601_v34, %v1499_v50 }
 0x29c   :  { %v1496_v35 = vpop.f32.mrf.mxu1  ;;  %v2860_v36 = vpop.f32.mrf.mxu0 }
 0x29e   :  { %v2841_v37 = vpop.f32.mrf.mxu1  ;;  %v1604_v38 = vpop.f32.mrf.mxu0 }
 0x2a0   :  { %v2861_v39 = vpop.f32.mrf.mxu0 }
 0x2b8   :  { %v1708_v40 = vpop.f32.mrf.mxu1 }
 0x2b9   :  { %v1714_v52 = vadd.f32 %v1708_v40, %v1607_v51 }
 0x2ba   :  { %v2880_v43 = vpop.f32.mrf.mxu1  ;;  %v1817_v44 = vpop.f32.mrf.mxu0 }
 0x2bb   :  { %v1823_v53 = vadd.f32 %v1817_v44, %v1714_v52 }
 0x2bc   :  { %v1711_v45 = vpop.f32.mrf.mxu1  ;;  %v2900_v46 = vpop.f32.mrf.mxu0 }
 0x2be   :  { %v2881_v47 = vpop.f32.mrf.mxu1  ;;  %v1820_v48 = vpop.f32.mrf.mxu0 }
 0x2c0   :  { %v2901_v49 = vpop.f32.mrf.mxu0 }
 0x2d8   :  { %v1925_v54 = vpop.f32.mrf.mxu1 }
 0x2d9   :  { %v1931_v55 = vadd.f32 %v1925_v54, %v1823_v53 }
 0x2da   :  { %v2920_v56 = vpop.f32.mrf.mxu1  ;;  %v2033_v57 = vpop.f32.mrf.mxu0 }
 0x2db   :  { %v2039_v41 = vadd.f32 %v2033_v57, %v1931_v55 }
 0x2dc   :  { %v1928_v58 = vpop.f32.mrf.mxu1  ;;  %v2940_v59 = vpop.f32.mrf.mxu0 }
 0x2dd   :  { %v2041_v60 = vmul.f32 0.2, %v2039_v41  ;;  %vm2040_vm5 = vcmp.gt.f32.partialorder %v2039_v41, 0.0 }
 0x2de   :  { %v2921_v61 = vpop.f32.mrf.mxu1  ;;  %v2036_v62 = vpop.f32.mrf.mxu0 }
 0x2df   :  { %v2042_v63 = vsel %vm2040_vm5, %v2039_v41, %v2041_v60 }
 0x2e0   :  { %v2941_v0 = vpop.f32.mrf.mxu0  ;;  %2043 = vst [vmem:[#allocation2] sm:$0x3] %v2042_v63 }
 0x2e1   :  { %3108 = shalt.err (!%p3105_p4)
}
 0x2e2   :  { %2053 = dma.vmem_to_hbm [thread:$0]  %s2051_s28, 32, %s3818_s7, [#allocation3]  }
 0x2e3   :  { %3117 = dma.done.wait [#allocation3], 32  }
 0x2e4   :  { %3118 = vsyncadd [#allocation3], 4294967264 }
 0x2e5   :  { %2057 = vsyncpa [#allocation3], 1 }

</bundles_post_ra>
